<compile_context>
chip_gen: v7x
topology: tpu7x:2x2x1
jax: 0.10.0
libtpu: 0.0.40
codegen_flags: <defaults>
</compile_context>

<pallas_src>
import functools

import jax
import jax.numpy as jnp
from jax import lax
from jax.experimental import pallas as pl
from jax.experimental.pallas import tpu as pltpu

EPS = 1e-5   # torch.nn.InstanceNorm2d default eps
LANE = 128   # TPU lane width; the channel dim is padded to a multiple of this


def _round_up(v, m):
    return (v + m - 1) // m * m


def _reflect_pad_hw(z):
    """Reflection pad (pad=1) along the first two axes of an (H, W, C) value."""
    z = jnp.concatenate([z[1:2], z, z[-2:-1]], axis=0)           # rows
    z = jnp.concatenate([z[:, 1:2], z, z[:, -2:-1]], axis=1)     # cols (+corners)
    return z


def _conv3x3_taps(z_bf16, w_ref, H, W, Cp):
    """3x3 reflect-padded conv as 9 accumulated MXU taps.

    z_bf16 : (H, W, Cp)  bf16 activation (already cast, once)
    w_ref  : (9, Cp, Cp) bf16 weight ref, tap-major ((kh*3+kw), cin, cout)
    returns: (H*W, Cp)   f32 accumulator
    """
    zp = _reflect_pad_hw(z_bf16)                      # (H+2, W+2, Cp) bf16, VMEM only
    acc = None
    for kh in range(3):
        for kw in range(3):
            tap = zp[kh:kh + H, kw:kw + W, :].reshape(H * W, Cp)
            part = jnp.dot(tap, w_ref[kh * 3 + kw],
                           preferred_element_type=jnp.float32)
            acc = part if acc is None else acc + part
    return acc


def _instance_norm(a, inv_hw):
    """Per-channel InstanceNorm (affine=False), two-pass stats. a: (H*W, C) f32."""
    mean = jnp.sum(a, axis=0, keepdims=True) * inv_hw
    centered = a - mean
    var = jnp.sum(centered * centered, axis=0, keepdims=True) * inv_hw
    return centered * lax.rsqrt(var + EPS)


def _resnet_block_kernel(x_ref, w1_ref, w2_ref, alpha_ref, o_ref, *, H, W, Cp):
    """Fused ResnetBlock for one batch element.

    x_ref    : (1, H, W, Cp) f32 input tile (VMEM), channels lane-padded
    w1_ref   : (9, Cp, Cp)   bf16 conv1 weight taps
    w2_ref   : (9, Cp, Cp)   bf16 conv2 weight taps
    alpha_ref: (1,)          f32 PReLU slope (SMEM)
    o_ref    : (1, H, W, Cp) f32 output
    """
    inv_hw = 1.0 / float(H * W)

    # conv1 -> InstanceNorm -> PReLU.  Conv bias is skipped: a per-channel
    # constant cancels exactly under InstanceNorm(affine=False).
    x_bf16 = x_ref[0].astype(jnp.bfloat16)            # cast once; f32 x not kept live
    h = _conv3x3_taps(x_bf16, w1_ref, H, W, Cp)       # (H*W, Cp) f32
    h = _instance_norm(h, inv_hw)
    alpha = alpha_ref[0]
    h = jnp.where(h >= 0, h, alpha * h)

    # conv2 -> InstanceNorm
    h = _conv3x3_taps(h.reshape(H, W, Cp).astype(jnp.bfloat16), w2_ref, H, W, Cp)
    h = _instance_norm(h, inv_hw)

    # Residual add fused into the single lane-dense output store; x is re-read
    # from VMEM here so its f32 value is not live across both convs.
    o_ref[0] = x_ref[0] + h.reshape(H, W, Cp)


def _vmem_limit_bytes(H, W, Cp):
    img_f32 = H * W * Cp * 4
    wts_bf16 = 9 * Cp * Cp * 2
    halo_bf16 = (H + 2) * (W + 2) * Cp * 2
    # in/out blocks double-buffered by the pipeline, weights + halo + f32
    # accumulator / IN temporaries inside the body, plus headroom.
    est = 4 * img_f32 + 4 * wts_bf16 + halo_bf16 + 3 * img_f32 + (8 << 20)
    # Clamp to a budget safe on every generation (v7x physical VMEM = 64 MiB).
    return int(min(max(est, 32 << 20), 48 << 20))


def resnet_block_forward_nhwc(x_nhwc, params):
    """ResnetBlock.forward on NHWC activations: x + conv_block(x).

    Prefer this entry point inside a full network so NCHW<->NHWC transposes do
    not round-trip HBM around every residual block.
    """
    N, H, W, C = x_nhwc.shape
    assert H >= 2 and W >= 2, "reflection pad=1 needs H, W >= 2"
    Cp = _round_up(max(C, LANE), LANE)                 # lane-dense channel count
    pad_c = Cp - C

    x = x_nhwc.astype(jnp.float32)
    if pad_c:
        x = jnp.pad(x, ((0, 0), (0, 0), (0, 0), (0, pad_c)))

    def prep_w(w):                                     # HWIO (3,3,C,C) -> (9,Cp,Cp) bf16
        w = w.reshape(9, C, C).astype(jnp.bfloat16)
        if pad_c:
            w = jnp.pad(w, ((0, 0), (0, pad_c), (0, pad_c)))
        return w

    w1 = prep_w(params["w1"])
    w2 = prep_w(params["w2"])
    alpha = params["alpha"].reshape(1).astype(jnp.float32)

    kernel = functools.partial(_resnet_block_kernel, H=H, W=W, Cp=Cp)
    y = pl.pallas_call(
        kernel,
        out_shape=jax.ShapeDtypeStruct((N, H, W, Cp), jnp.float32),
        grid=(N,),
        in_specs=[
            pl.BlockSpec((1, H, W, Cp), lambda n: (n, 0, 0, 0)),
            pl.BlockSpec((9, Cp, Cp), lambda n: (0, 0, 0)),
            pl.BlockSpec((9, Cp, Cp), lambda n: (0, 0, 0)),
            pl.BlockSpec(memory_space=pltpu.MemorySpace.SMEM),
        ],
        out_specs=pl.BlockSpec((1, H, W, Cp), lambda n: (n, 0, 0, 0)),
        compiler_params=pltpu.CompilerParams(
            dimension_semantics=("parallel",),
            vmem_limit_bytes=_vmem_limit_bytes(H, W, Cp),
        ),
    )(x, w1, w2, alpha)

    return y[..., :C] if pad_c else y


def resnet_block_forward(x_nchw, params):
    """NCHW boundary kept only for drop-in PyTorch parity; use the NHWC entry
    point inside a network to avoid per-block HBM transposes."""
    x = jnp.transpose(x_nchw, (0, 2, 3, 1))
    y = resnet_block_forward_nhwc(x, params)
    return jnp.transpose(y, (0, 3, 1, 2))


def _reference_forward(x_nchw, params, conv_dtype=jnp.float32):
    """Pure-JAX reference (optionally with bf16 conv operands to match kernel)."""
    x = jnp.transpose(x_nchw, (0, 2, 3, 1)).astype(jnp.float32)

    def conv(z, w, b):
        zp = jnp.pad(z, ((0, 0), (1, 1), (1, 1), (0, 0)), mode="reflect")
        out = lax.conv_general_dilated(
            zp.astype(conv_dtype), w.astype(conv_dtype), (1, 1), "VALID",
            dimension_numbers=("NHWC", "HWIO", "NHWC"),
            preferred_element_type=jnp.float32)
        return out + b   # bias kept here; it cancels under InstanceNorm

    def inorm(z):
        m = jnp.mean(z, axis=(1, 2), keepdims=True)
        v = jnp.mean((z - m) ** 2, axis=(1, 2), keepdims=True)
        return (z - m) * lax.rsqrt(v + EPS)

    y = inorm(conv(x, params["w1"], params["b1"]))
    a = params["alpha"][0]
    y = jnp.where(y >= 0, y, a * y)
    y = inorm(conv(y, params["w2"], params["b2"]))
    return jnp.transpose(x + y, (0, 3, 1, 2))


def init_params(key, dim):
    k1, k2, k3, k4 = jax.random.split(key, 4)
    # Conv2d weights kept in HWIO (3, 3, C_in, C_out) for the NHWC kernel.
    w1 = 0.1 * jax.random.normal(k1, (3, 3, dim, dim), jnp.float32)
    b1 = 0.1 * jax.random.normal(k2, (dim,), jnp.float32)
    w2 = 0.1 * jax.random.normal(k3, (3, 3, dim, dim), jnp.float32)
    b2 = 0.1 * jax.random.normal(k4, (dim,), jnp.float32)
    alpha = jnp.array([0.25], jnp.float32)   # nn.PReLU() default init
    return {"w1": w1, "b1": b1, "w2": w2, "b2": b2, "alpha": alpha}


if __name__ == "__main__":
    key = jax.random.PRNGKey(0)
    kx, kp = jax.random.split(key)
    N, C, H, W = 2, 4, 16, 16
    x = jax.random.normal(kx, (N, C, H, W), jnp.float32)   # NCHW, like PyTorch
    params = init_params(kp, C)

    out = resnet_block_forward(x, params)
    out = jax.block_until_ready(out)
    assert out.shape == (N, C, H, W)

    # Primary check: matches a reference that uses the same bf16 conv operands.
    ref_bf16 = _reference_forward(x, params, conv_dtype=jnp.bfloat16)
    assert jnp.allclose(out, ref_bf16, rtol=2e-3, atol=2e-3), \
        "mismatch vs bf16-operand reference"

    # Sanity check: close to the full-f32 reference (bf16 quantization only).
    ref_f32 = _reference_forward(x, params, conv_dtype=jnp.float32)
    assert jnp.allclose(out, ref_f32, rtol=5e-2, atol=5e-2), \
        "mismatch vs f32 reference"

    print("KERNEL_OK")
</pallas_src>

<mosaic_0001>
module attributes {stable_mosaic.version = 11 : i64} {
  func.func @_resnet_block_kernel(%arg0: i32, %arg1: memref<1x16x16x128xf32, #tpu.memory_space<vmem>>, %arg2: memref<9x128x128xbf16, #tpu.memory_space<vmem>>, %arg3: memref<9x128x128xbf16, #tpu.memory_space<vmem>>, %arg4: memref<1xf32, #tpu.memory_space<smem>>, %arg5: memref<1x16x16x128xf32, #tpu.memory_space<vmem>>) attributes {dimension_semantics = [#tpu.dimension_semantics<parallel>], iteration_bounds = array<i64: 2>, scalar_prefetch = 0 : i64, scratch_operands = 0 : i64, tpu.core_type = #tpu.core_type<tc>, window_params = [{transform_indices = @transform_0, window_bounds = array<i64: 1, 16, 16, 128>}, {pipeline_mode = #tpu.pipeline_mode<synchronous>, transform_indices = @transform_1, window_bounds = array<i64: 9, 128, 128>}, {pipeline_mode = #tpu.pipeline_mode<synchronous>, transform_indices = @transform_2, window_bounds = array<i64: 9, 128, 128>}, {transform_indices = @transform_3, window_bounds = array<i64: 1>}, {transform_indices = @transform_4, window_bounds = array<i64: 1, 16, 16, 128>}]} {
    %c0 = arith.constant 0 : index
    %c0_0 = arith.constant 0 : index
    %c0_1 = arith.constant 0 : index
    %c0_2 = arith.constant 0 : index
    %0 = vector.load %arg1[%c0, %c0_0, %c0_1, %c0_2] : memref<1x16x16x128xf32, #tpu.memory_space<vmem>>, vector<1x16x16x128xf32>
    %1 = vector.shape_cast %0 : vector<1x16x16x128xf32> to vector<16x16x128xf32>
    %2 = arith.truncf %1 : vector<16x16x128xf32> to vector<16x16x128xbf16>
    %3 = vector.extract_strided_slice %2 {offsets = [1, 0, 0], sizes = [1, 16, 128], strides = [1, 1, 1]} : vector<16x16x128xbf16> to vector<1x16x128xbf16>
    %4 = vector.extract_strided_slice %2 {offsets = [14, 0, 0], sizes = [1, 16, 128], strides = [1, 1, 1]} : vector<16x16x128xbf16> to vector<1x16x128xbf16>
    %5 = tpu.concatenate %3, %2, %4 in 0 : vector<1x16x128xbf16>, vector<16x16x128xbf16>, vector<1x16x128xbf16> -> vector<18x16x128xbf16>
    %6 = vector.extract_strided_slice %5 {offsets = [0, 1, 0], sizes = [18, 1, 128], strides = [1, 1, 1]} : vector<18x16x128xbf16> to vector<18x1x128xbf16>
    %7 = vector.extract_strided_slice %5 {offsets = [0, 14, 0], sizes = [18, 1, 128], strides = [1, 1, 1]} : vector<18x16x128xbf16> to vector<18x1x128xbf16>
    %8 = tpu.concatenate %6, %5, %7 in 1 : vector<18x1x128xbf16>, vector<18x16x128xbf16>, vector<18x1x128xbf16> -> vector<18x18x128xbf16>
    %9 = vector.extract_strided_slice %8 {offsets = [0, 0, 0], sizes = [16, 16, 128], strides = [1, 1, 1]} : vector<18x18x128xbf16> to vector<16x16x128xbf16>
    %10 = vector.shape_cast %9 : vector<16x16x128xbf16> to vector<256x128xbf16>
    %c0_3 = arith.constant 0 : index
    %c0_4 = arith.constant 0 : index
    %c0_5 = arith.constant 0 : index
    %11 = vector.load %arg2[%c0_3, %c0_4, %c0_5] : memref<9x128x128xbf16, #tpu.memory_space<vmem>>, vector<1x128x128xbf16>
    %12 = vector.shape_cast %11 : vector<1x128x128xbf16> to vector<128x128xbf16>
    %cst = arith.constant dense<0.000000e+00> : vector<256x128xf32>
    %13 = tpu.matmul %10, %12, %cst {dimension_numbers = #tpu.dot_dimension_numbers<[1], [0], [0], [1], [0, 0, 1, 1], [], []>} : vector<256x128xbf16>, vector<128x128xbf16>, vector<256x128xf32> -> vector<256x128xf32>
    %14 = vector.extract_strided_slice %8 {offsets = [0, 1, 0], sizes = [16, 16, 128], strides = [1, 1, 1]} : vector<18x18x128xbf16> to vector<16x16x128xbf16>
    %15 = vector.shape_cast %14 : vector<16x16x128xbf16> to vector<256x128xbf16>
    %c1 = arith.constant 1 : index
    %c0_6 = arith.constant 0 : index
    %c0_7 = arith.constant 0 : index
    %16 = vector.load %arg2[%c1, %c0_6, %c0_7] : memref<9x128x128xbf16, #tpu.memory_space<vmem>>, vector<1x128x128xbf16>
    %17 = vector.shape_cast %16 : vector<1x128x128xbf16> to vector<128x128xbf16>
    %cst_8 = arith.constant dense<0.000000e+00> : vector<256x128xf32>
    %18 = tpu.matmul %15, %17, %cst_8 {dimension_numbers = #tpu.dot_dimension_numbers<[1], [0], [0], [1], [0, 0, 1, 1], [], []>} : vector<256x128xbf16>, vector<128x128xbf16>, vector<256x128xf32> -> vector<256x128xf32>
    %19 = arith.addf %13, %18 : vector<256x128xf32>
    %20 = vector.extract_strided_slice %8 {offsets = [0, 2, 0], sizes = [16, 16, 128], strides = [1, 1, 1]} : vector<18x18x128xbf16> to vector<16x16x128xbf16>
    %21 = vector.shape_cast %20 : vector<16x16x128xbf16> to vector<256x128xbf16>
    %c2 = arith.constant 2 : index
    %c0_9 = arith.constant 0 : index
    %c0_10 = arith.constant 0 : index
    %22 = vector.load %arg2[%c2, %c0_9, %c0_10] : memref<9x128x128xbf16, #tpu.memory_space<vmem>>, vector<1x128x128xbf16>
    %23 = vector.shape_cast %22 : vector<1x128x128xbf16> to vector<128x128xbf16>
    %cst_11 = arith.constant dense<0.000000e+00> : vector<256x128xf32>
    %24 = tpu.matmul %21, %23, %cst_11 {dimension_numbers = #tpu.dot_dimension_numbers<[1], [0], [0], [1], [0, 0, 1, 1], [], []>} : vector<256x128xbf16>, vector<128x128xbf16>, vector<256x128xf32> -> vector<256x128xf32>
    %25 = arith.addf %19, %24 : vector<256x128xf32>
    %26 = vector.extract_strided_slice %8 {offsets = [1, 0, 0], sizes = [16, 16, 128], strides = [1, 1, 1]} : vector<18x18x128xbf16> to vector<16x16x128xbf16>
    %27 = vector.shape_cast %26 : vector<16x16x128xbf16> to vector<256x128xbf16>
    %c3 = arith.constant 3 : index
    %c0_12 = arith.constant 0 : index
    %c0_13 = arith.constant 0 : index
    %28 = vector.load %arg2[%c3, %c0_12, %c0_13] : memref<9x128x128xbf16, #tpu.memory_space<vmem>>, vector<1x128x128xbf16>
    %29 = vector.shape_cast %28 : vector<1x128x128xbf16> to vector<128x128xbf16>
    %cst_14 = arith.constant dense<0.000000e+00> : vector<256x128xf32>
    %30 = tpu.matmul %27, %29, %cst_14 {dimension_numbers = #tpu.dot_dimension_numbers<[1], [0], [0], [1], [0, 0, 1, 1], [], []>} : vector<256x128xbf16>, vector<128x128xbf16>, vector<256x128xf32> -> vector<256x128xf32>
    %31 = arith.addf %25, %30 : vector<256x128xf32>
    %32 = vector.extract_strided_slice %8 {offsets = [1, 1, 0], sizes = [16, 16, 128], strides = [1, 1, 1]} : vector<18x18x128xbf16> to vector<16x16x128xbf16>
    %33 = vector.shape_cast %32 : vector<16x16x128xbf16> to vector<256x128xbf16>
    %c4 = arith.constant 4 : index
    %c0_15 = arith.constant 0 : index
    %c0_16 = arith.constant 0 : index
    %34 = vector.load %arg2[%c4, %c0_15, %c0_16] : memref<9x128x128xbf16, #tpu.memory_space<vmem>>, vector<1x128x128xbf16>
    %35 = vector.shape_cast %34 : vector<1x128x128xbf16> to vector<128x128xbf16>
    %cst_17 = arith.constant dense<0.000000e+00> : vector<256x128xf32>
    %36 = tpu.matmul %33, %35, %cst_17 {dimension_numbers = #tpu.dot_dimension_numbers<[1], [0], [0], [1], [0, 0, 1, 1], [], []>} : vector<256x128xbf16>, vector<128x128xbf16>, vector<256x128xf32> -> vector<256x128xf32>
    %37 = arith.addf %31, %36 : vector<256x128xf32>
    %38 = vector.extract_strided_slice %8 {offsets = [1, 2, 0], sizes = [16, 16, 128], strides = [1, 1, 1]} : vector<18x18x128xbf16> to vector<16x16x128xbf16>
    %39 = vector.shape_cast %38 : vector<16x16x128xbf16> to vector<256x128xbf16>
    %c5 = arith.constant 5 : index
    %c0_18 = arith.constant 0 : index
    %c0_19 = arith.constant 0 : index
    %40 = vector.load %arg2[%c5, %c0_18, %c0_19] : memref<9x128x128xbf16, #tpu.memory_space<vmem>>, vector<1x128x128xbf16>
    %41 = vector.shape_cast %40 : vector<1x128x128xbf16> to vector<128x128xbf16>
    %cst_20 = arith.constant dense<0.000000e+00> : vector<256x128xf32>
    %42 = tpu.matmul %39, %41, %cst_20 {dimension_numbers = #tpu.dot_dimension_numbers<[1], [0], [0], [1], [0, 0, 1, 1], [], []>} : vector<256x128xbf16>, vector<128x128xbf16>, vector<256x128xf32> -> vector<256x128xf32>
    %43 = arith.addf %37, %42 : vector<256x128xf32>
    %44 = vector.extract_strided_slice %8 {offsets = [2, 0, 0], sizes = [16, 16, 128], strides = [1, 1, 1]} : vector<18x18x128xbf16> to vector<16x16x128xbf16>
    %45 = vector.shape_cast %44 : vector<16x16x128xbf16> to vector<256x128xbf16>
    %c6 = arith.constant 6 : index
    %c0_21 = arith.constant 0 : index
    %c0_22 = arith.constant 0 : index
    %46 = vector.load %arg2[%c6, %c0_21, %c0_22] : memref<9x128x128xbf16, #tpu.memory_space<vmem>>, vector<1x128x128xbf16>
    %47 = vector.shape_cast %46 : vector<1x128x128xbf16> to vector<128x128xbf16>
    %cst_23 = arith.constant dense<0.000000e+00> : vector<256x128xf32>
    %48 = tpu.matmul %45, %47, %cst_23 {dimension_numbers = #tpu.dot_dimension_numbers<[1], [0], [0], [1], [0, 0, 1, 1], [], []>} : vector<256x128xbf16>, vector<128x128xbf16>, vector<256x128xf32> -> vector<256x128xf32>
    %49 = arith.addf %43, %48 : vector<256x128xf32>
    %50 = vector.extract_strided_slice %8 {offsets = [2, 1, 0], sizes = [16, 16, 128], strides = [1, 1, 1]} : vector<18x18x128xbf16> to vector<16x16x128xbf16>
    %51 = vector.shape_cast %50 : vector<16x16x128xbf16> to vector<256x128xbf16>
    %c7 = arith.constant 7 : index
    %c0_24 = arith.constant 0 : index
    %c0_25 = arith.constant 0 : index
    %52 = vector.load %arg2[%c7, %c0_24, %c0_25] : memref<9x128x128xbf16, #tpu.memory_space<vmem>>, vector<1x128x128xbf16>
    %53 = vector.shape_cast %52 : vector<1x128x128xbf16> to vector<128x128xbf16>
    %cst_26 = arith.constant dense<0.000000e+00> : vector<256x128xf32>
    %54 = tpu.matmul %51, %53, %cst_26 {dimension_numbers = #tpu.dot_dimension_numbers<[1], [0], [0], [1], [0, 0, 1, 1], [], []>} : vector<256x128xbf16>, vector<128x128xbf16>, vector<256x128xf32> -> vector<256x128xf32>
    %55 = arith.addf %49, %54 : vector<256x128xf32>
    %56 = vector.extract_strided_slice %8 {offsets = [2, 2, 0], sizes = [16, 16, 128], strides = [1, 1, 1]} : vector<18x18x128xbf16> to vector<16x16x128xbf16>
    %57 = vector.shape_cast %56 : vector<16x16x128xbf16> to vector<256x128xbf16>
    %c8 = arith.constant 8 : index
    %c0_27 = arith.constant 0 : index
    %c0_28 = arith.constant 0 : index
    %58 = vector.load %arg2[%c8, %c0_27, %c0_28] : memref<9x128x128xbf16, #tpu.memory_space<vmem>>, vector<1x128x128xbf16>
    %59 = vector.shape_cast %58 : vector<1x128x128xbf16> to vector<128x128xbf16>
    %cst_29 = arith.constant dense<0.000000e+00> : vector<256x128xf32>
    %60 = tpu.matmul %57, %59, %cst_29 {dimension_numbers = #tpu.dot_dimension_numbers<[1], [0], [0], [1], [0, 0, 1, 1], [], []>} : vector<256x128xbf16>, vector<128x128xbf16>, vector<256x128xf32> -> vector<256x128xf32>
    %61 = arith.addf %55, %60 : vector<256x128xf32>
    %cst_30 = arith.constant dense<0.000000e+00> : vector<128xf32>
    %62 = vector.multi_reduction <add>, %61, %cst_30 [0] : vector<256x128xf32> to vector<128xf32>
    %63 = vector.shape_cast %62 : vector<128xf32> to vector<1x128xf32>
    %cst_31 = arith.constant 3.906250e-03 : f32
    %64 = vector.broadcast %cst_31 : f32 to vector<1x128xf32>
    %65 = arith.mulf %63, %64 : vector<1x128xf32>
    %66 = vector.broadcast %65 : vector<1x128xf32> to vector<256x128xf32>
    %67 = arith.subf %61, %66 : vector<256x128xf32>
    %68 = arith.mulf %67, %67 : vector<256x128xf32>
    %cst_32 = arith.constant dense<0.000000e+00> : vector<128xf32>
    %69 = vector.multi_reduction <add>, %68, %cst_32 [0] : vector<256x128xf32> to vector<128xf32>
    %70 = vector.shape_cast %69 : vector<128xf32> to vector<1x128xf32>
    %cst_33 = arith.constant 3.906250e-03 : f32
    %71 = vector.broadcast %cst_33 : f32 to vector<1x128xf32>
    %72 = arith.mulf %70, %71 : vector<1x128xf32>
    %cst_34 = arith.constant 9.99999974E-6 : f32
    %73 = vector.broadcast %cst_34 : f32 to vector<1x128xf32>
    %74 = arith.addf %72, %73 : vector<1x128xf32>
    %75 = math.rsqrt %74 : vector<1x128xf32>
    %76 = vector.broadcast %75 : vector<1x128xf32> to vector<256x128xf32>
    %77 = arith.mulf %67, %76 : vector<256x128xf32>
    %c0_35 = arith.constant 0 : index
    %78 = memref.load %arg4[%c0_35] : memref<1xf32, #tpu.memory_space<smem>>
    %cst_36 = arith.constant 0.000000e+00 : f32
    %79 = vector.broadcast %cst_36 : f32 to vector<256x128xf32>
    %80 = arith.cmpf oge, %77, %79 : vector<256x128xf32>
    %81 = vector.broadcast %78 : f32 to vector<256x128xf32>
    %82 = arith.mulf %81, %77 : vector<256x128xf32>
    %83 = arith.select %80, %77, %82 : vector<256x128xi1>, vector<256x128xf32>
    %84 = vector.shape_cast %83 : vector<256x128xf32> to vector<16x16x128xf32>
    %85 = arith.truncf %84 : vector<16x16x128xf32> to vector<16x16x128xbf16>
    %86 = vector.extract_strided_slice %85 {offsets = [1, 0, 0], sizes = [1, 16, 128], strides = [1, 1, 1]} : vector<16x16x128xbf16> to vector<1x16x128xbf16>
    %87 = vector.extract_strided_slice %85 {offsets = [14, 0, 0], sizes = [1, 16, 128], strides = [1, 1, 1]} : vector<16x16x128xbf16> to vector<1x16x128xbf16>
    %88 = tpu.concatenate %86, %85, %87 in 0 : vector<1x16x128xbf16>, vector<16x16x128xbf16>, vector<1x16x128xbf16> -> vector<18x16x128xbf16>
    %89 = vector.extract_strided_slice %88 {offsets = [0, 1, 0], sizes = [18, 1, 128], strides = [1, 1, 1]} : vector<18x16x128xbf16> to vector<18x1x128xbf16>
    %90 = vector.extract_strided_slice %88 {offsets = [0, 14, 0], sizes = [18, 1, 128], strides = [1, 1, 1]} : vector<18x16x128xbf16> to vector<18x1x128xbf16>
    %91 = tpu.concatenate %89, %88, %90 in 1 : vector<18x1x128xbf16>, vector<18x16x128xbf16>, vector<18x1x128xbf16> -> vector<18x18x128xbf16>
    %92 = vector.extract_strided_slice %91 {offsets = [0, 0, 0], sizes = [16, 16, 128], strides = [1, 1, 1]} : vector<18x18x128xbf16> to vector<16x16x128xbf16>
    %93 = vector.shape_cast %92 : vector<16x16x128xbf16> to vector<256x128xbf16>
    %c0_37 = arith.constant 0 : index
    %c0_38 = arith.constant 0 : index
    %c0_39 = arith.constant 0 : index
    %94 = vector.load %arg3[%c0_37, %c0_38, %c0_39] : memref<9x128x128xbf16, #tpu.memory_space<vmem>>, vector<1x128x128xbf16>
    %95 = vector.shape_cast %94 : vector<1x128x128xbf16> to vector<128x128xbf16>
    %cst_40 = arith.constant dense<0.000000e+00> : vector<256x128xf32>
    %96 = tpu.matmul %93, %95, %cst_40 {dimension_numbers = #tpu.dot_dimension_numbers<[1], [0], [0], [1], [0, 0, 1, 1], [], []>} : vector<256x128xbf16>, vector<128x128xbf16>, vector<256x128xf32> -> vector<256x128xf32>
    %97 = vector.extract_strided_slice %91 {offsets = [0, 1, 0], sizes = [16, 16, 128], strides = [1, 1, 1]} : vector<18x18x128xbf16> to vector<16x16x128xbf16>
    %98 = vector.shape_cast %97 : vector<16x16x128xbf16> to vector<256x128xbf16>
    %c1_41 = arith.constant 1 : index
    %c0_42 = arith.constant 0 : index
    %c0_43 = arith.constant 0 : index
    %99 = vector.load %arg3[%c1_41, %c0_42, %c0_43] : memref<9x128x128xbf16, #tpu.memory_space<vmem>>, vector<1x128x128xbf16>
    %100 = vector.shape_cast %99 : vector<1x128x128xbf16> to vector<128x128xbf16>
    %cst_44 = arith.constant dense<0.000000e+00> : vector<256x128xf32>
    %101 = tpu.matmul %98, %100, %cst_44 {dimension_numbers = #tpu.dot_dimension_numbers<[1], [0], [0], [1], [0, 0, 1, 1], [], []>} : vector<256x128xbf16>, vector<128x128xbf16>, vector<256x128xf32> -> vector<256x128xf32>
    %102 = arith.addf %96, %101 : vector<256x128xf32>
    %103 = vector.extract_strided_slice %91 {offsets = [0, 2, 0], sizes = [16, 16, 128], strides = [1, 1, 1]} : vector<18x18x128xbf16> to vector<16x16x128xbf16>
    %104 = vector.shape_cast %103 : vector<16x16x128xbf16> to vector<256x128xbf16>
    %c2_45 = arith.constant 2 : index
    %c0_46 = arith.constant 0 : index
    %c0_47 = arith.constant 0 : index
    %105 = vector.load %arg3[%c2_45, %c0_46, %c0_47] : memref<9x128x128xbf16, #tpu.memory_space<vmem>>, vector<1x128x128xbf16>
    %106 = vector.shape_cast %105 : vector<1x128x128xbf16> to vector<128x128xbf16>
    %cst_48 = arith.constant dense<0.000000e+00> : vector<256x128xf32>
    %107 = tpu.matmul %104, %106, %cst_48 {dimension_numbers = #tpu.dot_dimension_numbers<[1], [0], [0], [1], [0, 0, 1, 1], [], []>} : vector<256x128xbf16>, vector<128x128xbf16>, vector<256x128xf32> -> vector<256x128xf32>
    %108 = arith.addf %102, %107 : vector<256x128xf32>
    %109 = vector.extract_strided_slice %91 {offsets = [1, 0, 0], sizes = [16, 16, 128], strides = [1, 1, 1]} : vector<18x18x128xbf16> to vector<16x16x128xbf16>
    %110 = vector.shape_cast %109 : vector<16x16x128xbf16> to vector<256x128xbf16>
    %c3_49 = arith.constant 3 : index
    %c0_50 = arith.constant 0 : index
    %c0_51 = arith.constant 0 : index
    %111 = vector.load %arg3[%c3_49, %c0_50, %c0_51] : memref<9x128x128xbf16, #tpu.memory_space<vmem>>, vector<1x128x128xbf16>
    %112 = vector.shape_cast %111 : vector<1x128x128xbf16> to vector<128x128xbf16>
    %cst_52 = arith.constant dense<0.000000e+00> : vector<256x128xf32>
    %113 = tpu.matmul %110, %112, %cst_52 {dimension_numbers = #tpu.dot_dimension_numbers<[1], [0], [0], [1], [0, 0, 1, 1], [], []>} : vector<256x128xbf16>, vector<128x128xbf16>, vector<256x128xf32> -> vector<256x128xf32>
    %114 = arith.addf %108, %113 : vector<256x128xf32>
    %115 = vector.extract_strided_slice %91 {offsets = [1, 1, 0], sizes = [16, 16, 128], strides = [1, 1, 1]} : vector<18x18x128xbf16> to vector<16x16x128xbf16>
    %116 = vector.shape_cast %115 : vector<16x16x128xbf16> to vector<256x128xbf16>
    %c4_53 = arith.constant 4 : index
    %c0_54 = arith.constant 0 : index
    %c0_55 = arith.constant 0 : index
    %117 = vector.load %arg3[%c4_53, %c0_54, %c0_55] : memref<9x128x128xbf16, #tpu.memory_space<vmem>>, vector<1x128x128xbf16>
    %118 = vector.shape_cast %117 : vector<1x128x128xbf16> to vector<128x128xbf16>
    %cst_56 = arith.constant dense<0.000000e+00> : vector<256x128xf32>
    %119 = tpu.matmul %116, %118, %cst_56 {dimension_numbers = #tpu.dot_dimension_numbers<[1], [0], [0], [1], [0, 0, 1, 1], [], []>} : vector<256x128xbf16>, vector<128x128xbf16>, vector<256x128xf32> -> vector<256x128xf32>
    %120 = arith.addf %114, %119 : vector<256x128xf32>
    %121 = vector.extract_strided_slice %91 {offsets = [1, 2, 0], sizes = [16, 16, 128], strides = [1, 1, 1]} : vector<18x18x128xbf16> to vector<16x16x128xbf16>
    %122 = vector.shape_cast %121 : vector<16x16x128xbf16> to vector<256x128xbf16>
    %c5_57 = arith.constant 5 : index
    %c0_58 = arith.constant 0 : index
    %c0_59 = arith.constant 0 : index
    %123 = vector.load %arg3[%c5_57, %c0_58, %c0_59] : memref<9x128x128xbf16, #tpu.memory_space<vmem>>, vector<1x128x128xbf16>
    %124 = vector.shape_cast %123 : vector<1x128x128xbf16> to vector<128x128xbf16>
    %cst_60 = arith.constant dense<0.000000e+00> : vector<256x128xf32>
    %125 = tpu.matmul %122, %124, %cst_60 {dimension_numbers = #tpu.dot_dimension_numbers<[1], [0], [0], [1], [0, 0, 1, 1], [], []>} : vector<256x128xbf16>, vector<128x128xbf16>, vector<256x128xf32> -> vector<256x128xf32>
    %126 = arith.addf %120, %125 : vector<256x128xf32>
    %127 = vector.extract_strided_slice %91 {offsets = [2, 0, 0], sizes = [16, 16, 128], strides = [1, 1, 1]} : vector<18x18x128xbf16> to vector<16x16x128xbf16>
    %128 = vector.shape_cast %127 : vector<16x16x128xbf16> to vector<256x128xbf16>
    %c6_61 = arith.constant 6 : index
    %c0_62 = arith.constant 0 : index
    %c0_63 = arith.constant 0 : index
    %129 = vector.load %arg3[%c6_61, %c0_62, %c0_63] : memref<9x128x128xbf16, #tpu.memory_space<vmem>>, vector<1x128x128xbf16>
    %130 = vector.shape_cast %129 : vector<1x128x128xbf16> to vector<128x128xbf16>
    %cst_64 = arith.constant dense<0.000000e+00> : vector<256x128xf32>
    %131 = tpu.matmul %128, %130, %cst_64 {dimension_numbers = #tpu.dot_dimension_numbers<[1], [0], [0], [1], [0, 0, 1, 1], [], []>} : vector<256x128xbf16>, vector<128x128xbf16>, vector<256x128xf32> -> vector<256x128xf32>
    %132 = arith.addf %126, %131 : vector<256x128xf32>
    %133 = vector.extract_strided_slice %91 {offsets = [2, 1, 0], sizes = [16, 16, 128], strides = [1, 1, 1]} : vector<18x18x128xbf16> to vector<16x16x128xbf16>
    %134 = vector.shape_cast %133 : vector<16x16x128xbf16> to vector<256x128xbf16>
    %c7_65 = arith.constant 7 : index
    %c0_66 = arith.constant 0 : index
    %c0_67 = arith.constant 0 : index
    %135 = vector.load %arg3[%c7_65, %c0_66, %c0_67] : memref<9x128x128xbf16, #tpu.memory_space<vmem>>, vector<1x128x128xbf16>
    %136 = vector.shape_cast %135 : vector<1x128x128xbf16> to vector<128x128xbf16>
    %cst_68 = arith.constant dense<0.000000e+00> : vector<256x128xf32>
    %137 = tpu.matmul %134, %136, %cst_68 {dimension_numbers = #tpu.dot_dimension_numbers<[1], [0], [0], [1], [0, 0, 1, 1], [], []>} : vector<256x128xbf16>, vector<128x128xbf16>, vector<256x128xf32> -> vector<256x128xf32>
    %138 = arith.addf %132, %137 : vector<256x128xf32>
    %139 = vector.extract_strided_slice %91 {offsets = [2, 2, 0], sizes = [16, 16, 128], strides = [1, 1, 1]} : vector<18x18x128xbf16> to vector<16x16x128xbf16>
    %140 = vector.shape_cast %139 : vector<16x16x128xbf16> to vector<256x128xbf16>
    %c8_69 = arith.constant 8 : index
    %c0_70 = arith.constant 0 : index
    %c0_71 = arith.constant 0 : index
    %141 = vector.load %arg3[%c8_69, %c0_70, %c0_71] : memref<9x128x128xbf16, #tpu.memory_space<vmem>>, vector<1x128x128xbf16>
    %142 = vector.shape_cast %141 : vector<1x128x128xbf16> to vector<128x128xbf16>
    %cst_72 = arith.constant dense<0.000000e+00> : vector<256x128xf32>
    %143 = tpu.matmul %140, %142, %cst_72 {dimension_numbers = #tpu.dot_dimension_numbers<[1], [0], [0], [1], [0, 0, 1, 1], [], []>} : vector<256x128xbf16>, vector<128x128xbf16>, vector<256x128xf32> -> vector<256x128xf32>
    %144 = arith.addf %138, %143 : vector<256x128xf32>
    %cst_73 = arith.constant dense<0.000000e+00> : vector<128xf32>
    %145 = vector.multi_reduction <add>, %144, %cst_73 [0] : vector<256x128xf32> to vector<128xf32>
    %146 = vector.shape_cast %145 : vector<128xf32> to vector<1x128xf32>
    %cst_74 = arith.constant 3.906250e-03 : f32
    %147 = vector.broadcast %cst_74 : f32 to vector<1x128xf32>
    %148 = arith.mulf %146, %147 : vector<1x128xf32>
    %149 = vector.broadcast %148 : vector<1x128xf32> to vector<256x128xf32>
    %150 = arith.subf %144, %149 : vector<256x128xf32>
    %151 = arith.mulf %150, %150 : vector<256x128xf32>
    %cst_75 = arith.constant dense<0.000000e+00> : vector<128xf32>
    %152 = vector.multi_reduction <add>, %151, %cst_75 [0] : vector<256x128xf32> to vector<128xf32>
    %153 = vector.shape_cast %152 : vector<128xf32> to vector<1x128xf32>
    %cst_76 = arith.constant 3.906250e-03 : f32
    %154 = vector.broadcast %cst_76 : f32 to vector<1x128xf32>
    %155 = arith.mulf %153, %154 : vector<1x128xf32>
    %cst_77 = arith.constant 9.99999974E-6 : f32
    %156 = vector.broadcast %cst_77 : f32 to vector<1x128xf32>
    %157 = arith.addf %155, %156 : vector<1x128xf32>
    %158 = math.rsqrt %157 : vector<1x128xf32>
    %159 = vector.broadcast %158 : vector<1x128xf32> to vector<256x128xf32>
    %160 = arith.mulf %150, %159 : vector<256x128xf32>
    %c0_78 = arith.constant 0 : index
    %c0_79 = arith.constant 0 : index
    %c0_80 = arith.constant 0 : index
    %c0_81 = arith.constant 0 : index
    %161 = vector.load %arg1[%c0_78, %c0_79, %c0_80, %c0_81] : memref<1x16x16x128xf32, #tpu.memory_space<vmem>>, vector<1x16x16x128xf32>
    %162 = vector.shape_cast %161 : vector<1x16x16x128xf32> to vector<16x16x128xf32>
    %163 = vector.shape_cast %160 : vector<256x128xf32> to vector<16x16x128xf32>
    %164 = arith.addf %162, %163 : vector<16x16x128xf32>
    %c0_82 = arith.constant 0 : index
    %c0_83 = arith.constant 0 : index
    %c0_84 = arith.constant 0 : index
    %c0_85 = arith.constant 0 : index
    %165 = vector.load %arg5[%c0_82, %c0_83, %c0_84, %c0_85] : memref<1x16x16x128xf32, #tpu.memory_space<vmem>>, vector<1x16x16x128xf32>
    %166 = vector.shape_cast %165 : vector<1x16x16x128xf32> to vector<16x16x128xf32>
    %167 = vector.shape_cast %164 : vector<16x16x128xf32> to vector<1x16x16x128xf32>
    tpu.vector_store %arg5[%c0_82, %c0_83, %c0_84, %c0_85], %167 {strides = array<i32>} : memref<1x16x16x128xf32, #tpu.memory_space<vmem>>, vector<1x16x16x128xf32>,
    return
  }
  func.func @transform_0(%arg0: i32) -> (i32, i32, i32, i32) {
    %c0_i32 = arith.constant 0 : i32
    %c0_i32_0 = arith.constant 0 : i32
    %c0_i32_1 = arith.constant 0 : i32
    %c0_i32_2 = arith.constant 0 : i32
    return %arg0, %c0_i32, %c0_i32_0, %c0_i32_1 : i32, i32, i32, i32
  }
  func.func @transform_1(%arg0: i32) -> (i32, i32, i32) {
    %c0_i32 = arith.constant 0 : i32
    %c0_i32_0 = arith.constant 0 : i32
    %c0_i32_1 = arith.constant 0 : i32
    %c0_i32_2 = arith.constant 0 : i32
    return %c0_i32, %c0_i32_0, %c0_i32_1 : i32, i32, i32
  }
  func.func @transform_2(%arg0: i32) -> (i32, i32, i32) {
    %c0_i32 = arith.constant 0 : i32
    %c0_i32_0 = arith.constant 0 : i32
    %c0_i32_1 = arith.constant 0 : i32
    %c0_i32_2 = arith.constant 0 : i32
    return %c0_i32, %c0_i32_0, %c0_i32_1 : i32, i32, i32
  }
  func.func @transform_3(%arg0: i32) -> i32 {
    %c0_i32 = arith.constant 0 : i32
    %c0_i32_0 = arith.constant 0 : i32
    return %c0_i32 : i32
  }
  func.func @transform_4(%arg0: i32) -> (i32, i32, i32, i32) {
    %c0_i32 = arith.constant 0 : i32
    %c0_i32_0 = arith.constant 0 : i32
    %c0_i32_1 = arith.constant 0 : i32
    %c0_i32_2 = arith.constant 0 : i32
    return %arg0, %c0_i32, %c0_i32_0, %c0_i32_1 : i32, i32, i32, i32
  }
}

</mosaic_0001>

<bundles_post_ra>
// kernel: tpu_custom_call.1
= control target key start
LH: loop header
LB: loop body
LE: loop exit
PB: predicated region body
PF: predicated region fallthrough
CT: control target
= control target key end

     0   :  { %s10966_s0 = inlined_call_operand.hbm [shape: f32[2,16,16,128], index: 0, kind: input, shape index: {}]   ;;  %s10967_s1 = inlined_call_operand.hbm [shape: bf16[9,128,128], index: 1, kind: input, shape index: {}]   ;;  %s10968_s2 = inlined_call_operand.hbm [shape: bf16[9,128,128], index: 2, kind: input, shape index: {}]   ;;  %s10969_s3 = inlined_call_operand.<no memory space> [shape: f32[1], index: 3, kind: input, shape index: {}]   ;;  %s10970_s4 = inlined_call_operand.hbm [shape: f32[2,16,16,128], index: 4, kind: output, shape index: {}]  }
   0x1   :  { %9 = sst [smem:[#allocation2]] %s10969_s3 }
   0x2   :  { %10 = vsyncpa [#allocation4], 0 }
   0x3   :  { %12 = vsyncpa [#allocation4 + $0x1], 0 }
   0x4   :  { %13 = vsyncpa [#allocation7], 0 }
   0x5   :  { %14 = vsyncpa [#allocation5], 0 }
   0x6   :  { %16 = vsyncpa [#allocation5 + $0x1], 0  ;;  %s8923_s17 = smov 0   ;;  %s8925_s18 = smov 0  }
   0x7   :  { %s8927_s19 = smov 0   ;;  %s8929_s20 = smov 0  }
   0x8 LB: > { %s8944_s3 = sadd.s32 4294967295, %s8883_s20   ;;  %s6502_s21 = sadd.s32 4294967294, %s8883_s20   ;;  %s8883_s20 = sphi %s8929_s20, %s11054_s20   ;;  %s8879_s19 = sphi %s8927_s19, %s11053_s19   ;;  %s8875_s18 = sphi %s8925_s18, %s11052_s18   ;;  %s8871_s17 = sphi %s8923_s17, %s11051_s17  }
   0x9   : > { %p42_p0 = scmp.ne.s32.totalorder %s8875_s18, %s8871_s17  ;;  %p10971_p1 = scmp.eq.s32.totalorder %s8944_s3, 0 }
   0xa   : > { %p135_p3 = scmp.eq.s32.totalorder %s6502_s21, 1  ;;  %p6503_p5 = scmp.ge.s32.totalorder %s8883_s20, 1 }
   0xb   : > { %p8953_p4 = por %p10971_p1, %p42_p0  ;;  %p142_p7 = scmp.lt.s32.totalorder %s8883_s20, 3 }
   0xc   : > { %p8958_p6 = por %p135_p3, %p42_p0  ;;  %s8885_s25 = smov [#allocation6]  }
   0xd   : > { %s10981_s22 = scalar_select %p8953_p4, 1, 0 }
   0xe   : > { %s10982_s23 = scalar_select %p8958_p6, 1, 0 }
   0xf   : > { %p8963_p8 = pnand %p6503_p5, %p142_p7  ;;  %s154_s26 = sshll.u32 %s8885_s25, 4  ;;  %s8967_s26 = int_to_ptr.vmem [resolvable:$true] %s154_s26 }
  0x10   : > { %s8886_s28 = smov [#allocation8]   ;;  %s8727_s6 = scalar_lea.hbm %s10967_s1, 9216 }
  0x11   : > { %p8486_p9 = pneg %p8963_p8  ;;  %s167_s29 = sshll.u32 %s8886_s28, 4  ;;  %s8978_s29 = int_to_ptr.vmem [resolvable:$true] %s167_s29 }
  0x12   : > { %p8728_p12 = scmp.ne.s32.totalorder %s10967_s1, %s8727_s6  ;;  %p8734_p5 = scmp.lt.u32.totalorder %s8727_s6, %s10967_s1 }
  0x13   : > { %p8974_p11 = pnand %p8486_p9, %p10971_p1 }
  0x15   : > { %p8729_p13 = pneg %p8974_p11 }
  0x17   : > { %p8730_p0 = pnand %p8729_p13, %p8728_p12 }
  0x19   : > { %p8731_p3 = pneg %p8730_p0 }
  0x1b   : > { %p8736_p7 = pnand %p8734_p5, %p8731_p3 }
  0x1d   : > { %8739 = shalt.err (!%p8736_p7)
}
  0x1e   : > { %s8740_s11 = scalar_lea.vmem %s8967_s26, 9216  ;;  %p8748_p2 = scmp.lt.s32.totalorder %s8967_s26, %s8967_s26 }
  0x1f   : > { %p8741_p9 = scmp.ne.s32.totalorder %s8967_s26, %s8740_s11  ;;  %p8749_p12 = scmp.lt.s32.totalorder %s8740_s11, %s8740_s11 }
  0x21   : > { %p8743_p10 = pnand %p8741_p9, %p8729_p13  ;;  %p8750_p0 = por %p8749_p12, %p8748_p2 }
  0x23   : > { %p8744_p1 = pneg %p8743_p10 }
  0x25   : > { %p8751_p6 = pnand %p8750_p0, %p8744_p1 }
  0x27   : > { %8754 = shalt.err (!%p8751_p6)
}
  0x28   : > { %s8887_s12 = smov 64   ;;  %s8888_s13 = smov 4  }
  0x29   : > { %8489 = dma.hbm_to_vmem [thread:$0]  (!%p8974_p11), %s10967_s1, 9216, %s8967_s26, [#allocation7], %s8887_s12, %s8887_s12, %s8888_s13  }
  0x2a   : > { %s8755_s25 = scalar_lea.hbm %s10968_s2, 9216 }
  0x2b   : > { %p8756_p2 = scmp.ne.s32.totalorder %s10968_s2, %s8755_s25  ;;  %p8762_p10 = scmp.lt.u32.totalorder %s8755_s25, %s10968_s2 }
  0x2d   : > { %p8758_p1 = pnand %p8756_p2, %p8729_p13 }
  0x2f   : > { %p8759_p6 = pneg %p8758_p1 }
  0x31   : > { %p8764_p3 = pnand %p8762_p10, %p8759_p6 }
  0x33   : > { %8767 = shalt.err (!%p8764_p3)
}
  0x34   : > { %s8768_s26 = scalar_lea.vmem %s8978_s29, 9216  ;;  %p8776_p12 = scmp.lt.s32.totalorder %s8978_s29, %s8978_s29 }
  0x35   : > { %p8769_p5 = scmp.ne.s32.totalorder %s8978_s29, %s8768_s26  ;;  %p8777_p0 = scmp.lt.s32.totalorder %s8768_s26, %s8768_s26 }
  0x37   : > { %p8771_p7 = pnand %p8769_p5, %p8729_p13  ;;  %p8778_p2 = por %p8777_p0, %p8776_p12 }
  0x39   : > { %p8772_p9 = pneg %p8771_p7 }
  0x3b   : > { %p8779_p1 = pnand %p8778_p2, %p8772_p9 }
  0x3d   : > { %8782 = shalt.err (!%p8779_p1)
}
  0x3e   : > { %8492 = dma.hbm_to_vmem [thread:$0]  (!%p8974_p11), %s10968_s2, 9216, %s8978_s29, [#allocation7], %s8887_s12, %s8887_s12, %s8888_s13  }
  0x3f   : > { %s9033_s9 = sadd.s32 1, %s8883_s20   ;;  %s29_s27 = sadd.s32 1, %s8879_s19 }
  0x40   : > { %s26_s10 = ssub.s32 %s8883_s20, %s9033_s9  ;;  %p36_p13 = scmp.ne.s32.totalorder %s8879_s19, %s8875_s18 }
  0x41   : > { %p27_p6 = scmp.eq.s32.totalorder %s26_s10, 0  ;;  %p37_p10 = scmp.eq.s32.totalorder %s8883_s20, 0 }
  0x42   : > { %p10985_p3 = scmp.eq.s32.totalorder %s8944_s3, 1  ;;  %p8503_p7 = scmp.lt.s32.totalorder %s8883_s20, 2 }
  0x43   : > { %s9049_s14 = scalar_select %p27_p6, %s8879_s19, %s29_s27  }
  0x44   : > { %p9043_p5 = por %p10985_p3, %p36_p13  ;;  %p38_p9 = por %p37_p10, %p36_p13 }
  0x45   : > { %s184_s15 = sand.u32 1, %s8879_s19   ;;  %s6664_s29 = sshll.u32 %s8883_s20, 12 }
  0x46   : > { %s10986_s11 = scalar_select %p9043_p5, 1, 0 }
  0x47   : > { %s6507_s16 = sshll.u32 %s184_s15, 8  ;;  %s9056_s21 = scalar_lea.hbm %s10966_s0, %s6664_s29 }
  0x48   : > { %s188_s25 = scalar_lea.vmem [#allocation3], %s6507_s16  ;;  %p9060_p11 = pnand %p8503_p7, %p38_p9 }
  0x49   : > { %s195_s28 = sshll.u32 %s188_s25, 4  ;;  %s9064_s5 = scalar_lea.sflag [#allocation4], %s184_s15  ;;  %s9058_s28 = int_to_ptr.vmem [resolvable:$true] %s195_s28 }
  0x4a   : > { %s8783_s6 = scalar_lea.hbm %s9056_s21, 4096  ;;  %p8785_p0 = pneg %p9060_p11 }
  0x4b   : > { %p8784_p12 = scmp.ne.s32.totalorder %s9056_s21, %s8783_s6  ;;  %s8788_s8 = scalar_lea.hbm %s10966_s0, 8192 }
  0x4c   : > { %p8789_p13 = scmp.lt.u32.totalorder %s9056_s21, %s10966_s0  ;;  %p8790_p6 = scmp.lt.u32.totalorder %s8788_s8, %s8783_s6 }
  0x4d   : > { %p8786_p2 = pnand %p8785_p0, %p8784_p12  ;;  %p8792_p3 = scmp.lt.u32.totalorder %s8783_s6, %s9056_s21 }
  0x4e   : > { %p8791_p10 = por %p8790_p6, %p8789_p13 }
  0x4f   : > { %p8787_p1 = pneg %p8786_p2 }
  0x50   : > { %p8793_p7 = por %p8792_p3, %p8791_p10 }
  0x52   : > { %p8794_p9 = pnand %p8793_p7, %p8787_p1 }
  0x54   : > { %8797 = shalt.err (!%p8794_p9)
}
  0x55   : > { %s8798_s15 = scalar_lea.vmem %s9058_s28, 4096  ;;  %s8889_s16 = smov [#allocation3]  }
  0x56   : > { %p8799_p12 = scmp.ne.s32.totalorder %s9058_s28, %s8798_s15  ;;  %s8803_s29 = sshll.u32 %s8889_s16, 4  ;;  %s8804_s29 = int_to_ptr.vmem [resolvable:$false] %s8803_s29 }
  0x57   : > { %s8805_s12 = scalar_lea.vmem %s8804_s29, 8192  ;;  %p8806_p4 = scmp.lt.s32.totalorder %s9058_s28, %s8804_s29 }
  0x58   : > { %p8801_p2 = pnand %p8799_p12, %p8785_p0  ;;  %p8807_p13 = scmp.lt.s32.totalorder %s8805_s12, %s8798_s15 }
  0x5a   : > { %p8802_p5 = pneg %p8801_p2  ;;  %p8808_p6 = por %p8807_p13, %p8806_p4 }
  0x5c   : > { %p8809_p10 = pnand %p8808_p6, %p8802_p5 }
  0x5e   : > { %8812 = shalt.err (!%p8809_p10)
}
  0x5f   : > { %s8890_s13 = smov 128   ;;  %s8891_s25 = smov 8  }
  0x60   : > { %8496 = dma.hbm_to_vmem [thread:$0]  (!%p9060_p11), %s9056_s21, 4096, %s9058_s28, %s9064_s5, %s8890_s13, %s8890_s13, %s8891_s25  }
  0x61   : > { %207 = sbr.rel (%p8963_p8) target bundleno = 2036 (0x7f4), region = 36 }
  0x68   : > { %s9095_s6 = sand.u32 1, %s8875_s18   ;;  %p10988_p4 = scmp.ne.s32.totalorder %s10981_s22, 0 }
  0x69   : > { %s6511_s26 = sshll.u32 %s9095_s6, 8  ;;  %s210_s7 = scalar_lea.sflag [#allocation4], %s9095_s6 }
  0x6a   : > { %s9101_s8 = scalar_lea.vmem [#allocation3], %s6511_s26 }
  0x6b   : > { %8858 = dma.done.wait (%p10988_p4), %s210_s7, 4096  }
  0x6c   : > { %8860 = vsyncadd (%p10988_p4), %s210_s7, 4294963200  ;;  %p10989_p5 = scmp.eq.s32.totalorder %s8944_s3, 0 }
  0x6e   : > { %8862 = dma.done.wait (%p10989_p5), [#allocation7], 18432   ;;  %p10990_p8 = pmov %p10989_p5 }
  0x6f   : > { %v8547_v0 = vld [vmem:[#allocation6 + $0x40] sm:$0xff]   ;;  %v8548_v1 = vld [vmem:[#allocation6 + $0x48] sm:$0xff]   ;;  %v8549_v2 = vld [vmem:[#allocation6 + $0x50] sm:$0xff]   ;;  %vm487_vm0 = vcmask 1040384   ;;  %vm488_vm1 = vsmask.f32 256 }
  0x70   : > { %8864 = vsyncadd (%p10990_p8), [#allocation7], 4294948864  ;;  %7098 = vmatprep.subr.bf16.mxu0 %v8547_v0  ;;  %v8550_v3 = vld [vmem:[#allocation6 + $0x58] sm:$0xff]   ;;  %v249_v4 = vld [vmem:[%s9101_s8 + $0x10] sm:$0xff]  ;;  %vm10975_vm3 = vsmask.f32 7424 }
  0x71   : > { %7099 = vmatpush3.bf16.msra.mxu0 %v8547_v0  ;;  %v250_v5 = vld [vmem:[%s9101_s8 + $0x18] sm:$0xff]  ;;  %v247_v6 = vld [vmem:[%s9101_s8] sm:$0xff]  ;;  %v248_v8 = vld [vmem:[%s9101_s8 + $0x8] sm:$0xff]  ;;  %vm10974_vm4 = vcmask 1046528   ;;  %s3259_s22 = sld [smem:[#allocation2]]  ;;  %s10793_s24 = scalar_lea.vmem [#allocation9], %s6511_s26 }
  0x72   : > { %7100 = vmatprep.subr.bf16.mxu0 %v8548_v1  ;;  %v280_v7 = vpack.c.bf16 %v250_v5, %v249_v4  ;;  %v279_v9 = vpack.c.bf16 %v248_v8, %v247_v6  ;;  %v251_v10 = vld [vmem:[%s9101_s8 + $0x20] sm:$0xff]  ;;  %v252_v11 = vld [vmem:[%s9101_s8 + $0x28] sm:$0xff]  ;;  %v253_v18 = vld [vmem:[%s9101_s8 + $0x30] sm:$0xff]  ;;  %s6665_s21 = sshll.u32 %s8944_s3, 12  ;;  %s6410_s28 = sshll.u32 %s10793_s24, 4  ;;  %s10902_s28 = int_to_ptr.vmem [resolvable:$true] %s6410_s28 }
  0x73   : > { %v281_v14 = vpack.c.bf16 %v252_v11, %v251_v10  ;;  %v8551_v15 = vld [vmem:[#allocation6 + $0x60] sm:$0xff]   ;;  %v254_v19 = vld [vmem:[%s9101_s8 + $0x38] sm:$0xff]  ;;  %vm9121_vm2 = vmand %vm487_vm0, %vm488_vm1  ;;  %s10898_s27 = scalar_lea.hbm %s10970_s4, %s6665_s21  ;;  %s6397_s3 = scalar_lea.sflag [#allocation5], %s9095_s6 }
  0x74   : > { %v296_v12 = vshrl.u32 %v280_v7, 16  ;;  %v360_v13 = vshll.u32 %v280_v7, 16  ;;  %v299_v16 = vshrl.u32 %v279_v9, 16  ;;  %v364_v17 = vshll.u32 %v279_v9, 16  ;;  %v255_v31 = vld [vmem:[%s9101_s8 + $0x40] sm:$0xff]  ;;  %v256_v32 = vld [vmem:[%s9101_s8 + $0x48] sm:$0xff] }
  0x75   : > { %7101 = vmatpush3.bf16.msra.mxu0 %v8548_v1  ;;  %v302_v22 = vshrl.u32 %v281_v14, 16  ;;  %v368_v23 = vshll.u32 %v281_v14, 16  ;;  %v282_v27 = vpack.c.bf16 %v254_v19, %v253_v18  ;;  %v8552_v33 = vld [vmem:[#allocation6 + $0x68] sm:$0xff]   ;;  %v9146_v44 = vpack.c.bf16 %v256_v32, %v255_v31  ;;  %v8553_v46 = vld [vmem:[#allocation6 + $0x70] sm:$0xff]   ;;  %v258_v59 = vld [vmem:[%s9101_s8 + $0x58] sm:$0xff]  ;;  %s8813_s10 = scalar_lea.vmem %s10902_s28, 4096 }
  0x76   : > { %7102 = vmatprep.subr.bf16.mxu0 %v8549_v2  ;;  %v359_v20 = vrot.slane %v296_v12, 7  ;;  %v455_v21 = vrot.slane %v360_v13, 7  ;;  %v363_v25 = vrot.slane %v299_v16, 7  ;;  %v456_v26 = vrot.slane %v364_v17, 7  ;;  %v257_v54 = vld [vmem:[%s9101_s8 + $0x50] sm:$0xff]  ;;  %v8554_v63 = vld [vmem:[#allocation6 + $0x78] sm:$0xff]   ;;  %p8814_p11 = scmp.ne.s32.totalorder %s10902_s28, %s8813_s10 }
  0x77   : > { %v367_v30 = vrot.slane %v302_v22, 7  ;;  %v457_v36 = vrot.slane %v368_v23, 7  ;;  %v305_v40 = vshrl.u32 %v282_v27, 16  ;;  %v372_v53 = vshll.u32 %v282_v27, 16  ;;  %v259_v4 = vld [vmem:[%s9101_s8 + $0x60] sm:$0xff]  ;;  %v260_v8 = vld [vmem:[%s9101_s8 + $0x68] sm:$0xff] }
  0x78   : > { %v362_v28 = vor.u32 %v360_v13, %v359_v20  ;;  %v9127_v29 = vsel %vm9121_vm2, %v359_v20, %v455_v21  ;;  %v366_v35 = vor.u32 %v364_v17, %v363_v25  ;;  %v9138_v38 = vsel %vm9121_vm2, %v363_v25, %v456_v26  ;;  %v261_v13 = vld [vmem:[%s9101_s8 + $0x70] sm:$0xff]  ;;  %v262_v14 = vld [vmem:[%s9101_s8 + $0x78] sm:$0xff]  ;;  %v8555_v19 = vld [vmem:[#allocation6] sm:$0xff]   ;;  %p11048_p0 = scmp.ne.s32.totalorder %s10986_s11, 0  ;;  %s8892_s15 = smov [#allocation9]  }
  0x79   : > { %7103 = vmatpush3.bf16.msra.mxu0 %v8549_v2  ;;  %v547_v34 = vshll.u32 %v9127_v29, 16  ;;  %v370_v39 = vor.u32 %v368_v23, %v367_v30  ;;  %v559_v49 = vshll.u32 %v9138_v38, 16  ;;  %v9156_v51 = vsel %vm9121_vm2, %v367_v30, %v457_v36  ;;  %v8556_v30 = vld [vmem:[#allocation6 + $0x8] sm:$0xff]   ;;  %v8669_v24 = vld [vmem:[#allocation8 + $0x190] sm:$0xff]   ;;  %s8817_s16 = sshll.u32 %s8892_s15, 4  ;;  %s8818_s16 = int_to_ptr.vmem [resolvable:$false] %s8817_s16 }
  0x7a   : > { %7104 = vmatprep.subr.bf16.mxu0 %v8550_v3  ;;  %v9134_v37 = vsel %vm9121_vm2, %v296_v12, %v362_v28  ;;  %v9144_v43 = vsel %vm9121_vm2, %v299_v16, %v366_v35  ;;  %v371_v52 = vrot.slane %v305_v40, 7  ;;  %v308_v58 = vshrl.u32 %v9146_v44, 16  ;;  %p8815_p1 = pnand %p8814_p11, %p11048_p0  ;;  %s8819_s29 = scalar_lea.vmem %s8818_s16, 8192 }
  0x7b   : > { %v540_v41 = vshrl.u32 %v9134_v37, 16  ;;  %v542_v42 = vshll.u32 %v9134_v37, 16  ;;  %v554_v45 = vshll.u32 %v9144_v43, 16  ;;  %v549_v48 = vrot.slane %v547_v34, 1  ;;  %p8820_p7 = scmp.lt.s32.totalorder %s10902_s28, %s8818_s16  ;;  %p8821_p9 = scmp.lt.s32.totalorder %s8819_s29, %s8813_s10 }
  0x7c   : > { %v9152_v50 = vsel %vm9121_vm2, %v302_v22, %v370_v39  ;;  %v552_v56 = vshrl.u32 %v9144_v43, 16  ;;  %v374_v60 = vor.u32 %v372_v53, %v371_v52  ;;  %v458_v61 = vrot.slane %v372_v53, 7  ;;  %v265_v53 = vld [vmem:[%s9101_s8 + $0x90] sm:$0xff]  ;;  %p8816_p3 = pneg %p8815_p1 }
  0x7d   : > { %7105 = vmatpush3.bf16.msra.mxu0 %v8550_v3  ;;  %v544_v47 = vrot.slane %v542_v42, 1  ;;  %v556_v57 = vrot.slane %v554_v45, 1  ;;  %v376_v62 = vshll.u32 %v9146_v44, 16  ;;  %v566_v1 = vshll.u32 %v9152_v50, 16  ;;  %v263_v45 = vld [vmem:[%s9101_s8 + $0x80] sm:$0xff]  ;;  %p8822_p12 = por %p8821_p9, %p8820_p7 }
  0x7e   : > { %7106 = vmatprep.subr.bf16.mxu0 %v8551_v15  ;;  %v571_v2 = vshll.u32 %v9156_v51, 16  ;;  %v375_v3 = vrot.slane %v308_v58, 7  ;;  %v9172_v5 = vsel %vm9121_vm2, %v305_v40, %v374_v60  ;;  %v9176_v6 = vsel %vm9121_vm2, %v371_v52, %v458_v61 }
  0x7f   : > { %v545_v55 = vor.u32 %v544_v47, %v540_v41  ;;  %v284_v7 = vpack.c.bf16 %v258_v59, %v257_v54  ;;  %v557_v9 = vor.u32 %v556_v57, %v552_v56  ;;  %v561_v10 = vrot.slane %v559_v49, 1  ;;  %v266_v59 = vld [vmem:[%s9101_s8 + $0x98] sm:$0xff]  ;;  %p8823_p2 = pnand %p8822_p12, %p8816_p3 }
  0x80   : > { %v578_v11 = vshll.u32 %v9172_v5, 16  ;;  %v459_v12 = vrot.slane %v376_v62, 7  ;;  %v378_v16 = vor.u32 %v376_v62, %v375_v3  ;;  %v568_v20 = vrot.slane %v566_v1, 1 }
  0x81   : > { %7107 = vmatpush3.bf16.msra.mxu0 %v8551_v15  ;;  %v9164_v0 = vsel %vm10975_vm3, %v545_v55, %v549_v48  ;;  %v564_v15 = vshrl.u32 %v9152_v50, 16  ;;  %v311_v17 = vshrl.u32 %v284_v7, 16  ;;  %v380_v18 = vshll.u32 %v284_v7, 16 }
  0x82   : > { %7108 = vmatprep.subr.bf16.mxu0 %v8552_v33  ;;  %7114 = vmatprep.mubr.bf16.mxu0 %v9164_v0  ;;  %v573_v21 = vrot.slane %v571_v2, 1  ;;  %v583_v22 = vshll.u32 %v9176_v6, 16  ;;  %v285_v23 = vpack.c.bf16 %v260_v8, %v259_v4  ;;  %v286_v27 = vpack.c.bf16 %v262_v14, %v261_v13  ;;  %v8558_v13 = vld [vmem:[#allocation6 + $0x18] sm:$0xff]  }
  0x83   : > { %v379_v25 = vrot.slane %v311_v17, 7  ;;  %v460_v26 = vrot.slane %v380_v18, 7  ;;  %v9185_v28 = vsel %vm10975_vm3, %v557_v9, %v561_v10  ;;  %v576_v31 = vshrl.u32 %v9172_v5, 16 }
  0x84   : > { %v580_v32 = vrot.slane %v578_v11, 1  ;;  %v9194_v34 = vsel %vm9121_vm2, %v308_v58, %v378_v16  ;;  %v314_v36 = vshrl.u32 %v285_v23, 16  ;;  %v384_v39 = vshll.u32 %v285_v23, 16  ;;  %v8557_v58 = vld [vmem:[#allocation6 + $0x10] sm:$0xff]  }
  0x85   : > { %7109 = vmatpush3.bf16.msra.mxu0 %v8552_v33  ;;  %v9190_v33 = vsel %vm9121_vm2, %v375_v3, %v459_v12  ;;  %v382_v35 = vor.u32 %v380_v18, %v379_v25  ;;  %v569_v40 = vor.u32 %v568_v20, %v564_v15  ;;  %v585_v41 = vrot.slane %v583_v22, 1  ;;  %v267_v15 = vld [vmem:[%s9101_s8 + $0xa0] sm:$0xff]  ;;  %v268_v20 = vld [vmem:[%s9101_s8 + $0xa8] sm:$0xff] }
  0x86   : > { %7110 = vmatprep.subr.bf16.mxu0 %v8553_v46  ;;  %v9198_v42 = vsel %vm9121_vm2, %v379_v25, %v460_v26  ;;  %v317_v44 = vshrl.u32 %v286_v27, 16  ;;  %v383_v48 = vrot.slane %v314_v36, 7  ;;  %v461_v49 = vrot.slane %v384_v39, 7  ;;  %v269_v26 = vld [vmem:[%s9101_s8 + $0xb0] sm:$0xff] }
  0x87   : > { %v9204_v47 = vsel %vm9121_vm2, %v311_v17, %v382_v35  ;;  %v388_v52 = vshll.u32 %v286_v27, 16  ;;  %v581_v54 = vor.u32 %v580_v32, %v576_v31  ;;  %v588_v55 = vshrl.u32 %v9194_v34, 16  ;;  %v270_v27 = vld [vmem:[%s9101_s8 + $0xb8] sm:$0xff] }
  0x88   : > { %v590_v56 = vshll.u32 %v9194_v34, 16  ;;  %v595_v57 = vshll.u32 %v9190_v33, 16  ;;  %v386_v60 = vor.u32 %v384_v39, %v383_v48  ;;  %v387_v61 = vrot.slane %v317_v44, 7  ;;  %v8559_v39 = vld [vmem:[#allocation6 + $0x20] sm:$0xff]  }
  0x89   : > { %7111 = vmatpush3.bf16.msra.mxu0 %v8553_v46  ;;  %v264_v46 = vld [vmem:[%s9101_s8 + $0x88] sm:$0xff]  ;;  %v462_v62 = vrot.slane %v388_v52, 7  ;;  %v602_v1 = vshll.u32 %v9204_v47, 16  ;;  %v607_v2 = vshll.u32 %v9198_v42, 16  ;;  %v9224_v7 = vsel %vm9121_vm2, %v383_v48, %v461_v49 }
  0x8a   : > { %7112 = vmatprep.subr.bf16.mxu0 %v8554_v63  ;;  %v287_v3 = vpack.c.bf16 %v264_v46, %v263_v45  ;;  %v9220_v4 = vsel %vm9121_vm2, %v314_v36, %v386_v60  ;;  %v390_v8 = vor.u32 %v388_v52, %v387_v61  ;;  %v288_v9 = vpack.c.bf16 %v266_v59, %v265_v53 }
  0x8b   : > { %v9227_v10 = vsel %vm10975_vm3, %v581_v54, %v585_v41  ;;  %v592_v11 = vrot.slane %v590_v56, 1  ;;  %v597_v12 = vrot.slane %v595_v57, 1  ;;  %v9231_v14 = vsel %vm9121_vm2, %v387_v61, %v462_v62  ;;  %v8560_v62 = vld [vmem:[#allocation6 + $0x28] sm:$0xff]  }
  0x8c   : > { %v614_v16 = vshll.u32 %v9220_v4, 16  ;;  %v9237_v17 = vsel %vm9121_vm2, %v317_v44, %v390_v8  ;;  %v320_v18 = vshrl.u32 %v287_v3, 16  ;;  %v604_v22 = vrot.slane %v602_v1, 1 }
  0x8d   : > { %7113 = vmatpush3.bf16.msra.mxu0 %v8554_v63  ;;  %v9214_v63 = vsel %vm10975_vm3, %v569_v40, %v573_v21  ;;  %v600_v21 = vshrl.u32 %v9204_v47, 16  ;;  %v609_v23 = vrot.slane %v607_v2, 1  ;;  %v619_v25 = vshll.u32 %v9224_v7, 16 }
  0x8e   : > { %7146 = vmatprep.subr.bf16.mxu0 %v8555_v19  ;;  %v626_v31 = vshll.u32 %v9237_v17, 16  ;;  %v391_v32 = vrot.slane %v320_v18, 7  ;;  %v323_v35 = vshrl.u32 %v288_v9, 16  ;;  %v631_v36 = vshll.u32 %v9231_v14, 16 }
  0x8f   : > { %v396_v40 = vshll.u32 %v288_v9, 16  ;;  %v289_v41 = vpack.c.bf16 %v268_v20, %v267_v15  ;;  %v593_v44 = vor.u32 %v592_v11, %v588_v55  ;;  %v616_v45 = vrot.slane %v614_v16, 1 }
  0x90   : > { %7115 = vmatmul.mubr.bf16.vlgmr.msra.gmra.mrb[0].mxu0 %v9185_v28  ;;  %v395_v48 = vrot.slane %v323_v35, 7  ;;  %v605_v49 = vor.u32 %v604_v22, %v600_v21  ;;  %v624_v52 = vshrl.u32 %v9237_v17, 16  ;;  %v628_v54 = vrot.slane %v626_v31, 1  ;;  %v8561_v21 = vld [vmem:[#allocation6 + $0x30] sm:$0xff]  }
  0x91   : > { %7147 = vmatpush3.bf16.msra.mxu0 %v8555_v19  ;;  %7118 = vmatprep.mubr.bf16.mxu0 %v9164_v0  ;;  %v392_v19 = vshll.u32 %v287_v3, 16  ;;  %v326_v57 = vshrl.u32 %v289_v41, 16  ;;  %v290_v59 = vpack.c.bf16 %v270_v27, %v269_v26  ;;  %v621_v60 = vrot.slane %v619_v25, 1  ;;  %v273_v22 = vld [vmem:[%s9101_s8 + $0xd0] sm:$0xff]  ;;  %v275_v25 = vld [vmem:[%s9101_s8 + $0xe0] sm:$0xff] }
  0x92   : > { %7148 = vmatprep.subr.bf16.mxu0 %v8556_v30  ;;  %v398_v56 = vor.u32 %v396_v40, %v395_v48  ;;  %v464_v61 = vrot.slane %v396_v40, 7  ;;  %v9251_v55 = vsel %vm10975_vm3, %v593_v44, %v597_v12  ;;  %v400_v2 = vshll.u32 %v289_v41, 16  ;;  %v271_v12 = vld [vmem:[%s9101_s8 + $0xc0] sm:$0xff] }
  0x93   : > { %v394_v46 = vor.u32 %v392_v19, %v391_v32  ;;  %v463_v53 = vrot.slane %v392_v19, 7  ;;  %v399_v1 = vrot.slane %v326_v57, 7  ;;  %v9258_v3 = vsel %vm10975_vm3, %v605_v49, %v609_v23  ;;  %v274_v23 = vld [vmem:[%s9101_s8 + $0xd8] sm:$0xff] }
  0x94   : > { %v633_v9 = vrot.slane %v631_v36, 1  ;;  %v629_v15 = vor.u32 %v628_v54, %v624_v52  ;;  %v9268_v16 = vsel %vm9121_vm2, %v323_v35, %v398_v56  ;;  %v404_v19 = vshll.u32 %v290_v59, 16 }
  0x95   : > { %7149 = vmatpush3.bf16.msra.mxu0 %v8556_v30  ;;  %v612_v30 = vshrl.u32 %v9220_v4, 16  ;;  %v9262_v11 = vsel %vm9121_vm2, %v391_v32, %v463_v53  ;;  %v9278_v26 = vsel %vm9121_vm2, %v395_v48, %v464_v61  ;;  %v402_v27 = vor.u32 %v400_v2, %v399_v1  ;;  %v276_v32 = vld [vmem:[%s9101_s8 + $0xe8] sm:$0xff] }
  0x96   : > { %7150 = vmatprep.subr.bf16.mxu0 %v8557_v58  ;;  %v643_v36 = vshll.u32 %v9262_v11, 16  ;;  %v650_v40 = vshll.u32 %v9268_v16, 16  ;;  %v9287_v41 = vsel %vm10975_vm3, %v629_v15, %v633_v9  ;;  %v648_v49 = vshrl.u32 %v9268_v16, 16  ;;  %v8562_v9 = vld [vmem:[#allocation6 + $0x38] sm:$0xff]  }
  0x97   : > { %v617_v8 = vor.u32 %v616_v45, %v612_v30  ;;  %v655_v52 = vshll.u32 %v9278_v26, 16  ;;  %v9294_v53 = vsel %vm9121_vm2, %v326_v57, %v402_v27  ;;  %v466_v54 = vrot.slane %v404_v19, 7 }
  0x98   : > { %7119 = vmatmul.mubr.bf16.gmra.mrb[4].mxu0 %v9214_v63  ;;  %v292_v56 = vpack.c.bf16 %v274_v23, %v273_v22  ;;  %v662_v15 = vshll.u32 %v9294_v53, 16 }
  0x99   : > { %7122 = vmatprep.mubr.bf16.mxu0 %v9227_v10  ;;  %7151 = vmatpush3.bf16.msra.mxu0 %v8557_v58  ;;  %v9255_v58 = vsel %vm9121_vm2, %v320_v18, %v394_v46  ;;  %v329_v18 = vshrl.u32 %v290_v59, 16  ;;  %v9282_v35 = vsel %vm10975_vm3, %v617_v8, %v621_v60  ;;  %v293_v59 = vpack.c.bf16 %v276_v32, %v275_v25  ;;  %v8563_v32 = vld [vmem:[#allocation6 + $0x80] sm:$0xff]  }
  0x9a   : > { %7152 = vmatprep.subr.bf16.mxu0 %v8558_v13  ;;  %v638_v20 = vshll.u32 %v9255_v58, 16  ;;  %v636_v46 = vshrl.u32 %v9255_v58, 16  ;;  %v652_v60 = vrot.slane %v650_v40, 1  ;;  %v412_v57 = vshll.u32 %v292_v56, 16 }
  0x9b   : > { %v403_v30 = vrot.slane %v329_v18, 7  ;;  %v657_v25 = vrot.slane %v655_v52, 1 }
  0x9c   : > { %v640_v48 = vrot.slane %v638_v20, 1  ;;  %v653_v23 = vor.u32 %v652_v60, %v648_v49 }
  0x9d   : > { %7153 = vmatpush3.bf16.msra.mxu0 %v8558_v13  ;;  %v272_v13 = vld [vmem:[%s9101_s8 + $0xc8] sm:$0xff]  ;;  %v406_v44 = vor.u32 %v404_v19, %v403_v30  ;;  %v338_v19 = vshrl.u32 %v293_v59, 16  ;;  %v9309_v20 = vsel %vm9121_vm2, %v403_v30, %v466_v54 }
  0x9e   : > { %7154 = vmatprep.subr.bf16.mxu0 %v8559_v39  ;;  %v291_v31 = vpack.c.bf16 %v272_v13, %v271_v12  ;;  %v335_v13 = vshrl.u32 %v292_v56, 16  ;;  %v9320_v54 = vsel %vm10975_vm3, %v653_v23, %v657_v25 }
  0x9f   : > { %v9298_v61 = vsel %vm9121_vm2, %v329_v18, %v406_v44  ;;  %v641_v18 = vor.u32 %v640_v48, %v636_v46  ;;  %v415_v40 = vrot.slane %v338_v19, 7  ;;  %v660_v44 = vshrl.u32 %v9294_v53, 16 }
  0xa0   : > { %7123 = vmatmul.mubr.bf16.gmra.mrb[8].mxu0 %v9251_v55  ;;  %v332_v45 = vshrl.u32 %v291_v31, 16  ;;  %v408_v8 = vshll.u32 %v291_v31, 16  ;;  %v674_v22 = vshll.u32 %v9298_v61, 16  ;;  %v664_v46 = vrot.slane %v662_v15, 1 }
  0xa1   : > { %7126 = vmatprep.mubr.bf16.mxu0 %v9258_v3  ;;  %7155 = vmatpush3.bf16.msra.mxu0 %v8559_v39  ;;  %v465_v39 = vrot.slane %v400_v2, 7  ;;  %v672_v30 = vshrl.u32 %v9298_v61, 16  ;;  %v679_v48 = vshll.u32 %v9309_v20, 16 }
  0xa2   : > { %7156 = vmatprep.subr.bf16.mxu0 %v8560_v62  ;;  %v407_v2 = vrot.slane %v332_v45, 7  ;;  %v676_v49 = vrot.slane %v674_v22, 1  ;;  %v467_v52 = vrot.slane %v408_v8, 7 }
  0xa3   : > { %v9302_v12 = vsel %vm9121_vm2, %v399_v1, %v465_v39  ;;  %v411_v1 = vrot.slane %v335_v13, 7  ;;  %v416_v39 = vshll.u32 %v293_v59, 16  ;;  %v468_v59 = vrot.slane %v412_v57, 7 }
  0xa4   : > { %v667_v27 = vshll.u32 %v9302_v12, 16  ;;  %v410_v31 = vor.u32 %v408_v8, %v407_v2  ;;  %v677_v8 = vor.u32 %v676_v49, %v672_v30  ;;  %v9334_v22 = vsel %vm9121_vm2, %v407_v2, %v467_v52 }
  0xa5   : > { %7157 = vmatpush3.bf16.msra.mxu0 %v8560_v62  ;;  %v645_v62 = vrot.slane %v643_v36, 1  ;;  %v414_v36 = vor.u32 %v412_v57, %v411_v1  ;;  %v418_v15 = vor.u32 %v416_v39, %v415_v40  ;;  %v9339_v57 = vsel %vm9121_vm2, %v411_v1, %v468_v59 }
  0xa6   : > { %7158 = vmatprep.subr.bf16.mxu0 %v8561_v21  ;;  %v9324_v56 = vsel %vm9121_vm2, %v332_v45, %v410_v31  ;;  %v469_v23 = vrot.slane %v416_v39, 7  ;;  %v691_v31 = vshll.u32 %v9334_v22, 16  ;;  %v703_v1 = vshll.u32 %v9339_v57, 16 }
  0xa7   : > { %v9328_v60 = vsel %vm9121_vm2, %v335_v13, %v414_v36  ;;  %v686_v45 = vshll.u32 %v9324_v56, 16  ;;  %v9344_v25 = vsel %vm9121_vm2, %v338_v19, %v418_v15 }
  0xa8   : > { %7127 = vmatmul.mubr.bf16.gmra.mrb[12].mxu0 %v9282_v35  ;;  %v698_v13 = vshll.u32 %v9328_v60, 16  ;;  %v9358_v19 = vsel %vm9121_vm2, %v415_v40, %v469_v23  ;;  %v710_v30 = vshll.u32 %v9344_v25, 16  ;;  %v693_v49 = vrot.slane %v691_v31, 1  ;;  %v8564_v23 = vld [vmem:[#allocation6 + $0x88] sm:$0xff]   ;;  %v8566_v31 = vld [vmem:[#allocation6 + $0x98] sm:$0xff]  }
  0xa9   : > { %7130 = vmatprep.mubr.bf16.mxu0 %v9287_v41  ;;  %7159 = vmatpush3.bf16.msra.mxu0 %v8561_v21  ;;  %v9317_v21 = vsel %vm10975_vm3, %v641_v18, %v645_v62  ;;  %v665_v62 = vor.u32 %v664_v46, %v660_v44  ;;  %v669_v18 = vrot.slane %v667_v27, 1  ;;  %v684_v27 = vshrl.u32 %v9324_v56, 16 }
  0xaa   : > { %7160 = vmatprep.subr.bf16.mxu0 %v8562_v9  ;;  %v688_v44 = vrot.slane %v686_v45, 1  ;;  %v696_v46 = vshrl.u32 %v9328_v60, 16  ;;  %v700_v39 = vrot.slane %v698_v13, 1  ;;  %v705_v52 = vrot.slane %v703_v1, 1  ;;  %v8568_v1 = vld [vmem:[#allocation6 + $0xa8] sm:$0xff]  }
  0xab   : > { %v9349_v2 = vsel %vm10975_vm3, %v665_v62, %v669_v18  ;;  %v715_v59 = vshll.u32 %v9358_v19, 16  ;;  %v708_v62 = vshrl.u32 %v9344_v25, 16  ;;  %v712_v18 = vrot.slane %v710_v30, 1 }
  0xac   : > { %v701_v15 = vor.u32 %v700_v39, %v696_v46  ;;  %v8569_v46 = vld [vmem:[#allocation6 + $0xb0] sm:$0xff]   ;;  %v8571_v39 = vld [vmem:[#allocation6 + $0xc0] sm:$0xff]   ;;  %v1200_v30 = vrot.slane %v9134_v37, 1 }
  0xad   : > { %7161 = vmatpush3.bf16.msra.mxu0 %v8562_v9  ;;  %v681_v9 = vrot.slane %v679_v48, 1  ;;  %v689_v48 = vor.u32 %v688_v44, %v684_v27  ;;  %v717_v45 = vrot.slane %v715_v59, 1  ;;  %v8565_v27 = vld [vmem:[#allocation6 + $0x90] sm:$0xff]   ;;  %v8567_v44 = vld [vmem:[#allocation6 + $0xa0] sm:$0xff]   ;;  %v1203_v59 = vrot.slane %v9144_v43, 1 }
  0xae   : > { %7194 = vmatprep.subr.bf16.mxu0 %v8563_v32  ;;  %v9369_v40 = vsel %vm10975_vm3, %v701_v15, %v705_v52  ;;  %v1204_v52 = vrot.slane %v9138_v38, 1  ;;  %v1209_v38 = vrot.slane %v9172_v5, 1 }
  0xaf   : > { %v9352_v36 = vsel %vm10975_vm3, %v677_v8, %v681_v9  ;;  %v9366_v8 = vsel %vm10975_vm3, %v689_v48, %v693_v49  ;;  %v713_v9 = vor.u32 %v712_v18, %v708_v62  ;;  %v1201_v48 = vrot.slane %v9127_v29, 1  ;;  %v8572_v62 = vld [vmem:[#allocation6 + $0xc8] sm:$0xff]  }
  0xb0   : > { %7131 = vmatmul.mubr.bf16.gmra.mrb[16].mxu0 %v9317_v21  ;;  %v9402_v15 = vsel %vm10974_vm4, %v1203_v59, %v1204_v52  ;;  %v1206_v29 = vrot.slane %v9152_v50, 1  ;;  %v1207_v18 = vrot.slane %v9156_v51, 1  ;;  %v1212_v51 = vrot.slane %v9194_v34, 1  ;;  %v8577_v59 = vld [vmem:[#allocation6 + $0xf0] sm:$0xff]  }
  0xb1   : > { %7134 = vmatprep.mubr.bf16.mxu0 %v9320_v54  ;;  %v9374_v13 = vsel %vm10975_vm3, %v713_v9, %v717_v45  ;;  %v9395_v49 = vsel %vm10974_vm4, %v1200_v30, %v1201_v48  ;;  %v1210_v9 = vrot.slane %v9176_v6, 1  ;;  %v8573_v45 = vld [vmem:[#allocation6 + $0xd0] sm:$0xff]   ;;  %v1215_v6 = vrot.slane %v9204_v47, 1  ;;  %v8576_v30 = vld [vmem:[#allocation6 + $0xe8] sm:$0xff]  }
  0xb2   : > { %v1219_v48 = vrot.slane %v9224_v7, 1  ;;  %v1222_v52 = vrot.slane %v9231_v14, 1  ;;  %v1224_v7 = vrot.slane %v9255_v58, 1  ;;  %v1227_v14 = vrot.slane %v9268_v16, 1 }
  0xb8   : > { %7135 = vmatmul.mubr.bf16.gmra.mrb[20].mxu0 %v9349_v2 }
  0xb9   : > { %7138 = vmatprep.mubr.bf16.mxu0 %v9352_v36 }
  0xc0   : > { %7139 = vmatmul.mubr.bf16.gmra.mrb[24].mxu0 %v9366_v8 }
  0xc1   : > { %7142 = vmatprep.mubr.bf16.mxu0 %v9369_v40 }
  0xc8   : > { %7143 = vmatmul.mubr.bf16.gmra.mrb[28].mxu0 %v9374_v13 }
  0xc9   : > { %7162 = vmatprep.mubr.bf16.mxu0 %v9134_v37 }
  0xd0   : > { %7163 = vmatmul.mubr.bf16.vlgmr.msra.gmra.mrb[0].mxu0 %v9144_v43 }
  0xd1   : > { %7195 = vmatpush3.bf16.msra.mxu0 %v8563_v32  ;;  %7166 = vmatprep.mubr.bf16.mxu0 %v9134_v37  ;;  %v8570_v32 = vld [vmem:[#allocation6 + $0xb8] sm:$0xff]  }
  0xd2   : > { %7196 = vmatprep.subr.bf16.mxu0 %v8564_v23 }
  0xd5   : > { %7197 = vmatpush3.bf16.msra.mxu0 %v8564_v23  ;;  %v9411_v23 = vsel %vm10974_vm4, %v1206_v29, %v1207_v18  ;;  %v8578_v18 = vld [vmem:[#allocation6 + $0xf8] sm:$0xff]  }
  0xd6   : > { %7198 = vmatprep.subr.bf16.mxu0 %v8565_v27 }
  0xd8   : > { %7167 = vmatmul.mubr.bf16.gmra.mrb[4].mxu0 %v9152_v50 }
  0xd9   : > { %7170 = vmatprep.mubr.bf16.mxu0 %v9172_v5  ;;  %7199 = vmatpush3.bf16.msra.mxu0 %v8565_v27  ;;  %v9414_v27 = vsel %vm10974_vm4, %v1209_v38, %v1210_v9  ;;  %v1225_v38 = vrot.slane %v9262_v11, 1  ;;  %v1228_v9 = vrot.slane %v9278_v26, 1  ;;  %v1230_v11 = vrot.slane %v9294_v53, 1 }
  0xda   : > { %7200 = vmatprep.subr.bf16.mxu0 %v8566_v31  ;;  %v1233_v26 = vrot.slane %v9298_v61, 1 }
  0xdd   : > { %7201 = vmatpush3.bf16.msra.mxu0 %v8566_v31  ;;  %v8574_v31 = vld [vmem:[#allocation6 + $0xd8] sm:$0xff]  }
  0xde   : > { %7202 = vmatprep.subr.bf16.mxu0 %v8567_v44 }
  0xe0   : > { %7171 = vmatmul.mubr.bf16.gmra.mrb[8].mxu0 %v9194_v34 }
  0xe1   : > { %7174 = vmatprep.mubr.bf16.mxu0 %v9204_v47  ;;  %7203 = vmatpush3.bf16.msra.mxu0 %v8567_v44  ;;  %v1213_v44 = vrot.slane %v9190_v33, 1  ;;  %v1218_v33 = vrot.slane %v9220_v4, 1 }
  0xe2   : > { %7204 = vmatprep.subr.bf16.mxu0 %v8568_v1 }
  0xe5   : > { %7205 = vmatpush3.bf16.msra.mxu0 %v8568_v1  ;;  %v1216_v1 = vrot.slane %v9198_v42, 1  ;;  %v1221_v42 = vrot.slane %v9237_v17, 1 }
  0xe6   : > { %7206 = vmatprep.subr.bf16.mxu0 %v8569_v46 }
  0xe7   : > { %v9438_v29 = vsel %vm10974_vm4, %v1221_v42, %v1222_v52  ;;  %v1242_v52 = vrot.slane %v9344_v25, 1 }
  0xe8   : > { %7175 = vmatmul.mubr.bf16.gmra.mrb[12].mxu0 %v9220_v4 }
  0xe9   : > { %7178 = vmatprep.mubr.bf16.mxu0 %v9237_v17  ;;  %7207 = vmatpush3.bf16.msra.mxu0 %v8569_v46  ;;  %v8575_v46 = vld [vmem:[#allocation6 + $0xe0] sm:$0xff]  }
  0xea   : > { %7208 = vmatprep.subr.bf16.mxu0 %v8570_v32 }
  0xed   : > { %7209 = vmatpush3.bf16.msra.mxu0 %v8570_v32  ;;  %v9423_v32 = vsel %vm10974_vm4, %v1212_v51, %v1213_v44  ;;  %v9450_v51 = vsel %vm10974_vm4, %v1227_v14, %v1228_v9  ;;  %v1231_v44 = vrot.slane %v9302_v12, 1  ;;  %v1239_v12 = vrot.slane %v9328_v60, 1  ;;  %v8586_v14 = vld [vmem:[#allocation6 + $0x138] sm:$0xff]   ;;  %v8587_v9 = vld [vmem:[#allocation6 + $0x140] sm:$0xff]  }
  0xee   : > { %7242 = vmatprep.subr.bf16.mxu0 %v8571_v39 }
  0xf0   : > { %7179 = vmatmul.mubr.bf16.gmra.mrb[16].mxu0 %v9255_v58 }
  0xf1   : > { %7182 = vmatprep.mubr.bf16.mxu0 %v9268_v16 }
  0xf8   : > { %7183 = vmatmul.mubr.bf16.gmra.mrb[20].mxu0 %v9294_v53 }
  0xf9   : > { %7186 = vmatprep.mubr.bf16.mxu0 %v9298_v61 }
 0x100   : > { %7187 = vmatmul.mubr.bf16.gmra.mrb[24].mxu0 %v9324_v56 }
 0x101   : > { %7190 = vmatprep.mubr.bf16.mxu0 %v9328_v60 }
 0x108   : > { %7191 = vmatmul.mubr.bf16.gmra.mrb[28].mxu0 %v9344_v25 }
 0x109   : > { %7210 = vmatprep.mubr.bf16.mxu0 %v9395_v49 }
 0x110   : > { %7211 = vmatmul.mubr.bf16.vlgmr.msra.gmra.mrb[0].mxu0 %v9402_v15 }
 0x111   : > { %7243 = vmatpush3.bf16.msra.mxu0 %v8571_v39  ;;  %7214 = vmatprep.mubr.bf16.mxu0 %v9395_v49  ;;  %v9426_v39 = vsel %vm10974_vm4, %v1215_v6, %v1216_v1  ;;  %v1234_v6 = vrot.slane %v9309_v20, 1  ;;  %v9459_v1 = vsel %vm10974_vm4, %v1230_v11, %v1231_v44  ;;  %v278_v11 = vld [vmem:[%s9101_s8 + $0xf8] sm:$0xff] }
 0x112   : > { %7244 = vmatprep.subr.bf16.mxu0 %v8572_v62 }
 0x115   : > { %7245 = vmatpush3.bf16.msra.mxu0 %v8572_v62  ;;  %v9435_v62 = vsel %vm10974_vm4, %v1218_v33, %v1219_v48  ;;  %v1237_v33 = vrot.slane %v9334_v22, 1  ;;  %v1240_v48 = vrot.slane %v9339_v57, 1  ;;  %v8580_v57 = vld [vmem:[#allocation6 + $0x108] sm:$0xff]  }
 0x116   : > { %7246 = vmatprep.subr.bf16.mxu0 %v8573_v45 }
 0x117   : > { %v9474_v42 = vsel %vm10974_vm4, %v1239_v12, %v1240_v48  ;;  %v8588_v48 = vld [vmem:[#allocation6 + $0x148] sm:$0xff]  }
 0x118   : > { %7215 = vmatmul.mubr.bf16.gmra.mrb[4].mxu0 %v9411_v23 }
 0x119   : > { %7218 = vmatprep.mubr.bf16.mxu0 %v9414_v27  ;;  %7247 = vmatpush3.bf16.msra.mxu0 %v8573_v45  ;;  %v8579_v45 = vld [vmem:[#allocation6 + $0x100] sm:$0xff]  }
 0x11a   : > { %7248 = vmatprep.subr.bf16.mxu0 %v8574_v31 }
 0x11d   : > { %7249 = vmatpush3.bf16.msra.mxu0 %v8574_v31  ;;  %v9447_v31 = vsel %vm10974_vm4, %v1224_v7, %v1225_v38  ;;  %v8582_v7 = vld [vmem:[#allocation6 + $0x118] sm:$0xff]   ;;  %v8585_v38 = vld [vmem:[#allocation6 + $0x130] sm:$0xff]  }
 0x11e   : > { %7250 = vmatprep.subr.bf16.mxu0 %v8575_v46 }
 0x120   : > { %7219 = vmatmul.mubr.bf16.gmra.mrb[8].mxu0 %v9423_v32 }
 0x121   : > { %7222 = vmatprep.mubr.bf16.mxu0 %v9426_v39  ;;  %7251 = vmatpush3.bf16.msra.mxu0 %v8575_v46  ;;  %v9462_v46 = vsel %vm10974_vm4, %v1233_v26, %v1234_v6 }
 0x122   : > { %7252 = vmatprep.subr.bf16.mxu0 %v8576_v30 }
 0x125   : > { %7253 = vmatpush3.bf16.msra.mxu0 %v8576_v30  ;;  %v1236_v30 = vrot.slane %v9324_v56, 1 }
 0x126   : > { %7254 = vmatprep.subr.bf16.mxu0 %v8577_v59 }
 0x127   : > { %v9471_v20 = vsel %vm10974_vm4, %v1236_v30, %v1237_v33 }
 0x128   : > { %7223 = vmatmul.mubr.bf16.gmra.mrb[12].mxu0 %v9435_v62 }
 0x129   : > { %7226 = vmatprep.mubr.bf16.mxu0 %v9438_v29  ;;  %7255 = vmatpush3.bf16.msra.mxu0 %v8577_v59  ;;  %v1243_v59 = vrot.slane %v9358_v19, 1  ;;  %v8583_v19 = vld [vmem:[#allocation6 + $0x120] sm:$0xff]  }
 0x12a   : > { %7256 = vmatprep.subr.bf16.mxu0 %v8578_v18 }
 0x12b   : > { %v9481_v22 = vsel %vm10974_vm4, %v1242_v52, %v1243_v59  ;;  %v8589_v52 = vld [vmem:[#allocation6 + $0x150] sm:$0xff]   ;;  %v8590_v59 = vld [vmem:[#allocation6 + $0x158] sm:$0xff]  }
 0x12d   : > { %7257 = vmatpush3.bf16.msra.mxu0 %v8578_v18  ;;  %v8581_v18 = vld [vmem:[#allocation6 + $0x110] sm:$0xff]  }
 0x12e   : > { %7290 = vmatprep.subr.bf16.mxu0 %v8579_v45 }
 0x130   : > { %7227 = vmatmul.mubr.bf16.gmra.mrb[16].mxu0 %v9447_v31 }
 0x131   : > { %7230 = vmatprep.mubr.bf16.mxu0 %v9450_v51 }
 0x138   : > { %7231 = vmatmul.mubr.bf16.gmra.mrb[20].mxu0 %v9459_v1 }
 0x139   : > { %7234 = vmatprep.mubr.bf16.mxu0 %v9462_v46 }
 0x140   : > { %7235 = vmatmul.mubr.bf16.gmra.mrb[24].mxu0 %v9471_v20 }
 0x141   : > { %7238 = vmatprep.mubr.bf16.mxu0 %v9474_v42 }
 0x148   : > { %7239 = vmatmul.mubr.bf16.gmra.mrb[28].mxu0 %v9481_v22 }
 0x149   : > { %7258 = vmatprep.mubr.bf16.mxu0 %v9144_v43  ;;  %v8584_v43 = vld [vmem:[#allocation6 + $0x128] sm:$0xff]  }
 0x150   : > { %7259 = vmatmul.mubr.bf16.vlgmr.msra.gmra.mrb[0].mxu0 %v9134_v37 }
 0x151   : > { %7291 = vmatpush3.bf16.msra.mxu0 %v8579_v45  ;;  %7262 = vmatprep.mubr.bf16.mxu0 %v9152_v50  ;;  %v277_v45 = vld [vmem:[%s9101_s8 + $0xf0] sm:$0xff] }
 0x152   : > { %7292 = vmatprep.subr.bf16.mxu0 %v8580_v57  ;;  %v294_v44 = vpack.c.bf16 %v278_v11, %v277_v45 }
 0x154   : > { %v341_v26 = vshrl.u32 %v294_v44, 16  ;;  %v420_v30 = vshll.u32 %v294_v44, 16 }
 0x155   : > { %7293 = vmatpush3.bf16.msra.mxu0 %v8580_v57  ;;  %v8591_v57 = vld [vmem:[#allocation6 + $0x160] sm:$0xff]  }
 0x156   : > { %7294 = vmatprep.subr.bf16.mxu0 %v8581_v18  ;;  %v419_v6 = vrot.slane %v341_v26, 7 }
 0x158   : > { %7263 = vmatmul.mubr.bf16.gmra.mrb[4].mxu0 %v9172_v5  ;;  %v422_v33 = vor.u32 %v420_v30, %v419_v6 }
 0x159   : > { %7266 = vmatprep.mubr.bf16.mxu0 %v9194_v34  ;;  %7295 = vmatpush3.bf16.msra.mxu0 %v8581_v18  ;;  %v8593_v18 = vld [vmem:[#allocation6 + $0x170] sm:$0xff]  }
 0x15a   : > { %7296 = vmatprep.subr.bf16.mxu0 %v8582_v7  ;;  %v9503_v12 = vsel %vm9121_vm2, %v341_v26, %v422_v33  ;;  %v8596_v33 = vld [vmem:[#allocation6 + $0x188] sm:$0xff]  }
 0x15d   : > { %7297 = vmatpush3.bf16.msra.mxu0 %v8582_v7  ;;  %v8594_v7 = vld [vmem:[#allocation6 + $0x178] sm:$0xff]  }
 0x15e   : > { %7298 = vmatprep.subr.bf16.mxu0 %v8583_v19 }
 0x160   : > { %7267 = vmatmul.mubr.bf16.gmra.mrb[8].mxu0 %v9204_v47 }
 0x161   : > { %7270 = vmatprep.mubr.bf16.mxu0 %v9220_v4  ;;  %7299 = vmatpush3.bf16.msra.mxu0 %v8583_v19  ;;  %v8595_v19 = vld [vmem:[#allocation6 + $0x180] sm:$0xff]  }
 0x162   : > { %7300 = vmatprep.subr.bf16.mxu0 %v8584_v43 }
 0x165   : > { %7301 = vmatpush3.bf16.msra.mxu0 %v8584_v43  ;;  %v470_v43 = vrot.slane %v420_v30, 7 }
 0x166   : > { %7302 = vmatprep.subr.bf16.mxu0 %v8585_v38 }
 0x168   : > { %7271 = vmatmul.mubr.bf16.gmra.mrb[12].mxu0 %v9237_v17 }
 0x169   : > { %7274 = vmatprep.mubr.bf16.mxu0 %v9255_v58  ;;  %7303 = vmatpush3.bf16.msra.mxu0 %v8585_v38  ;;  %v1779_v38 = vshll.u32 %v9503_v12, 16 }
 0x16a   : > { %7304 = vmatprep.subr.bf16.mxu0 %v8586_v14 }
 0x16b   : > { %v1781_v45 = vrot.slane %v1779_v38, 1  ;;  %v8605_v38 = vld [vmem:[#allocation6 + $0x1d0] sm:$0xff]  }
 0x16d   : > { %7305 = vmatpush3.bf16.msra.mxu0 %v8586_v14  ;;  %v521_v14 = vsel %vm9121_vm2, %v419_v6, %v470_v43  ;;  %v8597_v6 = vld [vmem:[#allocation6 + $0x190] sm:$0xff]   ;;  %v8604_v43 = vld [vmem:[#allocation6 + $0x1c8] sm:$0xff]  }
 0x16e   : > { %7338 = vmatprep.subr.bf16.mxu0 %v8587_v9  ;;  %v1784_v11 = vshll.u32 %v521_v14, 16 }
 0x170   : > { %7275 = vmatmul.mubr.bf16.gmra.mrb[16].mxu0 %v9268_v16  ;;  %v1786_v26 = vrot.slane %v1784_v11, 1 }
 0x171   : > { %7278 = vmatprep.mubr.bf16.mxu0 %v9294_v53 }
 0x178   : > { %7279 = vmatmul.mubr.bf16.gmra.mrb[20].mxu0 %v9298_v61 }
 0x179   : > { %7282 = vmatprep.mubr.bf16.mxu0 %v9324_v56 }
 0x180   : > { %7283 = vmatmul.mubr.bf16.gmra.mrb[24].mxu0 %v9328_v60 }
 0x181   : > { %7286 = vmatprep.mubr.bf16.mxu0 %v9344_v25 }
 0x188   : > { %7287 = vmatmul.mubr.bf16.gmra.mrb[28].mxu0 %v9503_v12 }
 0x189   : > { %7306 = vmatprep.mubr.bf16.mxu0 %v9185_v28  ;;  %v8592_v28 = vld [vmem:[#allocation6 + $0x168] sm:$0xff]  }
 0x190   : > { %7307 = vmatmul.mubr.bf16.vlgmr.msra.gmra.mrb[0].mxu0 %v9164_v0 }
 0x191   : > { %7339 = vmatpush3.bf16.msra.mxu0 %v8587_v9  ;;  %7310 = vmatprep.mubr.bf16.mxu0 %v9214_v63  ;;  %v1777_v9 = vshrl.u32 %v9503_v12, 16 }
 0x192   : > { %7340 = vmatprep.subr.bf16.mxu0 %v8588_v48 }
 0x193   : > { %v1782_v44 = vor.u32 %v1781_v45, %v1777_v9  ;;  %v8606_v9 = vld [vmem:[#allocation6 + $0x1d8] sm:$0xff]  }
 0x195   : > { %7341 = vmatpush3.bf16.msra.mxu0 %v8588_v48  ;;  %v9526_v30 = vsel %vm10975_vm3, %v1782_v44, %v1786_v26  ;;  %v8598_v48 = vld [vmem:[#allocation6 + $0x198] sm:$0xff]  }
 0x196   : > { %7342 = vmatprep.subr.bf16.mxu0 %v8589_v52 }
 0x198   : > { %7311 = vmatmul.mubr.bf16.gmra.mrb[4].mxu0 %v9227_v10 }
 0x199   : > { %7314 = vmatprep.mubr.bf16.mxu0 %v9251_v55  ;;  %7343 = vmatpush3.bf16.msra.mxu0 %v8589_v52  ;;  %v8599_v52 = vld [vmem:[#allocation6 + $0x1a0] sm:$0xff]  }
 0x19a   : > { %7344 = vmatprep.subr.bf16.mxu0 %v8590_v59 }
 0x19d   : > { %7345 = vmatpush3.bf16.msra.mxu0 %v8590_v59  ;;  %v8601_v59 = vld [vmem:[#allocation6 + $0x1b0] sm:$0xff]  }
 0x19e   : > { %7346 = vmatprep.subr.bf16.mxu0 %v8591_v57 }
 0x1a0   : > { %7315 = vmatmul.mubr.bf16.gmra.mrb[8].mxu0 %v9258_v3 }
 0x1a1   : > { %7318 = vmatprep.mubr.bf16.mxu0 %v9282_v35  ;;  %7347 = vmatpush3.bf16.msra.mxu0 %v8591_v57  ;;  %v8602_v57 = vld [vmem:[#allocation6 + $0x1b8] sm:$0xff]  }
 0x1a2   : > { %7348 = vmatprep.subr.bf16.mxu0 %v8592_v28 }
 0x1a5   : > { %7349 = vmatpush3.bf16.msra.mxu0 %v8592_v28  ;;  %v8603_v28 = vld [vmem:[#allocation6 + $0x1c0] sm:$0xff]  }
 0x1a6   : > { %7350 = vmatprep.subr.bf16.mxu0 %v8593_v18 }
 0x1a8   : > { %7319 = vmatmul.mubr.bf16.gmra.mrb[12].mxu0 %v9287_v41 }
 0x1a9   : > { %7322 = vmatprep.mubr.bf16.mxu0 %v9317_v21  ;;  %7351 = vmatpush3.bf16.msra.mxu0 %v8593_v18  ;;  %v2049_v18 = vrot.slane %v9503_v12, 1 }
 0x1aa   : > { %7352 = vmatprep.subr.bf16.mxu0 %v8594_v7 }
 0x1ad   : > { %7353 = vmatpush3.bf16.msra.mxu0 %v8594_v7  ;;  %v2050_v7 = vrot.slane %v521_v14, 1  ;;  %v8607_v14 = vld [vmem:[#allocation6 + $0x1e0] sm:$0xff]  }
 0x1ae   : > { %7386 = vmatprep.subr.bf16.mxu0 %v8595_v19 }
 0x1b0   : > { %7323 = vmatmul.mubr.bf16.gmra.mrb[16].mxu0 %v9320_v54 }
 0x1b1   : > { %7326 = vmatprep.mubr.bf16.mxu0 %v9349_v2 }
 0x1b8   : > { %7327 = vmatmul.mubr.bf16.gmra.mrb[20].mxu0 %v9352_v36 }
 0x1b9   : > { %7330 = vmatprep.mubr.bf16.mxu0 %v9366_v8 }
 0x1c0   : > { %7331 = vmatmul.mubr.bf16.gmra.mrb[24].mxu0 %v9369_v40 }
 0x1c1   : > { %7334 = vmatprep.mubr.bf16.mxu0 %v9374_v13 }
 0x1c8   : > { %7335 = vmatmul.mubr.bf16.gmra.mrb[28].mxu0 %v9526_v30 }
 0x1c9   : > { %7354 = vmatprep.mubr.bf16.mxu0 %v9402_v15  ;;  %v8600_v15 = vld [vmem:[#allocation6 + $0x1a8] sm:$0xff]  }
 0x1d0   : > { %7355 = vmatmul.mubr.bf16.vlgmr.msra.gmra.mrb[0].mxu0 %v9395_v49 }
 0x1d1   : > { %7387 = vmatpush3.bf16.msra.mxu0 %v8595_v19  ;;  %7358 = vmatprep.mubr.bf16.mxu0 %v9411_v23  ;;  %v9546_v19 = vsel %vm10974_vm4, %v2049_v18, %v2050_v7 }
 0x1d2   : > { %7388 = vmatprep.subr.bf16.mxu0 %v8596_v33 }
 0x1d5   : > { %7389 = vmatpush3.bf16.msra.mxu0 %v8596_v33 }
 0x1d6   : > { %7390 = vmatprep.subr.bf16.mxu0 %v8597_v6 }
 0x1d8   : > { %7359 = vmatmul.mubr.bf16.gmra.mrb[4].mxu0 %v9414_v27 }
 0x1d9   : > { %7362 = vmatprep.mubr.bf16.mxu0 %v9423_v32  ;;  %7391 = vmatpush3.bf16.msra.mxu0 %v8597_v6 }
 0x1da   : > { %7392 = vmatprep.subr.bf16.mxu0 %v8598_v48 }
 0x1dd   : > { %7393 = vmatpush3.bf16.msra.mxu0 %v8598_v48 }
 0x1de   : > { %7394 = vmatprep.subr.bf16.mxu0 %v8599_v52 }
 0x1e0   : > { %7363 = vmatmul.mubr.bf16.gmra.mrb[8].mxu0 %v9426_v39 }
 0x1e1   : > { %7366 = vmatprep.mubr.bf16.mxu0 %v9435_v62  ;;  %7395 = vmatpush3.bf16.msra.mxu0 %v8599_v52 }
 0x1e2   : > { %7396 = vmatprep.subr.bf16.mxu0 %v8600_v15 }
 0x1e5   : > { %7397 = vmatpush3.bf16.msra.mxu0 %v8600_v15 }
 0x1e6   : > { %7398 = vmatprep.subr.bf16.mxu0 %v8601_v59 }
 0x1e8   : > { %7367 = vmatmul.mubr.bf16.gmra.mrb[12].mxu0 %v9438_v29 }
 0x1e9   : > { %7370 = vmatprep.mubr.bf16.mxu0 %v9447_v31  ;;  %7399 = vmatpush3.bf16.msra.mxu0 %v8601_v59 }
 0x1ea   : > { %7400 = vmatprep.subr.bf16.mxu0 %v8602_v57 }
 0x1ed   : > { %7401 = vmatpush3.bf16.msra.mxu0 %v8602_v57 }
 0x1ee   : > { %7434 = vmatprep.subr.bf16.mxu0 %v8603_v28 }
 0x1f0   : > { %7371 = vmatmul.mubr.bf16.gmra.mrb[16].mxu0 %v9450_v51 }
 0x1f1   : > { %7374 = vmatprep.mubr.bf16.mxu0 %v9459_v1 }
 0x1f8   : > { %7375 = vmatmul.mubr.bf16.gmra.mrb[20].mxu0 %v9462_v46 }
 0x1f9   : > { %7378 = vmatprep.mubr.bf16.mxu0 %v9471_v20 }
 0x200   : > { %7379 = vmatmul.mubr.bf16.gmra.mrb[24].mxu0 %v9474_v42 }
 0x201   : > { %7382 = vmatprep.mubr.bf16.mxu0 %v9481_v22 }
 0x208   : > { %7383 = vmatmul.mubr.bf16.gmra.mrb[28].mxu0 %v9546_v19 }
 0x209   : > { %7402 = vmatprep.mubr.bf16.mxu0 %v9134_v37  ;;  %v8608_v37 = vld [vmem:[#allocation6 + $0x1e8] sm:$0xff]  }
 0x210   : > { %7403 = vmatmul.mubr.bf16.vlgmr.msra.gmra.mrb[0].mxu0 %v9152_v50  ;;  %v8609_v50 = vld [vmem:[#allocation6 + $0x1f0] sm:$0xff]  }
 0x211   : > { %7435 = vmatpush3.bf16.msra.mxu0 %v8603_v28  ;;  %7406 = vmatprep.mubr.bf16.mxu0 %v9172_v5  ;;  %v8610_v5 = vld [vmem:[#allocation6 + $0x1f8] sm:$0xff]  }
 0x212   : > { %7436 = vmatprep.subr.bf16.mxu0 %v8604_v43 }
 0x215   : > { %7437 = vmatpush3.bf16.msra.mxu0 %v8604_v43 }
 0x216   : > { %7438 = vmatprep.subr.bf16.mxu0 %v8605_v38 }
 0x218   : > { %7407 = vmatmul.mubr.bf16.gmra.mrb[4].mxu0 %v9194_v34  ;;  %v8611_v34 = vld [vmem:[#allocation6 + $0x200] sm:$0xff]  }
 0x219   : > { %7410 = vmatprep.mubr.bf16.mxu0 %v9204_v47  ;;  %7439 = vmatpush3.bf16.msra.mxu0 %v8605_v38  ;;  %v8612_v47 = vld [vmem:[#allocation6 + $0x208] sm:$0xff]  }
 0x21a   : > { %7440 = vmatprep.subr.bf16.mxu0 %v8606_v9 }
 0x21d   : > { %7441 = vmatpush3.bf16.msra.mxu0 %v8606_v9 }
 0x21e   : > { %7442 = vmatprep.subr.bf16.mxu0 %v8607_v14 }
 0x220   : > { %7411 = vmatmul.mubr.bf16.gmra.mrb[8].mxu0 %v9220_v4  ;;  %v8613_v4 = vld [vmem:[#allocation6 + $0x210] sm:$0xff]  }
 0x221   : > { %7414 = vmatprep.mubr.bf16.mxu0 %v9237_v17  ;;  %7443 = vmatpush3.bf16.msra.mxu0 %v8607_v14  ;;  %v8614_v17 = vld [vmem:[#allocation6 + $0x218] sm:$0xff]  }
 0x222   : > { %7444 = vmatprep.subr.bf16.mxu0 %v8608_v37 }
 0x225   : > { %7445 = vmatpush3.bf16.msra.mxu0 %v8608_v37 }
 0x226   : > { %7446 = vmatprep.subr.bf16.mxu0 %v8609_v50 }
 0x228   : > { %7415 = vmatmul.mubr.bf16.gmra.mrb[12].mxu0 %v9255_v58  ;;  %v8615_v58 = vld [vmem:[#allocation6 + $0x220] sm:$0xff]  }
 0x229   : > { %7418 = vmatprep.mubr.bf16.mxu0 %v9268_v16  ;;  %7447 = vmatpush3.bf16.msra.mxu0 %v8609_v50 }
 0x22a   : > { %7448 = vmatprep.subr.bf16.mxu0 %v8610_v5 }
 0x22d   : > { %7449 = vmatpush3.bf16.msra.mxu0 %v8610_v5 }
 0x22e   : > { %7482 = vmatprep.subr.bf16.mxu0 %v8611_v34 }
 0x230   : > { %7419 = vmatmul.mubr.bf16.gmra.mrb[16].mxu0 %v9294_v53 }
 0x231   : > { %7422 = vmatprep.mubr.bf16.mxu0 %v9298_v61 }
 0x238   : > { %7423 = vmatmul.mubr.bf16.gmra.mrb[20].mxu0 %v9324_v56 }
 0x239   : > { %7426 = vmatprep.mubr.bf16.mxu0 %v9328_v60 }
 0x240   : > { %7427 = vmatmul.mubr.bf16.gmra.mrb[24].mxu0 %v9344_v25 }
 0x241   : > { %7430 = vmatprep.mubr.bf16.mxu0 %v9503_v12 }
 0x248   : > { %7431 = vmatmul.mubr.bf16.gmra.mrb[28].mxu0 %v9344_v25 }
 0x249   : > { %7450 = vmatprep.mubr.bf16.mxu0 %v9164_v0  ;;  %v8616_v0 = vld [vmem:[#allocation6 + $0x228] sm:$0xff]  }
 0x250   : > { %7451 = vmatmul.mubr.bf16.vlgmr.msra.gmra.mrb[0].mxu0 %v9214_v63  ;;  %v8617_v63 = vld [vmem:[#allocation6 + $0x230] sm:$0xff]  }
 0x251   : > { %7483 = vmatpush3.bf16.msra.mxu0 %v8611_v34  ;;  %7454 = vmatprep.mubr.bf16.mxu0 %v9227_v10  ;;  %v8618_v10 = vld [vmem:[#allocation6 + $0x238] sm:$0xff]  }
 0x252   : > { %7484 = vmatprep.subr.bf16.mxu0 %v8612_v47 }
 0x255   : > { %7485 = vmatpush3.bf16.msra.mxu0 %v8612_v47 }
 0x256   : > { %7486 = vmatprep.subr.bf16.mxu0 %v8613_v4 }
 0x258   : > { %7455 = vmatmul.mubr.bf16.gmra.mrb[4].mxu0 %v9251_v55 }
 0x259   : > { %7458 = vmatprep.mubr.bf16.mxu0 %v9258_v3  ;;  %7487 = vmatpush3.bf16.msra.mxu0 %v8613_v4 }
 0x25a   : > { %7488 = vmatprep.subr.bf16.mxu0 %v8614_v17 }
 0x25d   : > { %7489 = vmatpush3.bf16.msra.mxu0 %v8614_v17 }
 0x25e   : > { %7490 = vmatprep.subr.bf16.mxu0 %v8615_v58 }
 0x260   : > { %7459 = vmatmul.mubr.bf16.gmra.mrb[8].mxu0 %v9282_v35 }
 0x261   : > { %7462 = vmatprep.mubr.bf16.mxu0 %v9287_v41  ;;  %7491 = vmatpush3.bf16.msra.mxu0 %v8615_v58 }
 0x262   : > { %7492 = vmatprep.subr.bf16.mxu0 %v8616_v0 }
 0x265   : > { %7493 = vmatpush3.bf16.msra.mxu0 %v8616_v0 }
 0x266   : > { %7494 = vmatprep.subr.bf16.mxu0 %v8617_v63 }
 0x268   : > { %7463 = vmatmul.mubr.bf16.gmra.mrb[12].mxu0 %v9317_v21 }
 0x269   : > { %7466 = vmatprep.mubr.bf16.mxu0 %v9320_v54  ;;  %7495 = vmatpush3.bf16.msra.mxu0 %v8617_v63 }
 0x26a   : > { %7496 = vmatprep.subr.bf16.mxu0 %v8618_v10 }
 0x26d   : > { %7497 = vmatpush3.bf16.msra.mxu0 %v8618_v10 }
 0x270   : > { %7467 = vmatmul.mubr.bf16.gmra.mrb[16].mxu0 %v9349_v2 }
 0x271   : > { %7470 = vmatprep.mubr.bf16.mxu0 %v9352_v36 }
 0x278   : > { %7471 = vmatmul.mubr.bf16.gmra.mrb[20].mxu0 %v9366_v8 }
 0x279   : > { %7474 = vmatprep.mubr.bf16.mxu0 %v9369_v40 }
 0x280   : > { %7475 = vmatmul.mubr.bf16.gmra.mrb[24].mxu0 %v9374_v13 }
 0x281   : > { %7478 = vmatprep.mubr.bf16.mxu0 %v9526_v30 }
 0x288   : > { %7479 = vmatmul.mubr.bf16.gmra.mrb[28].mxu0 %v9374_v13 }
 0x289   : > { %7498 = vmatprep.mubr.bf16.mxu0 %v9395_v49 }
 0x290   : > { %7499 = vmatmul.mubr.bf16.vlgmr.msra.gmra.mrb[0].mxu0 %v9411_v23 }
 0x291   : > { %7502 = vmatprep.mubr.bf16.mxu0 %v9414_v27 }
 0x298   : > { %7503 = vmatmul.mubr.bf16.gmra.mrb[4].mxu0 %v9423_v32 }
 0x299   : > { %7506 = vmatprep.mubr.bf16.mxu0 %v9426_v39 }
 0x2a0   : > { %7507 = vmatmul.mubr.bf16.gmra.mrb[8].mxu0 %v9435_v62 }
 0x2a1   : > { %7510 = vmatprep.mubr.bf16.mxu0 %v9438_v29 }
 0x2a8   : > { %7511 = vmatmul.mubr.bf16.gmra.mrb[12].mxu0 %v9447_v31 }
 0x2a9   : > { %7514 = vmatprep.mubr.bf16.mxu0 %v9450_v51 }
 0x2b0   : > { %7515 = vmatmul.mubr.bf16.gmra.mrb[16].mxu0 %v9459_v1 }
 0x2b1   : > { %7518 = vmatprep.mubr.bf16.mxu0 %v9462_v46 }
 0x2b8   : > { %7519 = vmatmul.mubr.bf16.gmra.mrb[20].mxu0 %v9471_v20 }
 0x2b9   : > { %7522 = vmatprep.mubr.bf16.mxu0 %v9474_v42 }
 0x2c0   : > { %7523 = vmatmul.mubr.bf16.gmra.mrb[24].mxu0 %v9481_v22 }
 0x2c1   : > { %7526 = vmatprep.mubr.bf16.mxu0 %v9546_v19 }
 0x2c8   : > { %7527 = vmatmul.mubr.bf16.gmra.mrb[28].mxu0 %v9481_v22 }
 0x363   : > { %v9597_v55 = vpop.f32.mrb[0].mxu0 }
 0x364   : > { %v9599_v3 = vpop.f32.mrb[1].mxu0 }
 0x365   : > { %v9601_v16 = vpop.f32.mrb[2].mxu0 }
 0x366   : > { %v9603_v35 = vpop.f32.mrb[3].mxu0 }
 0x367   : > { %v3085_v41 = vadd.f32 %v9603_v35, %v9599_v3 }
 0x369   : > { %v3086_v53 = vadd.f32 %v9597_v55, %v3085_v41 }
 0x36b   : > { %v9608_v61 = vpop.f32.mrb[4].mxu0  ;;  %v3087_v21 = vadd.f32 %v9601_v16, %v3086_v53 }
 0x36c   : > { %v9611_v54 = vpop.f32.mrb[5].mxu0 }
 0x36d   : > { %v3088_v56 = vadd.f32 %v3087_v21, %v9611_v54  ;;  %v9614_v60 = vpop.f32.mrb[6].mxu0 }
 0x36e   : > { %v9616_v25 = vpop.f32.mrb[7].mxu0 }
 0x36f   : > { %v3089_v2 = vadd.f32 %v3088_v56, %v9616_v25 }
 0x371   : > { %v3090_v36 = vadd.f32 %v9608_v61, %v3089_v2 }
 0x373   : > { %v9620_v8 = vpop.f32.mrb[8].mxu0  ;;  %v3091_v40 = vadd.f32 %v9614_v60, %v3090_v36 }
 0x374   : > { %v2958_v13 = vpop.f32.mrb[9].mxu0 }
 0x375   : > { %v3092_v49 = vadd.f32 %v3091_v40, %v2958_v13  ;;  %v9623_v23 = vpop.f32.mrb[10].mxu0 }
 0x376   : > { %v2961_v27 = vpop.f32.mrb[11].mxu0 }
 0x377   : > { %v3093_v32 = vadd.f32 %v3092_v49, %v2961_v27 }
 0x379   : > { %v3094_v39 = vadd.f32 %v9620_v8, %v3093_v32 }
 0x37b   : > { %v7512_v62 = vpop.f32.mrb[12].mxu0  ;;  %v3095_v29 = vadd.f32 %v9623_v23, %v3094_v39 }
 0x37c   : > { %v2974_v31 = vpop.f32.mrb[13].mxu0 }
 0x37d   : > { %v3096_v51 = vadd.f32 %v3095_v29, %v2974_v31  ;;  %v7513_v1 = vpop.f32.mrb[14].mxu0 }
 0x37e   : > { %v2977_v46 = vpop.f32.mrb[15].mxu0 }
 0x37f   : > { %v3097_v20 = vadd.f32 %v3096_v51, %v2977_v46 }
 0x381   : > { %v3098_v42 = vadd.f32 %v7512_v62, %v3097_v20 }
 0x383   : > { %v7516_v22 = vpop.f32.mrb[16].mxu0  ;;  %v3099_v12 = vadd.f32 %v7513_v1, %v3098_v42 }
 0x384   : > { %v2990_v45 = vpop.f32.mrb[17].mxu0 }
 0x385   : > { %v3100_v11 = vadd.f32 %v3099_v12, %v2990_v45  ;;  %v7517_v44 = vpop.f32.mrb[18].mxu0 }
 0x386   : > { %v2993_v26 = vpop.f32.mrb[19].mxu0 }
 0x387   : > { %v3101_v30 = vadd.f32 %v3100_v11, %v2993_v26 }
 0x389   : > { %v3102_v33 = vadd.f32 %v7516_v22, %v3101_v30 }
 0x38b   : > { %v7520_v6 = vpop.f32.mrb[20].mxu0  ;;  %v3103_v48 = vadd.f32 %v7517_v44, %v3102_v33 }
 0x38c   : > { %v3006_v52 = vpop.f32.mrb[21].mxu0 }
 0x38d   : > { %v3104_v15 = vadd.f32 %v3103_v48, %v3006_v52  ;;  %v7521_v59 = vpop.f32.mrb[22].mxu0 }
 0x38e   : > { %v3009_v57 = vpop.f32.mrb[23].mxu0 }
 0x38f   : > { %v3105_v28 = vadd.f32 %v3104_v15, %v3009_v57  ;;  %v8621_v15 = vld [vmem:[#allocation8 + $0x50] sm:$0xff]  }
 0x391   : > { %v3106_v18 = vadd.f32 %v7520_v6, %v3105_v28  ;;  %v8622_v28 = vld [vmem:[#allocation8 + $0x58] sm:$0xff]  }
 0x393   : > { %v7524_v7 = vpop.f32.mrb[24].mxu0  ;;  %v3107_v19 = vadd.f32 %v7521_v59, %v3106_v18 }
 0x394   : > { %v3022_v43 = vpop.f32.mrb[25].mxu0 }
 0x395   : > { %v3108_v38 = vadd.f32 %v3107_v19, %v3022_v43  ;;  %v7525_v9 = vpop.f32.mrb[26].mxu0 }
 0x396   : > { %v3025_v14 = vpop.f32.mrb[27].mxu0 }
 0x397   : > { %v3109_v37 = vadd.f32 %v3108_v38, %v3025_v14  ;;  %v8623_v38 = vld [vmem:[#allocation8 + $0x60] sm:$0xff]  }
 0x399   : > { %v3110_v50 = vadd.f32 %v7524_v7, %v3109_v37 }
 0x39b   : > { %v7528_v5 = vpop.f32.mrb[28].mxu0  ;;  %v3111_v34 = vadd.f32 %v7525_v9, %v3110_v50 }
 0x39c   : > { %v3038_v47 = vpop.f32.mrb[29].mxu0 }
 0x39d   : > { %v3112_v4 = vadd.f32 %v3111_v34, %v3038_v47  ;;  %v7529_v17 = vpop.f32.mrb[30].mxu0  ;;  %v8625_v34 = vld [vmem:[#allocation8 + $0x70] sm:$0xff]  }
 0x39e   : > { %v3041_v58 = vpop.f32.mrb[31].mxu0 }
 0x39f   : > { %v3113_v0 = vadd.f32 %v3112_v4, %v3041_v58 }
 0x3a1   : > { %v3114_v63 = vadd.f32 %v7528_v5, %v3113_v0  ;;  %v8626_v0 = vld [vmem:[#allocation8 + $0x78] sm:$0xff]  }
 0x3a3   : > { %v3115_v10 = vadd.f32 %v7529_v17, %v3114_v63 }
 0x3a5   : > { %v3116_v41 = vrot.slane %v3115_v10, 4 }
 0x3a7   : > { %v3117_v53 = vadd.f32 %v3116_v41, %v3115_v10 }
 0x3a9   : > { %v3118_v21 = vrot.slane %v3117_v53, 2 }
 0x3ab   : > { %v3119_v56 = vadd.f32 %v3118_v21, %v3117_v53 }
 0x3ad   : > { %v3120_v2 = vrot.slane %v3119_v56, 1 }
 0x3af   : > { %v3121_v36 = vadd.f32 %v3120_v2, %v3119_v56 }
 0x3b1   : > { %v3122_v40 = vmul.f32 0.00390625, %v3121_v36 }
 0x3b3   : > { %v9628_v49 = vsub.f32 %v9599_v3, %v3122_v40  ;;  %v9631_v32 = vsub.f32 %v9603_v35, %v3122_v40  ;;  %v9634_v39 = vsub.f32 %v9597_v55, %v3122_v40  ;;  %v9637_v29 = vsub.f32 %v9601_v16, %v3122_v40 }
 0x3b4   : > { %v9640_v51 = vsub.f32 %v9611_v54, %v3122_v40  ;;  %v9643_v20 = vsub.f32 %v9616_v25, %v3122_v40  ;;  %v9646_v42 = vsub.f32 %v9608_v61, %v3122_v40  ;;  %v9649_v3 = vsub.f32 %v9614_v60, %v3122_v40  ;;  %v8619_v60 = vld [vmem:[#allocation8 + $0x40] sm:$0xff]  }
 0x3b5   : > { %v9651_v35 = vsub.f32 %v2958_v13, %v3122_v40  ;;  %v9653_v12 = vsub.f32 %v2961_v27, %v3122_v40  ;;  %v9656_v55 = vsub.f32 %v9620_v8, %v3122_v40  ;;  %v9659_v16 = vsub.f32 %v9623_v23, %v3122_v40  ;;  %7530 = vmatprep.subr.bf16.mxu1 %v8619_v60 }
 0x3b6   : > { %v9661_v54 = vsub.f32 %v2974_v31, %v3122_v40  ;;  %v9663_v25 = vsub.f32 %v2977_v46, %v3122_v40  ;;  %v9665_v11 = vsub.f32 %v7512_v62, %v3122_v40  ;;  %v9667_v61 = vsub.f32 %v7513_v1, %v3122_v40  ;;  %7531 = vmatpush3.bf16.msra.mxu1 %v8619_v60 }
 0x3b7   : > { %v9669_v30 = vsub.f32 %v2990_v45, %v3122_v40  ;;  %v9671_v13 = vsub.f32 %v2993_v26, %v3122_v40  ;;  %v9673_v27 = vsub.f32 %v7516_v22, %v3122_v40  ;;  %v9675_v8 = vsub.f32 %v7517_v44, %v3122_v40 }
 0x3b8   : > { %v9677_v33 = vsub.f32 %v3006_v52, %v3122_v40  ;;  %v9679_v23 = vsub.f32 %v3009_v57, %v3122_v40  ;;  %v9681_v31 = vsub.f32 %v7520_v6, %v3122_v40  ;;  %v9683_v46 = vsub.f32 %v7521_v59, %v3122_v40  ;;  %v8620_v52 = vld [vmem:[#allocation8 + $0x48] sm:$0xff]  }
 0x3b9   : > { %v9685_v62 = vsub.f32 %v3022_v43, %v3122_v40  ;;  %v9687_v1 = vsub.f32 %v3025_v14, %v3122_v40  ;;  %v9689_v45 = vsub.f32 %v7524_v7, %v3122_v40  ;;  %v9691_v26 = vsub.f32 %v7525_v9, %v3122_v40  ;;  %7532 = vmatprep.subr.bf16.mxu1 %v8620_v52 }
 0x3ba   : > { %v9693_v22 = vsub.f32 %v3038_v47, %v3122_v40  ;;  %v9695_v44 = vsub.f32 %v3041_v58, %v3122_v40  ;;  %v9697_v48 = vsub.f32 %v7528_v5, %v3122_v40  ;;  %v9699_v6 = vsub.f32 %v7529_v17, %v3122_v40  ;;  %7533 = vmatpush3.bf16.msra.mxu1 %v8620_v52  ;;  %v8624_v5 = vld [vmem:[#allocation8 + $0x68] sm:$0xff]   ;;  %v9725_v40 = vld [vmem:[#allocation8] sm:$0xff]  }
 0x3bb   : > { %v3155_v59 = vmul.f32 %v9628_v49, %v9628_v49  ;;  %v3156_v57 = vmul.f32 %v9631_v32, %v9631_v32  ;;  %7534 = vmatprep.subr.bf16.mxu1 %v8621_v15  ;;  %v3157_v18 = vmul.f32 %v9634_v39, %v9634_v39  ;;  %v3158_v19 = vmul.f32 %v9637_v29, %v9637_v29 }
 0x3bc   : > { %v3159_v9 = vmul.f32 %v9640_v51, %v9640_v51  ;;  %v3160_v37 = vmul.f32 %v9643_v20, %v9643_v20  ;;  %v3161_v47 = vmul.f32 %v9646_v42, %v9646_v42  ;;  %v3162_v17 = vmul.f32 %v9649_v3, %v9649_v3  ;;  %10993 = vst [vmem:[#allocation13_spill] sm:$0xff] %v9725_v40 }
 0x3bd   : > { %v3187_v7 = vadd.f32 %v3156_v57, %v3155_v59  ;;  %v3163_v63 = vmul.f32 %v9651_v35, %v9651_v35  ;;  %v3164_v41 = vmul.f32 %v9653_v12, %v9653_v12  ;;  %v3165_v21 = vmul.f32 %v9656_v55, %v9656_v55 }
 0x3be   : > { %7535 = vmatpush3.bf16.msra.mxu1 %v8621_v15  ;;  %v3166_v2 = vmul.f32 %v9659_v16, %v9659_v16  ;;  %v3167_v60 = vmul.f32 %v9661_v54, %v9661_v54  ;;  %v3168_v15 = vmul.f32 %v9663_v25, %v9663_v25  ;;  %v3169_v57 = vmul.f32 %v9665_v11, %v9665_v11 }
 0x3bf   : > { %7536 = vmatprep.subr.bf16.mxu1 %v8622_v28  ;;  %v3188_v43 = vadd.f32 %v3187_v7, %v3157_v18  ;;  %v3170_v18 = vmul.f32 %v9667_v61, %v9667_v61 }
 0x3c1   : > { %v3189_v14 = vadd.f32 %v3188_v43, %v3158_v19  ;;  %v3171_v19 = vmul.f32 %v9669_v30, %v9669_v30 }
 0x3c2   : > { %7537 = vmatpush3.bf16.msra.mxu1 %v8622_v28 }
 0x3c3   : > { %7538 = vmatprep.subr.bf16.mxu1 %v8623_v38  ;;  %v3190_v50 = vadd.f32 %v3189_v14, %v3159_v9  ;;  %v3173_v14 = vmul.f32 %v9673_v27, %v9673_v27 }
 0x3c5   : > { %v3191_v4 = vadd.f32 %v3190_v50, %v3160_v37  ;;  %v3174_v50 = vmul.f32 %v9675_v8, %v9675_v8 }
 0x3c6   : > { %7539 = vmatpush3.bf16.msra.mxu1 %v8623_v38  ;;  %v3172_v38 = vmul.f32 %v9671_v13, %v9671_v13 }
 0x3c7   : > { %7540 = vmatprep.subr.bf16.mxu1 %v8624_v5  ;;  %v3192_v58 = vadd.f32 %v3191_v4, %v3161_v47  ;;  %v3176_v4 = vmul.f32 %v9679_v23, %v9679_v23 }
 0x3c9   : > { %v3193_v10 = vadd.f32 %v3192_v58, %v3162_v17  ;;  %v3177_v58 = vmul.f32 %v9681_v31, %v9681_v31 }
 0x3ca   : > { %7541 = vmatpush3.bf16.msra.mxu1 %v8624_v5 }
 0x3cb   : > { %7542 = vmatprep.subr.bf16.mxu1 %v8625_v34  ;;  %v3194_v53 = vadd.f32 %v3193_v10, %v3163_v63  ;;  %v3178_v63 = vmul.f32 %v9683_v46, %v9683_v46 }
 0x3cd   : > { %v3195_v56 = vadd.f32 %v3194_v53, %v3164_v41  ;;  %v3179_v41 = vmul.f32 %v9685_v62, %v9685_v62 }
 0x3ce   : > { %7543 = vmatpush3.bf16.msra.mxu1 %v8625_v34  ;;  %v3175_v34 = vmul.f32 %v9677_v33, %v9677_v33 }
 0x3cf   : > { %7544 = vmatprep.subr.bf16.mxu1 %v8626_v0  ;;  %v3196_v36 = vadd.f32 %v3195_v56, %v3165_v21  ;;  %v3180_v21 = vmul.f32 %v9687_v1, %v9687_v1 }
 0x3d1   : > { %v3197_v52 = vadd.f32 %v3196_v36, %v3166_v2  ;;  %v3181_v2 = vmul.f32 %v9689_v45, %v9689_v45 }
 0x3d2   : > { %7545 = vmatpush3.bf16.msra.mxu1 %v8626_v0 }
 0x3d3   : > { %7578 = vmatprep.subr.bf16.mxu1 %v9725_v40  ;;  %v3198_v59 = vadd.f32 %v3197_v52, %v3167_v60  ;;  %v3182_v60 = vmul.f32 %v9691_v26, %v9691_v26 }
 0x3d5   : > { %v3199_v28 = vadd.f32 %v3198_v59, %v3168_v15  ;;  %v3183_v15 = vmul.f32 %v9693_v22, %v9693_v22 }
 0x3d7   : > { %v3200_v7 = vadd.f32 %v3199_v28, %v3169_v57  ;;  %v3184_v57 = vmul.f32 %v9695_v44, %v9695_v44 }
 0x3d9   : > { %v3201_v43 = vadd.f32 %v3200_v7, %v3170_v18  ;;  %v3185_v18 = vmul.f32 %v9697_v48, %v9697_v48 }
 0x3db   : > { %v3202_v9 = vadd.f32 %v3201_v43, %v3171_v19  ;;  %v3186_v19 = vmul.f32 %v9699_v6, %v9699_v6 }
 0x3dd   : > { %v3203_v37 = vadd.f32 %v3202_v9, %v3172_v38 }
 0x3df   : > { %v3204_v5 = vadd.f32 %v3203_v37, %v3173_v14 }
 0x3e1   : > { %v3205_v47 = vadd.f32 %v3204_v5, %v3174_v50 }
 0x3e3   : > { %v3206_v17 = vadd.f32 %v3205_v47, %v3175_v34 }
 0x3e5   : > { %v3207_v0 = vadd.f32 %v3206_v17, %v3176_v4 }
 0x3e7   : > { %v3208_v10 = vadd.f32 %v3207_v0, %v3177_v58 }
 0x3e9   : > { %v3209_v53 = vadd.f32 %v3208_v10, %v3178_v63  ;;  %v9774_v63 = vstv %s3259_s22 }
 0x3eb   : > { %v3210_v56 = vadd.f32 %v3209_v53, %v3179_v41 }
 0x3ed   : > { %v3211_v36 = vadd.f32 %v3210_v56, %v3180_v21 }
 0x3ef   : > { %v3212_v52 = vadd.f32 %v3211_v36, %v3181_v2 }
 0x3f1   : > { %v3213_v59 = vadd.f32 %v3212_v52, %v3182_v60 }
 0x3f3   : > { %v3214_v28 = vadd.f32 %v3213_v59, %v3183_v15 }
 0x3f5   : > { %v3215_v7 = vadd.f32 %v3214_v28, %v3184_v57 }
 0x3f7   : > { %v3216_v43 = vadd.f32 %v3215_v7, %v3185_v18 }
 0x3f9   : > { %v3217_v38 = vadd.f32 %v3216_v43, %v3186_v19 }
 0x3fb   : > { %v3218_v9 = vrot.slane %v3217_v38, 4 }
 0x3fd   : > { %v3219_v14 = vadd.f32 %v3218_v9, %v3217_v38 }
 0x3ff   : > { %v3220_v37 = vrot.slane %v3219_v14, 2 }
 0x401   : > { %v3221_v50 = vadd.f32 %v3220_v37, %v3219_v14 }
 0x403   : > { %v3222_v5 = vrot.slane %v3221_v50, 1 }
 0x405   : > { %v3223_v34 = vadd.f32 %v3222_v5, %v3221_v50 }
 0x407   : > { %v3224_v47 = vmul.f32 0.00390625, %v3223_v34 }
 0x409   : > { %v3225_v4 = vadd.f32 1e-05, %v3224_v47 }
 0x40b   : > { %8691 = vrsqrt.f32 %v3225_v4 }
 0x415   : > { %v8692_v17 = vpop.eup %8691 }
 0x416   : > { %v9769_v58 = vmul.f32 %v8692_v17, %v9693_v22  ;;  %v9772_v0 = vmul.f32 %v8692_v17, %v9695_v44  ;;  %v9777_v10 = vmul.f32 %v8692_v17, %v9628_v49  ;;  %v9780_v41 = vmul.f32 %v8692_v17, %v9631_v32 }
 0x417   : > { %v9783_v53 = vmul.f32 %v8692_v17, %v9634_v39  ;;  %v9786_v21 = vmul.f32 %v8692_v17, %v9637_v29  ;;  %v9789_v22 = vmul.f32 %v8692_v17, %v9640_v51  ;;  %v9792_v44 = vmul.f32 %v8692_v17, %v9643_v20 }
 0x418   : > { %10994 = vst [vmem:[#allocation14_spill] sm:$0xff] %v9769_v58  ;;  %10995 = vst [vmem:[#allocation15_spill] sm:$0xff] %v9772_v0  ;;  %v9796_v56 = vmul.f32 %v9774_v63, %v9769_v58  ;;  %v9800_v49 = vmul.f32 %v9774_v63, %v9772_v0  ;;  %v9803_v32 = vmul.f32 %v8692_v17, %v9646_v42  ;;  %vm3260_vm5 = vcmp.ge.f32.partialorder %v9777_v10, 0.0 }
 0x419   : > { %v9806_v39 = vmul.f32 %v8692_v17, %v9649_v3  ;;  %v9809_v29 = vmul.f32 %v8692_v17, %v9651_v35  ;;  %v9812_v51 = vmul.f32 %v8692_v17, %v9653_v12  ;;  %v9815_v20 = vmul.f32 %v8692_v17, %v9656_v55 }
 0x41a   : > { %10996 = vst [vmem:[#allocation16_spill] sm:$0xff] %v9796_v56  ;;  %10997 = vst [vmem:[#allocation17_spill] sm:$0xff] %v9800_v49  ;;  %v9818_v2 = vmul.f32 %v8692_v17, %v9659_v16  ;;  %v9821_v36 = vmul.f32 %v8692_v17, %v9661_v54  ;;  %v9824_v42 = vmul.f32 %v8692_v17, %v9663_v25  ;;  %vm3261_vm6 = vcmp.ge.f32.partialorder %v9780_v41, 0.0 }
 0x41b   : > { %v9827_v3 = vmul.f32 %v8692_v17, %v9665_v11  ;;  %v9830_v35 = vmul.f32 %v8692_v17, %v9667_v61  ;;  %v9833_v12 = vmul.f32 %v8692_v17, %v9669_v30  ;;  %v9836_v55 = vmul.f32 %v8692_v17, %v9671_v13 }
 0x41c   : > { %v9839_v16 = vmul.f32 %v8692_v17, %v9673_v27  ;;  %v9842_v54 = vmul.f32 %v8692_v17, %v9675_v8  ;;  %v9845_v25 = vmul.f32 %v8692_v17, %v9677_v33  ;;  %v9848_v11 = vmul.f32 %v8692_v17, %v9679_v23 }
 0x41d   : > { %v9851_v61 = vmul.f32 %v8692_v17, %v9681_v31  ;;  %v9854_v30 = vmul.f32 %v8692_v17, %v9697_v48  ;;  %v9857_v13 = vmul.f32 %v8692_v17, %v9683_v46  ;;  %v9860_v27 = vmul.f32 %v8692_v17, %v9685_v62 }
 0x41e   : > { %v9863_v8 = vmul.f32 %v8692_v17, %v9687_v1  ;;  %v9866_v33 = vmul.f32 %v8692_v17, %v9699_v6  ;;  %v9869_v23 = vmul.f32 %v8692_v17, %v9689_v45  ;;  %v9872_v31 = vmul.f32 %v8692_v17, %v9691_v26 }
 0x41f   : > { %vm3262_vm7 = vcmp.ge.f32.partialorder %v9783_v53, 0.0  ;;  %vm3263_vm8 = vcmp.ge.f32.partialorder %v9786_v21, 0.0  ;;  %vm3264_vm9 = vcmp.ge.f32.partialorder %v9789_v22, 0.0  ;;  %vm3265_vm10 = vcmp.ge.f32.partialorder %v9792_v44, 0.0 }
 0x420   : > { %vm3266_vm11 = vcmp.ge.f32.partialorder %v9803_v32, 0.0  ;;  %vm3267_vm12 = vcmp.ge.f32.partialorder %v9806_v39, 0.0  ;;  %vm3268_vm13 = vcmp.ge.f32.partialorder %v9809_v29, 0.0  ;;  %v3323_v46 = vmul.f32 %v9774_v63, %v9854_v30 }
 0x421   : > { %vm3290_vm0 = vcmp.ge.f32.partialorder %v9854_v30, 0.0  ;;  %vm3291_vm1 = vcmp.ge.f32.partialorder %v9866_v33, 0.0  ;;  %v3293_v62 = vmul.f32 %v9774_v63, %v9777_v10  ;;  %v3324_v1 = vmul.f32 %v9774_v63, %v9866_v33 }
 0x422   : > { %v3294_v45 = vmul.f32 %v9774_v63, %v9780_v41  ;;  %v3295_v26 = vmul.f32 %v9774_v63, %v9783_v53  ;;  %v3296_v48 = vmul.f32 %v9774_v63, %v9786_v21  ;;  %v3297_v6 = vmul.f32 %v9774_v63, %v9789_v22 }
 0x423   : > { %v3298_v60 = vmul.f32 %v9774_v63, %v9792_v44  ;;  %v3299_v52 = vmul.f32 %v9774_v63, %v9803_v32  ;;  %v3300_v15 = vmul.f32 %v9774_v63, %v9806_v39  ;;  %v3301_v59 = vmul.f32 %v9774_v63, %v9809_v29 }
 0x424   : > { %vm3278_vm15 = vcmp.ge.f32.partialorder %v9839_v16, 0.0  ;;  %v3302_v57 = vmul.f32 %v9774_v63, %v9812_v51  ;;  %v3303_v28 = vmul.f32 %v9774_v63, %v9815_v20  ;;  %v3304_v18 = vmul.f32 %v9774_v63, %v9818_v2 }
 0x425   : > { %v3305_v7 = vmul.f32 %v9774_v63, %v9821_v36  ;;  %v3306_v19 = vmul.f32 %v9774_v63, %v9824_v42  ;;  %v3307_v43 = vmul.f32 %v9774_v63, %v9827_v3  ;;  %v3308_v38 = vmul.f32 %v9774_v63, %v9830_v35 }
 0x426   : > { %v3309_v9 = vmul.f32 %v9774_v63, %v9833_v12  ;;  %vm3283_vm4 = vcmp.ge.f32.partialorder %v9857_v13, 0.0  ;;  %v3310_v14 = vmul.f32 %v9774_v63, %v9836_v55  ;;  %v3311_v37 = vmul.f32 %v9774_v63, %v9839_v16 }
 0x427   : > { %v3327_v50 = vsel %vm3262_vm7, %v9783_v53, %v3295_v26  ;;  %v3328_v5 = vsel %vm3263_vm8, %v9786_v21, %v3296_v48  ;;  %vm3284_vm14 = vcmp.ge.f32.partialorder %v9860_v27, 0.0  ;;  %vm3285_vm3 = vcmp.ge.f32.partialorder %v9863_v8, 0.0 }
 0x428   : > { %v3312_v34 = vmul.f32 %v9774_v63, %v9842_v54  ;;  %v3313_v47 = vmul.f32 %v9774_v63, %v9845_v25  ;;  %v3314_v4 = vmul.f32 %v9774_v63, %v9848_v11  ;;  %v3315_v17 = vmul.f32 %v9774_v63, %v9851_v61 }
 0x429   : > { %vm3286_vm7 = vcmp.ge.f32.partialorder %v9869_v23, 0.0  ;;  %vm3287_vm8 = vcmp.ge.f32.partialorder %v9872_v31, 0.0  ;;  %v3316_v53 = vmul.f32 %v9774_v63, %v9857_v13  ;;  %v3317_v21 = vmul.f32 %v9774_v63, %v9860_v27 }
 0x42a   : > { %v3355_v26 = vsel %vm3290_vm0, %v9854_v30, %v3323_v46  ;;  %v3356_v48 = vsel %vm3291_vm1, %v9866_v33, %v3324_v1  ;;  %v3318_v49 = vmul.f32 %v9774_v63, %v9863_v8  ;;  %v3325_v56 = vsel %vm3260_vm5, %v9777_v10, %v3293_v62 }
 0x42b   : > { %v3326_v0 = vsel %vm3261_vm6, %v9780_v41, %v3294_v45  ;;  %v3358_v58 = vpack.c.bf16 %v3328_v5, %v3327_v50  ;;  %v3319_v40 = vmul.f32 %v9774_v63, %v9869_v23  ;;  %v3320_v30 = vmul.f32 %v9774_v63, %v9872_v31 }
 0x42c   : > { %v3329_v33 = vsel %vm3264_vm9, %v9789_v22, %v3297_v6  ;;  %v3330_v46 = vsel %vm3265_vm10, %v9792_v44, %v3298_v60  ;;  %v3331_v10 = vsel %vm3266_vm11, %v9803_v32, %v3299_v52  ;;  %v3332_v41 = vsel %vm3267_vm12, %v9806_v39, %v3300_v15 }
 0x42d   : > { %v3333_v63 = vsel %vm3268_vm13, %v9809_v29, %v3301_v59  ;;  %vm10998_vm5 = vcmp.ge.f32.partialorder %v9812_v51, 0.0  ;;  %vm10999_vm6 = vcmp.ge.f32.partialorder %v9815_v20, 0.0  ;;  %v3357_v62 = vpack.c.bf16 %v3326_v0, %v3325_v56 }
 0x42e   : > { %v3334_v22 = vsel %vm10998_vm5, %v9812_v51, %v3302_v57  ;;  %v3335_v44 = vsel %vm10999_vm6, %v9815_v20, %v3303_v28  ;;  %v10003_v1 = vpack.c.bf16 %v3356_v48, %v3355_v26  ;;  %v3374_v32 = vshrl.u32 %v3358_v58, 16 }
 0x42f   : > { %vm11000_vm9 = vcmp.ge.f32.partialorder %v9818_v2, 0.0  ;;  %vm11001_vm10 = vcmp.ge.f32.partialorder %v9821_v36, 0.0  ;;  %vm11002_vm11 = vcmp.ge.f32.partialorder %v9824_v42, 0.0  ;;  %v3359_v45 = vpack.c.bf16 %v3330_v46, %v3329_v33 }
 0x430   : > { %v3336_v39 = vsel %vm11000_vm9, %v9818_v2, %v3304_v18  ;;  %v3337_v29 = vsel %vm11001_vm10, %v9821_v36, %v3305_v7  ;;  %v3338_v51 = vsel %vm11002_vm11, %v9824_v42, %v3306_v19  ;;  %vm11003_vm12 = vcmp.ge.f32.partialorder %v9827_v3, 0.0 }
 0x431   : > { %v3339_v0 = vsel %vm11003_vm12, %v9827_v3, %v3307_v43  ;;  %vm11004_vm13 = vcmp.ge.f32.partialorder %v9830_v35, 0.0  ;;  %vm11005_vm0 = vcmp.ge.f32.partialorder %v9833_v12, 0.0  ;;  %v3360_v2 = vpack.c.bf16 %v3332_v41, %v3331_v10 }
 0x432   : > { %v3340_v56 = vsel %vm11004_vm13, %v9830_v35, %v3308_v38  ;;  %v3341_v20 = vsel %vm11005_vm0, %v9833_v12, %v3309_v9  ;;  %vm11006_vm1 = vcmp.ge.f32.partialorder %v9836_v55, 0.0  ;;  %v10029_v42 = vsel %vm3278_vm15, %v9839_v16, %v3311_v37 }
 0x433   : > { %v3342_v36 = vsel %vm11006_vm1, %v9836_v55, %v3310_v14  ;;  %vm11007_vm5 = vcmp.ge.f32.partialorder %v9842_v54, 0.0  ;;  %vm11008_vm6 = vcmp.ge.f32.partialorder %v9845_v25, 0.0  ;;  %vm11009_vm9 = vcmp.ge.f32.partialorder %v9848_v11, 0.0 }
 0x434   : > { %v10034_v3 = vsel %vm11007_vm5, %v9842_v54, %v3312_v34  ;;  %v10039_v35 = vsel %vm11008_vm6, %v9845_v25, %v3313_v47  ;;  %v10044_v12 = vsel %vm11009_vm9, %v9848_v11, %v3314_v4  ;;  %v3377_v55 = vshrl.u32 %v3357_v62, 16 }
 0x435   : > { %v3437_v6 = vrot.slane %v3374_v32, 7  ;;  %v3438_v60 = vshll.u32 %v3358_v58, 16  ;;  %vm11010_vm15 = vcmp.ge.f32.partialorder %v9851_v61, 0.0  ;;  %v10054_v54 = vsel %vm3283_vm4, %v9857_v13, %v3316_v53 }
 0x436   : > { %v10049_v16 = vsel %vm11010_vm15, %v9851_v61, %v3315_v17  ;;  %v3380_v25 = vshrl.u32 %v3359_v45, 16  ;;  %v3442_v52 = vshll.u32 %v3357_v62, 16  ;;  %v10059_v11 = vsel %vm3284_vm14, %v9860_v27, %v3317_v21 }
 0x437   : > { %v10064_v58 = vsel %vm3285_vm3, %v9863_v8, %v3318_v49  ;;  %v3383_v15 = vshrl.u32 %v3360_v2, 16  ;;  %v3440_v61 = vor.u32 %v3438_v60, %v3437_v6  ;;  %v10069_v59 = vsel %vm3286_vm7, %v9869_v23, %v3319_v40 }
 0x438   : > { %v10074_v13 = vsel %vm3287_vm8, %v9872_v31, %v3320_v30  ;;  %v10076_v57 = vpack.c.bf16 %v3334_v22, %v3333_v63  ;;  %v10078_v27 = vpack.c.bf16 %v3336_v39, %v3335_v44  ;;  %v10080_v28 = vpack.c.bf16 %v3338_v51, %v3337_v29 }
 0x439   : > { %v3533_v49 = vrot.slane %v3438_v60, 7  ;;  %v10084_v8 = vsel %vm9121_vm2, %v3374_v32, %v3440_v61  ;;  %v3441_v18 = vrot.slane %v3377_v55, 7  ;;  %v3446_v7 = vshll.u32 %v3359_v45, 16 }
 0x43a   : > { %v3616_v40 = vshll.u32 %v10084_v8, 16  ;;  %v3534_v23 = vrot.slane %v3442_v52, 7  ;;  %v3445_v19 = vrot.slane %v3380_v25, 7  ;;  %v3614_v43 = vshrl.u32 %v10084_v8, 16 }
 0x43b   : > { %v10089_v31 = vsel %vm9121_vm2, %v3437_v6, %v3533_v49  ;;  %v3444_v38 = vor.u32 %v3442_v52, %v3441_v18  ;;  %v3449_v9 = vrot.slane %v3383_v15, 7  ;;  %v10097_v34 = vpack.c.bf16 %v3340_v56, %v3339_v0  ;;  %v8628_v6 = vld [vmem:[#allocation8 + $0x8] sm:$0xff]  }
 0x43c   : > { %v3618_v14 = vrot.slane %v3616_v40, 1  ;;  %v3621_v37 = vshll.u32 %v10089_v31, 16  ;;  %v10095_v50 = vsel %vm9121_vm2, %v3441_v18, %v3534_v23  ;;  %v3448_v5 = vor.u32 %v3446_v7, %v3445_v19  ;;  %v11013_v18 = vld [vmem:[#allocation13_spill] sm:$0xff]  ;;  %v11014_v23 = vld [vmem:[#allocation14_spill] sm:$0xff] }
 0x43d   : > { %v3386_v47 = vshrl.u32 %v10076_v57, 16  ;;  %v3450_v4 = vshll.u32 %v3360_v2, 16  ;;  %v10102_v17 = vsel %vm9121_vm2, %v3377_v55, %v3444_v38  ;;  %v3633_v48 = vshll.u32 %v10095_v50, 16  ;;  %v8629_v38 = vld [vmem:[#allocation8 + $0x10] sm:$0xff]  }
 0x43e   : > { %v3619_v53 = vor.u32 %v3618_v14, %v3614_v43  ;;  %v3623_v21 = vrot.slane %v3621_v37, 1  ;;  %v3628_v26 = vshll.u32 %v10102_v17, 16  ;;  %v3389_v30 = vshrl.u32 %v10078_v27, 16 }
 0x43f   : > { %v3535_v33 = vrot.slane %v3446_v7, 7  ;;  %v10109_v46 = vsel %vm9121_vm2, %v3380_v25, %v3448_v5  ;;  %v3452_v10 = vor.u32 %v3450_v4, %v3449_v9  ;;  %vm11011_vm3 = vsmask.f32 7424 }
 0x440   : > { %v10112_v41 = vsel %vm11011_vm3, %v3619_v53, %v3623_v21  ;;  %v3626_v63 = vshrl.u32 %v10102_v17, 16  ;;  %v3630_v22 = vrot.slane %v3628_v26, 1  ;;  %v3640_v44 = vshll.u32 %v10109_v46, 16  ;;  %vm11012_vm4 = vmmov %vm11011_vm3 }
 0x441   : > { %v3454_v62 = vshll.u32 %v10076_v57, 16  ;;  %7546 = vmatprep.mubr.bf16.mxu1 %v10112_v41  ;;  %v3536_v32 = vrot.slane %v3450_v4, 7  ;;  %v10120_v39 = vsel %vm9121_vm2, %v3383_v15, %v3452_v10  ;;  %v3453_v29 = vrot.slane %v3386_v47, 7  ;;  %vm11016_vm8 = vmmov %vm11011_vm3 }
 0x442   : > { %v10122_v51 = vpack.c.bf16 %v3342_v36, %v3341_v20  ;;  %v3631_v45 = vor.u32 %v3630_v22, %v3626_v63  ;;  %v3635_v0 = vrot.slane %v3633_v48, 1  ;;  %v3652_v56 = vshll.u32 %v10120_v39, 16  ;;  %vm11017_vm10 = vmmov %vm11011_vm3 }
 0x443   : > { %v3458_v2 = vshll.u32 %v10078_v27, 16  ;;  %v10128_v55 = vsel %vm9121_vm2, %v3445_v19, %v3535_v33  ;;  %v3456_v60 = vor.u32 %v3454_v62, %v3453_v29  ;;  %v3457_v25 = vrot.slane %v3389_v30, 7  ;;  %v11015_v19 = vld [vmem:[#allocation15_spill] sm:$0xff]  ;;  %vm11020_vm11 = vmmov %vm11011_vm3 }
 0x444   : > { %v10132_v52 = vpack.c.bf16 %v10034_v3, %v10029_v42  ;;  %v10135_v20 = vsel %vm11012_vm4, %v3631_v45, %v3635_v0  ;;  %v3642_v36 = vrot.slane %v3640_v44, 1  ;;  %v10139_v15 = vsel %vm9121_vm2, %v3449_v9, %v3536_v32  ;;  %vm11021_vm12 = vmmov %vm11011_vm3 }
 0x445   : > { %v3392_v61 = vshrl.u32 %v10080_v28, 16  ;;  %7547 = vmatmul.mubr.bf16.vlgmr.msra.gmra.mrb[0].mxu1 %v10135_v20  ;;  %v3654_v57 = vrot.slane %v3652_v56, 1  ;;  %v10145_v27 = vsel %vm9121_vm2, %v3386_v47, %v3456_v60  ;;  %v3460_v49 = vor.u32 %v3458_v2, %v3457_v25  ;;  %vm11022_vm13 = vmmov %vm11011_vm3 }
 0x446   : > { %v10149_v42 = vpack.c.bf16 %v10044_v12, %v10039_v35  ;;  %v3395_v3 = vshrl.u32 %v10097_v34, 16  ;;  %7550 = vmatprep.mubr.bf16.mxu1 %v10112_v41  ;;  %7579 = vmatpush3.bf16.msra.mxu1 %v11013_v18  ;;  %v3638_v7 = vshrl.u32 %v10109_v46, 16  ;;  %v3645_v40 = vshll.u32 %v10128_v55, 16  ;;  %v8631_v18 = vld [vmem:[#allocation8 + $0x20] sm:$0xff]   ;;  %vm11023_vm0 = vmmov %vm11011_vm3 }
 0x447   : > { %vm3288_vm14 = vcmp.ge.f32.partialorder %v11014_v23, 0.0  ;;  %vm3289_vm7 = vcmp.ge.f32.partialorder %v11015_v19, 0.0  ;;  %7580 = vmatprep.subr.bf16.mxu1 %v8628_v6  ;;  %v3650_v43 = vshrl.u32 %v10120_v39, 16  ;;  %v3657_v35 = vshll.u32 %v10139_v15, 16  ;;  %vm11024_vm1 = vmmov %vm11023_vm0 }
 0x448   : > { %v3537_v12 = vrot.slane %v3454_v62, 7  ;;  %v10162_v9 = vsel %vm9121_vm2, %v3389_v30, %v3460_v49  ;;  %v3398_v14 = vshrl.u32 %v10122_v51, 16  ;;  %v3643_v37 = vor.u32 %v3642_v36, %v3638_v7  ;;  %v8630_v62 = vld [vmem:[#allocation8 + $0x18] sm:$0xff]   ;;  %vm11025_vm5 = vmmov %vm11023_vm0 }
 0x449   : > { %v3664_v5 = vshll.u32 %v10145_v27, 16  ;;  %v3538_v47 = vrot.slane %v3458_v2, 7  ;;  %v3462_v4 = vshll.u32 %v10080_v28, 16  ;;  %v3655_v53 = vor.u32 %v3654_v57, %v3650_v43  ;;  %vm11026_vm6 = vmmov %vm11023_vm0 }
 0x44a   : > { %v3676_v21 = vshll.u32 %v10162_v9, 16  ;;  %v3461_v26 = vrot.slane %v3392_v61, 7  ;;  %v10170_v48 = vpack.c.bf16 %v10054_v54, %v10049_v16  ;;  %v3466_v33 = vshll.u32 %v10097_v34, 16  ;;  %7581 = vmatpush3.bf16.msra.mxu1 %v8628_v6  ;;  %vm11027_vm9 = vmmov %vm11023_vm0 }
 0x44b   : > { %v3647_v30 = vrot.slane %v3645_v40, 1  ;;  %v3465_v10 = vrot.slane %v3395_v3, 7  ;;  %v3401_v63 = vshrl.u32 %v10132_v52, 16  ;;  %v3659_v22 = vrot.slane %v3657_v35, 1  ;;  %7582 = vmatprep.subr.bf16.mxu1 %v8629_v38  ;;  %vm11028_vm15 = vmmov %vm11023_vm0 }
 0x44c   : > { %v10176_v44 = vsel %vm9121_vm2, %v3453_v29, %v3537_v12  ;;  %v3464_v28 = vor.u32 %v3462_v4, %v3461_v26  ;;  %v3666_v16 = vrot.slane %v3664_v5, 1  ;;  %v10183_v54 = vsel %vm9121_vm2, %v3457_v25, %v3538_v47  ;;  %v11018_v47 = vld [vmem:[#allocation16_spill] sm:$0xff]  ;;  %vm11029_vm3 = vmmov %vm11023_vm0 }
 0x44d   : > { %v10179_v32 = vsel %vm11016_vm8, %v3643_v37, %v3647_v30  ;;  %v3468_v34 = vor.u32 %v3466_v33, %v3465_v10  ;;  %v10187_v45 = vsel %vm11017_vm10, %v3655_v53, %v3659_v22  ;;  %v3678_v0 = vrot.slane %v3676_v21, 1  ;;  %vm11030_vm4 = vmmov %vm11023_vm0 }
 0x44e   : > { %7551 = vmatmul.mubr.bf16.gmra.mrb[4].mxu1 %v10179_v32  ;;  %v10191_v29 = vsel %vm9121_vm2, %v3392_v61, %v3464_v28  ;;  %v10195_v56 = vrot.slane %v3398_v14, 7  ;;  %v3404_v2 = vshrl.u32 %v10149_v42, 16  ;;  %v3470_v6 = vshll.u32 %v10122_v51, 16  ;;  %v8632_v28 = vld [vmem:[#allocation8 + $0x28] sm:$0xff]  }
 0x44f   : > { %7554 = vmatprep.mubr.bf16.mxu1 %v10187_v45  ;;  %v3662_v60 = vshrl.u32 %v10145_v27, 16  ;;  %v3669_v25 = vshll.u32 %v10176_v44, 16  ;;  %7583 = vmatpush3.bf16.msra.mxu1 %v8629_v38  ;;  %v3674_v36 = vshrl.u32 %v10162_v9, 16  ;;  %v3681_v61 = vshll.u32 %v10183_v54, 16 }
 0x450   : > { %v3539_v57 = vrot.slane %v3462_v4, 7  ;;  %7584 = vmatprep.subr.bf16.mxu1 %v8630_v62  ;;  %v10206_v49 = vsel %vm9121_vm2, %v3395_v3, %v3468_v34  ;;  %v3474_v7 = vshll.u32 %v10132_v52, 16  ;;  %v3688_v43 = vshll.u32 %v10191_v29, 16  ;;  %v11019_v3 = vld [vmem:[#allocation17_spill] sm:$0xff] }
 0x451   : > { %v3667_v40 = vor.u32 %v3666_v16, %v3662_v60  ;;  %v3540_v35 = vrot.slane %v3466_v33, 7  ;;  %v3679_v12 = vor.u32 %v3678_v0, %v3674_v36  ;;  %v3700_v38 = vshll.u32 %v10206_v49, 16 }
 0x452   : > { %v3472_v37 = vor.u32 %v3470_v6, %v10195_v56  ;;  %v3473_v5 = vrot.slane %v3401_v63, 7  ;;  %v3353_v4 = vsel %vm3288_vm14, %v11014_v23, %v11018_v47  ;;  %v3354_v52 = vsel %vm3289_vm7, %v11015_v19, %v11019_v3 }
 0x453   : > { %v10222_v53 = vpack.c.bf16 %v10064_v58, %v10059_v11  ;;  %v3671_v21 = vrot.slane %v3669_v25, 1  ;;  %7585 = vmatpush3.bf16.msra.mxu1 %v8630_v62  ;;  %v3407_v33 = vshrl.u32 %v10170_v48, 16  ;;  %v3683_v30 = vrot.slane %v3681_v61, 1  ;;  %v8633_v61 = vld [vmem:[#allocation8 + $0x30] sm:$0xff]  }
 0x454   : > { %v10227_v22 = vsel %vm9121_vm2, %v3461_v26, %v3539_v57  ;;  %7586 = vmatprep.subr.bf16.mxu1 %v8631_v18  ;;  %v3476_v23 = vor.u32 %v3474_v7, %v3473_v5  ;;  %v10231_v16 = vpack.c.bf16 %v10074_v13, %v10069_v59  ;;  %v3690_v11 = vrot.slane %v3688_v43, 1 }
 0x455   : > { %v10234_v19 = vsel %vm11020_vm11, %v3667_v40, %v3671_v21  ;;  %v10238_v58 = vsel %vm9121_vm2, %v3465_v10, %v3540_v35  ;;  %v10242_v26 = vsel %vm11021_vm12, %v3679_v12, %v3683_v30  ;;  %v3702_v62 = vrot.slane %v3700_v38, 1 }
 0x456   : > { %7555 = vmatmul.mubr.bf16.gmra.mrb[8].mxu1 %v10234_v19  ;;  %v10248_v59 = vsel %vm9121_vm2, %v3398_v14, %v3472_v37  ;;  %v10252_v13 = vrot.slane %v3404_v2, 7  ;;  %v3478_v34 = vshll.u32 %v10149_v42, 16  ;;  %v3686_v10 = vshrl.u32 %v10191_v29, 16 }
 0x457   : > { %7558 = vmatprep.mubr.bf16.mxu1 %v10242_v26  ;;  %v3693_v0 = vshll.u32 %v10227_v22, 16  ;;  %v10260_v60 = vsel %vm9121_vm2, %v3401_v63, %v3476_v23  ;;  %7587 = vmatpush3.bf16.msra.mxu1 %v8631_v18  ;;  %v3698_v51 = vshrl.u32 %v10206_v49, 16  ;;  %v3705_v14 = vshll.u32 %v10238_v58, 16 }
 0x458   : > { %v3541_v25 = vrot.slane %v3470_v6, 7  ;;  %7588 = vmatprep.subr.bf16.mxu1 %v8632_v28  ;;  %v3481_v36 = vrot.slane %v3407_v33, 7  ;;  %v3482_v57 = vshll.u32 %v10170_v48, 16  ;;  %v3691_v40 = vor.u32 %v3690_v11, %v3686_v10 }
 0x459   : > { %v3712_v43 = vshll.u32 %v10248_v59, 16  ;;  %v3542_v35 = vrot.slane %v3474_v7, 7  ;;  %v3410_v12 = vshrl.u32 %v10222_v53, 16  ;;  %v3703_v38 = vor.u32 %v3702_v62, %v3698_v51  ;;  %v8634_v7 = vld [vmem:[#allocation8 + $0x38] sm:$0xff]  }
 0x45a   : > { %v3724_v63 = vshll.u32 %v10260_v60, 16  ;;  %v3480_v18 = vor.u32 %v3478_v34, %v10252_v13  ;;  %v3413_v37 = vshrl.u32 %v10231_v16, 16  ;;  %v3695_v47 = vrot.slane %v3693_v0, 1 }
 0x45b   : > { %v3484_v6 = vor.u32 %v3482_v57, %v3481_v36  ;;  %7589 = vmatpush3.bf16.msra.mxu1 %v8632_v28  ;;  %v3707_v3 = vrot.slane %v3705_v14, 1  ;;  %v10273_v48 = vsel %vm9121_vm2, %v10195_v56, %v3541_v25  ;;  %v10275_v21 = vpack.c.bf16 %v3354_v52, %v3353_v4  ;;  %v10304_v25 = vld [vmem:[#allocation8 + $0x80] sm:$0xff]  }
 0x45c   : > { %7590 = vmatprep.subr.bf16.mxu1 %v8633_v61  ;;  %v10278_v30 = vsel %vm11022_vm13, %v3691_v40, %v3695_v47  ;;  %v3714_v23 = vrot.slane %v3712_v43, 1  ;;  %v10282_v11 = vsel %vm9121_vm2, %v3473_v5, %v3542_v35  ;;  %v3726_v62 = vrot.slane %v3724_v63, 1 }
 0x45d   : > { %v10286_v28 = vsel %vm11023_vm0, %v3703_v38, %v3707_v3  ;;  %v10292_v56 = vsel %vm9121_vm2, %v3404_v2, %v3480_v18  ;;  %v3485_v4 = vrot.slane %v3410_v12, 7  ;;  %v3710_v52 = vshrl.u32 %v10248_v59, 16 }
 0x45e   : > { %7559 = vmatmul.mubr.bf16.gmra.mrb[12].mxu1 %v10278_v30  ;;  %v3717_v5 = vshll.u32 %v10273_v48, 16  ;;  %v10299_v10 = vsel %vm9121_vm2, %v3407_v33, %v3484_v6  ;;  %v3489_v0 = vrot.slane %v3413_v37, 7  ;;  %v3486_v51 = vshll.u32 %v10222_v53, 16 }
 0x45f   : > { %7562 = vmatprep.mubr.bf16.mxu1 %v10286_v28  ;;  %7591 = vmatpush3.bf16.msra.mxu1 %v8633_v61  ;;  %v3722_v42 = vshrl.u32 %v10260_v60, 16  ;;  %v3729_v2 = vshll.u32 %v10282_v11, 16  ;;  %v3543_v14 = vrot.slane %v3478_v34, 7  ;;  %v3490_v40 = vshll.u32 %v10231_v16, 16 }
 0x460   : > { %7592 = vmatprep.subr.bf16.mxu1 %v8634_v7  ;;  %v3715_v43 = vor.u32 %v3714_v23, %v3710_v52  ;;  %v3736_v35 = vshll.u32 %v10292_v56, 16  ;;  %v3544_v38 = vrot.slane %v3482_v57, 7  ;;  %v3416_v33 = vshrl.u32 %v10275_v21, 16 }
 0x461   : > { %v3727_v63 = vor.u32 %v3726_v62, %v3722_v42  ;;  %v3748_v61 = vshll.u32 %v10299_v10, 16  ;;  %v3488_v53 = vor.u32 %v3486_v51, %v3485_v4  ;;  %v3719_v18 = vrot.slane %v3717_v5, 1 }
 0x462   : > { %v3492_v47 = vor.u32 %v3490_v40, %v3489_v0  ;;  %v3731_v6 = vrot.slane %v3729_v2, 1  ;;  %v10313_v34 = vsel %vm9121_vm2, %v10252_v13, %v3543_v14  ;;  %v3738_v57 = vrot.slane %v3736_v35, 1 }
 0x463   : > { %7593 = vmatpush3.bf16.msra.mxu1 %v8634_v7  ;;  %v10317_v16 = vsel %vm11024_vm1, %v3715_v43, %v3719_v18  ;;  %v10321_v3 = vsel %vm9121_vm2, %v3481_v36, %v3544_v38  ;;  %v3493_v23 = vrot.slane %v3416_v33, 7  ;;  %v3750_v62 = vrot.slane %v3748_v61, 1 }
 0x464   : > { %7626 = vmatprep.subr.bf16.mxu1 %v10304_v25  ;;  %v10325_v7 = vsel %vm11025_vm5, %v3727_v63, %v3731_v6  ;;  %v10329_v13 = vsel %vm9121_vm2, %v3410_v12, %v3488_v53  ;;  %v3734_v52 = vshrl.u32 %v10292_v56, 16  ;;  %v3741_v5 = vshll.u32 %v10313_v34, 16 }
 0x465   : > { %v10336_v36 = vsel %vm9121_vm2, %v3413_v37, %v3492_v47  ;;  %v3494_v42 = vshll.u32 %v10275_v21, 16  ;;  %v3746_v2 = vshrl.u32 %v10299_v10, 16  ;;  %v3753_v14 = vshll.u32 %v10321_v3, 16 }
 0x466   : > { %7563 = vmatmul.mubr.bf16.gmra.mrb[16].mxu1 %v10317_v16  ;;  %v3545_v43 = vrot.slane %v3486_v51, 7  ;;  %v3739_v35 = vor.u32 %v3738_v57, %v3734_v52  ;;  %v3760_v12 = vshll.u32 %v10329_v13, 16  ;;  %v3546_v38 = vrot.slane %v3490_v40, 7 }
 0x467   : > { %7566 = vmatprep.mubr.bf16.mxu1 %v10325_v7  ;;  %v3496_v63 = vor.u32 %v3494_v42, %v3493_v23  ;;  %v3751_v61 = vor.u32 %v3750_v62, %v3746_v2  ;;  %v3772_v53 = vshll.u32 %v10336_v36, 16  ;;  %v3743_v18 = vrot.slane %v3741_v5, 1 }
 0x468   : > { %v3755_v6 = vrot.slane %v3753_v14, 1  ;;  %v10345_v37 = vsel %vm9121_vm2, %v3485_v4, %v3545_v43  ;;  %v3762_v47 = vrot.slane %v3760_v12, 1  ;;  %v10352_v51 = vsel %vm9121_vm2, %v3489_v0, %v3546_v38 }
 0x469   : > { %v10348_v21 = vsel %vm11026_vm6, %v3739_v35, %v3743_v18  ;;  %v10356_v40 = vsel %vm9121_vm2, %v3416_v33, %v3496_v63  ;;  %v3774_v62 = vrot.slane %v3772_v53, 1  ;;  %v3758_v4 = vshrl.u32 %v10329_v13, 16 }
 0x46a   : > { %v10360_v57 = vsel %vm11027_vm9, %v3751_v61, %v3755_v6  ;;  %v3765_v52 = vshll.u32 %v10345_v37, 16  ;;  %v3547_v5 = vrot.slane %v3494_v42, 7  ;;  %v3770_v0 = vshrl.u32 %v10336_v36, 16 }
 0x46b   : > { %v3777_v2 = vshll.u32 %v10352_v51, 16  ;;  %v3763_v14 = vor.u32 %v3762_v47, %v3758_v4  ;;  %v3784_v33 = vshll.u32 %v10356_v40, 16  ;;  %v3782_v53 = vshrl.u32 %v10356_v40, 16  ;;  %v8637_v4 = vld [vmem:[#allocation8 + $0x90] sm:$0xff]  }
 0x46c   : > { %v3775_v43 = vor.u32 %v3774_v62, %v3770_v0  ;;  %v3767_v35 = vrot.slane %v3765_v52, 1  ;;  %v10370_v38 = vsel %vm9121_vm2, %v3493_v23, %v3547_v5  ;;  %v8636_v62 = vld [vmem:[#allocation8 + $0x88] sm:$0xff]   ;;  %v8638_v52 = vld [vmem:[#allocation8 + $0x98] sm:$0xff]   ;;  %v8639_v5 = vld [vmem:[#allocation8 + $0xa0] sm:$0xff]   ;;  %vm11031_vm14 = vcmask 1046528  }
 0x46d   : > { %v3779_v12 = vrot.slane %v3777_v2, 1  ;;  %v3786_v61 = vrot.slane %v3784_v33, 1  ;;  %v3789_v18 = vshll.u32 %v10370_v38, 16  ;;  %v8640_v0 = vld [vmem:[#allocation8 + $0xa8] sm:$0xff]   ;;  %v8642_v2 = vld [vmem:[#allocation8 + $0xb8] sm:$0xff]   ;;  %v4273_v33 = vrot.slane %v10084_v8, 1  ;;  %vm11032_vm7 = vmmov %vm11031_vm14 }
 0x46e   : > { %7567 = vmatmul.mubr.bf16.gmra.mrb[20].mxu1 %v10348_v21  ;;  %v10373_v63 = vsel %vm11028_vm15, %v3763_v14, %v3767_v35  ;;  %v8643_v14 = vld [vmem:[#allocation8 + $0xc0] sm:$0xff]   ;;  %vm11033_vm8 = vmmov %vm11032_vm7 }
 0x46f   : > { %7570 = vmatprep.mubr.bf16.mxu1 %v10360_v57  ;;  %v10377_v42 = vsel %vm11029_vm3, %v3775_v43, %v3779_v12  ;;  %v3787_v6 = vor.u32 %v3786_v61, %v3782_v53  ;;  %v3791_v47 = vrot.slane %v3789_v18, 1  ;;  %v4274_v43 = vrot.slane %v10089_v31, 1  ;;  %v8644_v53 = vld [vmem:[#allocation8 + $0xc8] sm:$0xff]   ;;  %v8645_v31 = vld [vmem:[#allocation8 + $0xd0] sm:$0xff]   ;;  %vm11034_vm10 = vmmov %vm11032_vm7 }
 0x470   : > { %v4276_v12 = vrot.slane %v10102_v17, 1  ;;  %v4277_v61 = vrot.slane %v10095_v50, 1  ;;  %v4283_v50 = vrot.slane %v10139_v15, 1  ;;  %v4286_v15 = vrot.slane %v10176_v44, 1  ;;  %vm11035_vm11 = vmmov %vm11032_vm7 }
 0x471   : > { %v10383_v23 = vsel %vm11030_vm4, %v3787_v6, %v3791_v47  ;;  %v10406_v35 = vsel %vm11031_vm14, %v4273_v33, %v4274_v43  ;;  %v4279_v6 = vrot.slane %v10109_v46, 1  ;;  %v4282_v47 = vrot.slane %v10120_v39, 1  ;;  %vm11036_vm12 = vmmov %vm11032_vm7 }
 0x472   : > { %v10412_v18 = vsel %vm11032_vm7, %v4276_v12, %v4277_v61  ;;  %v8649_v12 = vld [vmem:[#allocation8 + $0xf0] sm:$0xff]   ;;  %v4291_v44 = vrot.slane %v10191_v29, 1  ;;  %v4294_v61 = vrot.slane %v10206_v49, 1  ;;  %vm11037_vm13 = vmmov %vm11032_vm7  ;;  %vm11046_vm14 = vsmask.f32 7424 }
 0x473   : > { %vm11038_vm0 = vmmov %vm11032_vm7 }
 0x474   : > { %vm11039_vm1 = vmmov %vm11038_vm0 }
 0x475   : > { %vm11040_vm5 = vmmov %vm11038_vm0 }
 0x476   : > { %7571 = vmatmul.mubr.bf16.gmra.mrb[24].mxu1 %v10373_v63  ;;  %vm11041_vm6 = vmmov %vm11038_vm0 }
 0x477   : > { %7574 = vmatprep.mubr.bf16.mxu1 %v10377_v42  ;;  %vm11042_vm9 = vmmov %vm11038_vm0 }
 0x478   : > { %vm11043_vm15 = vmmov %vm11038_vm0 }
 0x479   : > { %vm11044_vm3 = vmmov %vm11038_vm0 }
 0x47a   : > { %vm11045_vm4 = vmmov %vm11038_vm0 }
 0x47e   : > { %7575 = vmatmul.mubr.bf16.gmra.mrb[28].mxu1 %v10383_v23 }
 0x47f   : > { %7594 = vmatprep.mubr.bf16.mxu1 %v10084_v8 }
 0x486   : > { %7595 = vmatmul.mubr.bf16.vlgmr.msra.gmra.mrb[0].mxu1 %v10102_v17 }
 0x487   : > { %7598 = vmatprep.mubr.bf16.mxu1 %v10084_v8  ;;  %7627 = vmatpush3.bf16.msra.mxu1 %v10304_v25  ;;  %v8641_v25 = vld [vmem:[#allocation8 + $0xb0] sm:$0xff]  }
 0x488   : > { %7628 = vmatprep.subr.bf16.mxu1 %v8636_v62 }
 0x48b   : > { %7629 = vmatpush3.bf16.msra.mxu1 %v8636_v62  ;;  %v4280_v62 = vrot.slane %v10128_v55, 1  ;;  %v4285_v55 = vrot.slane %v10145_v27, 1 }
 0x48c   : > { %7630 = vmatprep.subr.bf16.mxu1 %v8637_v4 }
 0x48d   : > { %v10433_v33 = vsel %vm11035_vm11, %v4285_v55, %v4286_v15  ;;  %v4306_v15 = vrot.slane %v10299_v10, 1 }
 0x48e   : > { %7599 = vmatmul.mubr.bf16.gmra.mrb[4].mxu1 %v10109_v46 }
 0x48f   : > { %7602 = vmatprep.mubr.bf16.mxu1 %v10120_v39  ;;  %7631 = vmatpush3.bf16.msra.mxu1 %v8637_v4  ;;  %v8646_v4 = vld [vmem:[#allocation8 + $0xd8] sm:$0xff]  }
 0x490   : > { %7632 = vmatprep.subr.bf16.mxu1 %v8638_v52 }
 0x493   : > { %7633 = vmatpush3.bf16.msra.mxu1 %v8638_v52  ;;  %v10421_v52 = vsel %vm11033_vm8, %v4279_v6, %v4280_v62  ;;  %v8651_v62 = vld [vmem:[#allocation8 + $0x100] sm:$0xff]  }
 0x494   : > { %7634 = vmatprep.subr.bf16.mxu1 %v8639_v5 }
 0x496   : > { %7603 = vmatmul.mubr.bf16.gmra.mrb[8].mxu1 %v10145_v27 }
 0x497   : > { %7606 = vmatprep.mubr.bf16.mxu1 %v10162_v9  ;;  %7635 = vmatpush3.bf16.msra.mxu1 %v8639_v5  ;;  %v10425_v5 = vsel %vm11034_vm10, %v4282_v47, %v4283_v50  ;;  %v4300_v50 = vrot.slane %v10260_v60, 1 }
 0x498   : > { %7636 = vmatprep.subr.bf16.mxu1 %v8640_v0 }
 0x49b   : > { %7637 = vmatpush3.bf16.msra.mxu1 %v8640_v0  ;;  %v8647_v0 = vld [vmem:[#allocation8 + $0xe0] sm:$0xff]  }
 0x49c   : > { %7638 = vmatprep.subr.bf16.mxu1 %v8641_v25 }
 0x49e   : > { %7607 = vmatmul.mubr.bf16.gmra.mrb[12].mxu1 %v10191_v29 }
 0x49f   : > { %7610 = vmatprep.mubr.bf16.mxu1 %v10206_v49  ;;  %7639 = vmatpush3.bf16.msra.mxu1 %v8641_v25  ;;  %v4288_v25 = vrot.slane %v10162_v9, 1 }
 0x4a0   : > { %7640 = vmatprep.subr.bf16.mxu1 %v8642_v2 }
 0x4a3   : > { %7641 = vmatpush3.bf16.msra.mxu1 %v8642_v2  ;;  %v4289_v2 = vrot.slane %v10183_v54, 1  ;;  %v4292_v54 = vrot.slane %v10227_v22, 1  ;;  %v4297_v22 = vrot.slane %v10248_v59, 1 }
 0x4a4   : > { %7674 = vmatprep.subr.bf16.mxu1 %v8643_v14 }
 0x4a5   : > { %v10437_v43 = vsel %vm11036_vm12, %v4288_v25, %v4289_v2  ;;  %v10445_v6 = vsel %vm11037_vm13, %v4291_v44, %v4292_v54  ;;  %v4303_v25 = vrot.slane %v10292_v56, 1  ;;  %v4307_v2 = vrot.slane %v10321_v3, 1 }
 0x4a6   : > { %7611 = vmatmul.mubr.bf16.gmra.mrb[16].mxu1 %v10248_v59  ;;  %v4312_v44 = vrot.slane %v10336_v36, 1 }
 0x4a7   : > { %7614 = vmatprep.mubr.bf16.mxu1 %v10260_v60 }
 0x4ae   : > { %7615 = vmatmul.mubr.bf16.gmra.mrb[20].mxu1 %v10292_v56 }
 0x4af   : > { %7618 = vmatprep.mubr.bf16.mxu1 %v10299_v10 }
 0x4b6   : > { %7619 = vmatmul.mubr.bf16.gmra.mrb[24].mxu1 %v10329_v13 }
 0x4b7   : > { %7622 = vmatprep.mubr.bf16.mxu1 %v10336_v36 }
 0x4be   : > { %7623 = vmatmul.mubr.bf16.gmra.mrb[28].mxu1 %v10356_v40 }
 0x4bf   : > { %7642 = vmatprep.mubr.bf16.mxu1 %v10406_v35 }
 0x4c6   : > { %7643 = vmatmul.mubr.bf16.vlgmr.msra.gmra.mrb[0].mxu1 %v10412_v18 }
 0x4c7   : > { %7646 = vmatprep.mubr.bf16.mxu1 %v10406_v35  ;;  %7675 = vmatpush3.bf16.msra.mxu1 %v8643_v14  ;;  %v8648_v14 = vld [vmem:[#allocation8 + $0xe8] sm:$0xff]  }
 0x4c8   : > { %7676 = vmatprep.subr.bf16.mxu1 %v8644_v53 }
 0x4cb   : > { %7677 = vmatpush3.bf16.msra.mxu1 %v8644_v53  ;;  %v4295_v53 = vrot.slane %v10238_v58, 1  ;;  %v4298_v58 = vrot.slane %v10273_v48, 1  ;;  %v4304_v48 = vrot.slane %v10313_v34, 1  ;;  %v4313_v34 = vrot.slane %v10352_v51, 1  ;;  %v8653_v51 = vld [vmem:[#allocation8 + $0x110] sm:$0xff]  }
 0x4cc   : > { %7678 = vmatprep.subr.bf16.mxu1 %v8645_v31 }
 0x4cd   : > { %v10449_v47 = vsel %vm11038_vm0, %v4294_v61, %v4295_v53  ;;  %v4310_v61 = vrot.slane %v10345_v37, 1  ;;  %v10485_v54 = vsel %vm11044_vm3, %v4312_v44, %v4313_v34  ;;  %v4315_v53 = vrot.slane %v10356_v40, 1  ;;  %v8652_v37 = vld [vmem:[#allocation8 + $0x108] sm:$0xff]   ;;  %v8663_v34 = vld [vmem:[#allocation8 + $0x160] sm:$0xff]  }
 0x4ce   : > { %7647 = vmatmul.mubr.bf16.gmra.mrb[4].mxu1 %v10421_v52  ;;  %v8660_v44 = vld [vmem:[#allocation8 + $0x148] sm:$0xff]  }
 0x4cf   : > { %7650 = vmatprep.mubr.bf16.mxu1 %v10425_v5  ;;  %7679 = vmatpush3.bf16.msra.mxu1 %v8645_v31  ;;  %v8650_v31 = vld [vmem:[#allocation8 + $0xf8] sm:$0xff]  }
 0x4d0   : > { %7680 = vmatprep.subr.bf16.mxu1 %v8646_v4 }
 0x4d3   : > { %7681 = vmatpush3.bf16.msra.mxu1 %v8646_v4  ;;  %v4301_v4 = vrot.slane %v10282_v11, 1  ;;  %v10469_v11 = vsel %vm11041_vm6, %v4303_v25, %v4304_v48  ;;  %v3419_v25 = vshrl.u32 %v10003_v1, 16  ;;  %v3498_v48 = vshll.u32 %v10003_v1, 16  ;;  %v8662_v1 = vld [vmem:[#allocation8 + $0x158] sm:$0xff]  }
 0x4d4   : > { %7682 = vmatprep.subr.bf16.mxu1 %v8647_v0 }
 0x4d5   : > { %v10461_v55 = vsel %vm11040_vm5, %v4300_v50, %v4301_v4  ;;  %v8654_v50 = vld [vmem:[#allocation8 + $0x118] sm:$0xff]   ;;  %v8659_v4 = vld [vmem:[#allocation8 + $0x140] sm:$0xff]  }
 0x4d6   : > { %7651 = vmatmul.mubr.bf16.gmra.mrb[8].mxu1 %v10433_v33 }
 0x4d7   : > { %7654 = vmatprep.mubr.bf16.mxu1 %v10437_v43  ;;  %7683 = vmatpush3.bf16.msra.mxu1 %v8647_v0  ;;  %v10457_v0 = vsel %vm11039_vm1, %v4297_v22, %v4298_v58  ;;  %v8658_v58 = vld [vmem:[#allocation8 + $0x138] sm:$0xff]  }
 0x4d8   : > { %7684 = vmatprep.subr.bf16.mxu1 %v8648_v14 }
 0x4db   : > { %7685 = vmatpush3.bf16.msra.mxu1 %v8648_v14  ;;  %v10473_v14 = vsel %vm11042_vm9, %v4306_v15, %v4307_v2  ;;  %v3497_v15 = vrot.slane %v3419_v25, 7 }
 0x4dc   : > { %7686 = vmatprep.subr.bf16.mxu1 %v8649_v12 }
 0x4dd   : > { %v3500_v2 = vor.u32 %v3498_v48, %v3497_v15 }
 0x4de   : > { %7655 = vmatmul.mubr.bf16.gmra.mrb[12].mxu1 %v10445_v6 }
 0x4df   : > { %7658 = vmatprep.mubr.bf16.mxu1 %v10449_v47  ;;  %7687 = vmatpush3.bf16.msra.mxu1 %v8649_v12  ;;  %v4309_v12 = vrot.slane %v10329_v13, 1 }
 0x4e0   : > { %7688 = vmatprep.subr.bf16.mxu1 %v8650_v31 }
 0x4e1   : > { %v10481_v3 = vsel %vm11043_vm15, %v4309_v12, %v4310_v61  ;;  %v10513_v12 = vsel %vm9121_vm2, %v3419_v25, %v3500_v2  ;;  %v8661_v61 = vld [vmem:[#allocation8 + $0x150] sm:$0xff]  }
 0x4e3   : > { %7689 = vmatpush3.bf16.msra.mxu1 %v8650_v31  ;;  %v4316_v31 = vrot.slane %v10370_v38, 1  ;;  %v8655_v38 = vld [vmem:[#allocation8 + $0x120] sm:$0xff]  }
 0x4e4   : > { %7722 = vmatprep.subr.bf16.mxu1 %v8651_v62 }
 0x4e5   : > { %v10491_v22 = vsel %vm11045_vm4, %v4315_v53, %v4316_v31  ;;  %v8665_v53 = vld [vmem:[#allocation8 + $0x170] sm:$0xff]   ;;  %v8666_v31 = vld [vmem:[#allocation8 + $0x178] sm:$0xff]  }
 0x4e6   : > { %7659 = vmatmul.mubr.bf16.gmra.mrb[16].mxu1 %v10457_v0 }
 0x4e7   : > { %7662 = vmatprep.mubr.bf16.mxu1 %v10461_v55 }
 0x4ee   : > { %7663 = vmatmul.mubr.bf16.gmra.mrb[20].mxu1 %v10469_v11 }
 0x4ef   : > { %7666 = vmatprep.mubr.bf16.mxu1 %v10473_v14 }
 0x4f6   : > { %7667 = vmatmul.mubr.bf16.gmra.mrb[24].mxu1 %v10481_v3 }
 0x4f7   : > { %7670 = vmatprep.mubr.bf16.mxu1 %v10485_v54 }
 0x4fe   : > { %7671 = vmatmul.mubr.bf16.gmra.mrb[28].mxu1 %v10491_v22 }
 0x4ff   : > { %7690 = vmatprep.mubr.bf16.mxu1 %v10102_v17  ;;  %v8656_v17 = vld [vmem:[#allocation8 + $0x128] sm:$0xff]  }
 0x506   : > { %7691 = vmatmul.mubr.bf16.vlgmr.msra.gmra.mrb[0].mxu1 %v10084_v8 }
 0x507   : > { %7694 = vmatprep.mubr.bf16.mxu1 %v10109_v46  ;;  %7723 = vmatpush3.bf16.msra.mxu1 %v8651_v62  ;;  %v8657_v62 = vld [vmem:[#allocation8 + $0x130] sm:$0xff]  }
 0x508   : > { %7724 = vmatprep.subr.bf16.mxu1 %v8652_v37 }
 0x50b   : > { %7725 = vmatpush3.bf16.msra.mxu1 %v8652_v37  ;;  %v8667_v37 = vld [vmem:[#allocation8 + $0x180] sm:$0xff]  }
 0x50c   : > { %7726 = vmatprep.subr.bf16.mxu1 %v8653_v51 }
 0x50e   : > { %7695 = vmatmul.mubr.bf16.gmra.mrb[4].mxu1 %v10120_v39 }
 0x50f   : > { %7698 = vmatprep.mubr.bf16.mxu1 %v10145_v27  ;;  %7727 = vmatpush3.bf16.msra.mxu1 %v8653_v51  ;;  %v3548_v51 = vrot.slane %v3498_v48, 7  ;;  %v8668_v48 = vld [vmem:[#allocation8 + $0x188] sm:$0xff]  }
 0x510   : > { %7728 = vmatprep.subr.bf16.mxu1 %v8654_v50 }
 0x513   : > { %7729 = vmatpush3.bf16.msra.mxu1 %v8654_v50  ;;  %v4852_v50 = vshll.u32 %v10513_v12, 16 }
 0x514   : > { %7730 = vmatprep.subr.bf16.mxu1 %v8655_v38 }
 0x516   : > { %7699 = vmatmul.mubr.bf16.gmra.mrb[8].mxu1 %v10162_v9 }
 0x517   : > { %7702 = vmatprep.mubr.bf16.mxu1 %v10191_v29  ;;  %7731 = vmatpush3.bf16.msra.mxu1 %v8655_v38  ;;  %v3596_v38 = vsel %vm9121_vm2, %v3497_v15, %v3548_v51  ;;  %v8670_v15 = vld [vmem:[#allocation8 + $0x198] sm:$0xff]   ;;  %vm11047_vm2 = vmmov %vm11038_vm0  ;;  %v8677_v51 = vld [vmem:[#allocation8 + $0x1d0] sm:$0xff]  }
 0x518   : > { %7732 = vmatprep.subr.bf16.mxu1 %v8656_v17 }
 0x51b   : > { %7733 = vmatpush3.bf16.msra.mxu1 %v8656_v17  ;;  %v4854_v17 = vrot.slane %v4852_v50, 1  ;;  %v8678_v50 = vld [vmem:[#allocation8 + $0x1d8] sm:$0xff]  }
 0x51c   : > { %7734 = vmatprep.subr.bf16.mxu1 %v8657_v62 }
 0x51e   : > { %7703 = vmatmul.mubr.bf16.gmra.mrb[12].mxu1 %v10206_v49 }
 0x51f   : > { %7706 = vmatprep.mubr.bf16.mxu1 %v10248_v59  ;;  %7735 = vmatpush3.bf16.msra.mxu1 %v8657_v62  ;;  %v4850_v62 = vshrl.u32 %v10513_v12, 16 }
 0x520   : > { %7736 = vmatprep.subr.bf16.mxu1 %v8658_v58 }
 0x523   : > { %7737 = vmatpush3.bf16.msra.mxu1 %v8658_v58  ;;  %v4857_v58 = vshll.u32 %v3596_v38, 16 }
 0x524   : > { %7770 = vmatprep.subr.bf16.mxu1 %v8659_v4 }
 0x525   : > { %v4859_v25 = vrot.slane %v4857_v58, 1 }
 0x526   : > { %7707 = vmatmul.mubr.bf16.gmra.mrb[16].mxu1 %v10260_v60 }
 0x527   : > { %7710 = vmatprep.mubr.bf16.mxu1 %v10292_v56 }
 0x52e   : > { %7711 = vmatmul.mubr.bf16.gmra.mrb[20].mxu1 %v10299_v10 }
 0x52f   : > { %7714 = vmatprep.mubr.bf16.mxu1 %v10329_v13 }
 0x536   : > { %7715 = vmatmul.mubr.bf16.gmra.mrb[24].mxu1 %v10336_v36 }
 0x537   : > { %7718 = vmatprep.mubr.bf16.mxu1 %v10356_v40 }
 0x53e   : > { %7719 = vmatmul.mubr.bf16.gmra.mrb[28].mxu1 %v10513_v12 }
 0x53f   : > { %7738 = vmatprep.mubr.bf16.mxu1 %v10135_v20  ;;  %v8664_v20 = vld [vmem:[#allocation8 + $0x168] sm:$0xff]  }
 0x546   : > { %7739 = vmatmul.mubr.bf16.vlgmr.msra.gmra.mrb[0].mxu1 %v10112_v41 }
 0x547   : > { %7742 = vmatprep.mubr.bf16.mxu1 %v10179_v32  ;;  %7771 = vmatpush3.bf16.msra.mxu1 %v8659_v4  ;;  %v4855_v4 = vor.u32 %v4854_v17, %v4850_v62 }
 0x548   : > { %7772 = vmatprep.subr.bf16.mxu1 %v8660_v44 }
 0x549   : > { %v10536_v2 = vsel %vm11046_vm14, %v4855_v4, %v4859_v25 }
 0x54b   : > { %7773 = vmatpush3.bf16.msra.mxu1 %v8660_v44  ;;  %v8671_v44 = vld [vmem:[#allocation8 + $0x1a0] sm:$0xff]  }
 0x54c   : > { %7774 = vmatprep.subr.bf16.mxu1 %v8661_v61 }
 0x54e   : > { %7743 = vmatmul.mubr.bf16.gmra.mrb[4].mxu1 %v10187_v45 }
 0x54f   : > { %7746 = vmatprep.mubr.bf16.mxu1 %v10234_v19  ;;  %7775 = vmatpush3.bf16.msra.mxu1 %v8661_v61  ;;  %v8673_v61 = vld [vmem:[#allocation8 + $0x1b0] sm:$0xff]  }
 0x550   : > { %7776 = vmatprep.subr.bf16.mxu1 %v8662_v1 }
 0x553   : > { %7777 = vmatpush3.bf16.msra.mxu1 %v8662_v1  ;;  %v8674_v1 = vld [vmem:[#allocation8 + $0x1b8] sm:$0xff]  }
 0x554   : > { %7778 = vmatprep.subr.bf16.mxu1 %v8663_v34 }
 0x556   : > { %7747 = vmatmul.mubr.bf16.gmra.mrb[8].mxu1 %v10242_v26 }
 0x557   : > { %7750 = vmatprep.mubr.bf16.mxu1 %v10278_v30  ;;  %7779 = vmatpush3.bf16.msra.mxu1 %v8663_v34  ;;  %v8675_v34 = vld [vmem:[#allocation8 + $0x1c0] sm:$0xff]  }
 0x558   : > { %7780 = vmatprep.subr.bf16.mxu1 %v8664_v20 }
 0x55b   : > { %7781 = vmatpush3.bf16.msra.mxu1 %v8664_v20  ;;  %v5122_v20 = vrot.slane %v10513_v12, 1 }
 0x55c   : > { %7782 = vmatprep.subr.bf16.mxu1 %v8665_v53 }
 0x55e   : > { %7751 = vmatmul.mubr.bf16.gmra.mrb[12].mxu1 %v10286_v28 }
 0x55f   : > { %7754 = vmatprep.mubr.bf16.mxu1 %v10317_v16  ;;  %7783 = vmatpush3.bf16.msra.mxu1 %v8665_v53  ;;  %v5123_v53 = vrot.slane %v3596_v38, 1  ;;  %v8679_v38 = vld [vmem:[#allocation8 + $0x1e0] sm:$0xff]  }
 0x560   : > { %7784 = vmatprep.subr.bf16.mxu1 %v8666_v31 }
 0x563   : > { %7785 = vmatpush3.bf16.msra.mxu1 %v8666_v31  ;;  %v10556_v31 = vsel %vm11047_vm2, %v5122_v20, %v5123_v53 }
 0x564   : > { %7818 = vmatprep.subr.bf16.mxu1 %v8667_v37 }
 0x566   : > { %7755 = vmatmul.mubr.bf16.gmra.mrb[16].mxu1 %v10325_v7 }
 0x567   : > { %7758 = vmatprep.mubr.bf16.mxu1 %v10348_v21 }
 0x56e   : > { %7759 = vmatmul.mubr.bf16.gmra.mrb[20].mxu1 %v10360_v57 }
 0x56f   : > { %7762 = vmatprep.mubr.bf16.mxu1 %v10373_v63 }
 0x576   : > { %7763 = vmatmul.mubr.bf16.gmra.mrb[24].mxu1 %v10377_v42 }
 0x577   : > { %7766 = vmatprep.mubr.bf16.mxu1 %v10383_v23 }
 0x57e   : > { %7767 = vmatmul.mubr.bf16.gmra.mrb[28].mxu1 %v10536_v2 }
 0x57f   : > { %7786 = vmatprep.mubr.bf16.mxu1 %v10412_v18  ;;  %v8672_v18 = vld [vmem:[#allocation8 + $0x1a8] sm:$0xff]  }
 0x586   : > { %7787 = vmatmul.mubr.bf16.vlgmr.msra.gmra.mrb[0].mxu1 %v10406_v35 }
 0x587   : > { %7790 = vmatprep.mubr.bf16.mxu1 %v10421_v52  ;;  %7819 = vmatpush3.bf16.msra.mxu1 %v8667_v37  ;;  %v8676_v37 = vld [vmem:[#allocation8 + $0x1c8] sm:$0xff]  }
 0x588   : > { %7820 = vmatprep.subr.bf16.mxu1 %v8668_v48 }
 0x58b   : > { %7821 = vmatpush3.bf16.msra.mxu1 %v8668_v48 }
 0x58c   : > { %7822 = vmatprep.subr.bf16.mxu1 %v8669_v24 }
 0x58e   : > { %7791 = vmatmul.mubr.bf16.gmra.mrb[4].mxu1 %v10425_v5 }
 0x58f   : > { %7794 = vmatprep.mubr.bf16.mxu1 %v10433_v33  ;;  %7823 = vmatpush3.bf16.msra.mxu1 %v8669_v24 }
 0x590   : > { %7824 = vmatprep.subr.bf16.mxu1 %v8670_v15 }
 0x593   : > { %7825 = vmatpush3.bf16.msra.mxu1 %v8670_v15 }
 0x594   : > { %7826 = vmatprep.subr.bf16.mxu1 %v8671_v44 }
 0x596   : > { %7795 = vmatmul.mubr.bf16.gmra.mrb[8].mxu1 %v10437_v43 }
 0x597   : > { %7798 = vmatprep.mubr.bf16.mxu1 %v10445_v6  ;;  %7827 = vmatpush3.bf16.msra.mxu1 %v8671_v44 }
 0x598   : > { %7828 = vmatprep.subr.bf16.mxu1 %v8672_v18 }
 0x59b   : > { %7829 = vmatpush3.bf16.msra.mxu1 %v8672_v18 }
 0x59c   : > { %7830 = vmatprep.subr.bf16.mxu1 %v8673_v61 }
 0x59e   : > { %7799 = vmatmul.mubr.bf16.gmra.mrb[12].mxu1 %v10449_v47 }
 0x59f   : > { %7802 = vmatprep.mubr.bf16.mxu1 %v10457_v0  ;;  %7831 = vmatpush3.bf16.msra.mxu1 %v8673_v61 }
 0x5a0   : > { %7832 = vmatprep.subr.bf16.mxu1 %v8674_v1 }
 0x5a3   : > { %7833 = vmatpush3.bf16.msra.mxu1 %v8674_v1 }
 0x5a4   : > { %7866 = vmatprep.subr.bf16.mxu1 %v8675_v34 }
 0x5a6   : > { %7803 = vmatmul.mubr.bf16.gmra.mrb[16].mxu1 %v10461_v55 }
 0x5a7   : > { %7806 = vmatprep.mubr.bf16.mxu1 %v10469_v11 }
 0x5ae   : > { %7807 = vmatmul.mubr.bf16.gmra.mrb[20].mxu1 %v10473_v14 }
 0x5af   : > { %7810 = vmatprep.mubr.bf16.mxu1 %v10481_v3 }
 0x5b6   : > { %7811 = vmatmul.mubr.bf16.gmra.mrb[24].mxu1 %v10485_v54 }
 0x5b7   : > { %7814 = vmatprep.mubr.bf16.mxu1 %v10491_v22 }
 0x5be   : > { %7815 = vmatmul.mubr.bf16.gmra.mrb[28].mxu1 %v10556_v31 }
 0x5bf   : > { %7834 = vmatprep.mubr.bf16.mxu1 %v10084_v8  ;;  %v8680_v8 = vld [vmem:[#allocation8 + $0x1e8] sm:$0xff]  }
 0x5c6   : > { %7835 = vmatmul.mubr.bf16.vlgmr.msra.gmra.mrb[0].mxu1 %v10109_v46  ;;  %v8681_v46 = vld [vmem:[#allocation8 + $0x1f0] sm:$0xff]  }
 0x5c7   : > { %7838 = vmatprep.mubr.bf16.mxu1 %v10120_v39  ;;  %7867 = vmatpush3.bf16.msra.mxu1 %v8675_v34  ;;  %v8682_v39 = vld [vmem:[#allocation8 + $0x1f8] sm:$0xff]  }
 0x5c8   : > { %7868 = vmatprep.subr.bf16.mxu1 %v8676_v37 }
 0x5cb   : > { %7869 = vmatpush3.bf16.msra.mxu1 %v8676_v37 }
 0x5cc   : > { %7870 = vmatprep.subr.bf16.mxu1 %v8677_v51 }
 0x5ce   : > { %7839 = vmatmul.mubr.bf16.gmra.mrb[4].mxu1 %v10145_v27  ;;  %v8683_v27 = vld [vmem:[#allocation8 + $0x200] sm:$0xff]  }
 0x5cf   : > { %7842 = vmatprep.mubr.bf16.mxu1 %v10162_v9  ;;  %7871 = vmatpush3.bf16.msra.mxu1 %v8677_v51  ;;  %v8684_v9 = vld [vmem:[#allocation8 + $0x208] sm:$0xff]  }
 0x5d0   : > { %7872 = vmatprep.subr.bf16.mxu1 %v8678_v50 }
 0x5d3   : > { %7873 = vmatpush3.bf16.msra.mxu1 %v8678_v50 }
 0x5d4   : > { %7874 = vmatprep.subr.bf16.mxu1 %v8679_v38 }
 0x5d6   : > { %7843 = vmatmul.mubr.bf16.gmra.mrb[8].mxu1 %v10191_v29  ;;  %v8685_v29 = vld [vmem:[#allocation8 + $0x210] sm:$0xff]  }
 0x5d7   : > { %7846 = vmatprep.mubr.bf16.mxu1 %v10206_v49  ;;  %7875 = vmatpush3.bf16.msra.mxu1 %v8679_v38  ;;  %v8686_v49 = vld [vmem:[#allocation8 + $0x218] sm:$0xff]  }
 0x5d8   : > { %7876 = vmatprep.subr.bf16.mxu1 %v8680_v8 }
 0x5db   : > { %7877 = vmatpush3.bf16.msra.mxu1 %v8680_v8 }
 0x5dc   : > { %7878 = vmatprep.subr.bf16.mxu1 %v8681_v46 }
 0x5de   : > { %7847 = vmatmul.mubr.bf16.gmra.mrb[12].mxu1 %v10248_v59  ;;  %v8687_v59 = vld [vmem:[#allocation8 + $0x220] sm:$0xff]  }
 0x5df   : > { %7850 = vmatprep.mubr.bf16.mxu1 %v10260_v60  ;;  %7879 = vmatpush3.bf16.msra.mxu1 %v8681_v46 }
 0x5e0   : > { %7880 = vmatprep.subr.bf16.mxu1 %v8682_v39 }
 0x5e3   : > { %7881 = vmatpush3.bf16.msra.mxu1 %v8682_v39 }
 0x5e4   : > { %7914 = vmatprep.subr.bf16.mxu1 %v8683_v27 }
 0x5e6   : > { %7851 = vmatmul.mubr.bf16.gmra.mrb[16].mxu1 %v10292_v56 }
 0x5e7   : > { %7854 = vmatprep.mubr.bf16.mxu1 %v10299_v10 }
 0x5ee   : > { %7855 = vmatmul.mubr.bf16.gmra.mrb[20].mxu1 %v10329_v13 }
 0x5ef   : > { %7858 = vmatprep.mubr.bf16.mxu1 %v10336_v36 }
 0x5f6   : > { %7859 = vmatmul.mubr.bf16.gmra.mrb[24].mxu1 %v10356_v40 }
 0x5f7   : > { %7862 = vmatprep.mubr.bf16.mxu1 %v10513_v12 }
 0x5fe   : > { %7863 = vmatmul.mubr.bf16.gmra.mrb[28].mxu1 %v10356_v40 }
 0x5ff   : > { %7882 = vmatprep.mubr.bf16.mxu1 %v10112_v41  ;;  %v8688_v41 = vld [vmem:[#allocation8 + $0x228] sm:$0xff]  }
 0x606   : > { %7883 = vmatmul.mubr.bf16.vlgmr.msra.gmra.mrb[0].mxu1 %v10179_v32  ;;  %v8689_v32 = vld [vmem:[#allocation8 + $0x230] sm:$0xff]  }
 0x607   : > { %7886 = vmatprep.mubr.bf16.mxu1 %v10187_v45  ;;  %7915 = vmatpush3.bf16.msra.mxu1 %v8683_v27  ;;  %v8690_v45 = vld [vmem:[#allocation8 + $0x238] sm:$0xff]  }
 0x608   : > { %7916 = vmatprep.subr.bf16.mxu1 %v8684_v9 }
 0x60b   : > { %7917 = vmatpush3.bf16.msra.mxu1 %v8684_v9 }
 0x60c   : > { %7918 = vmatprep.subr.bf16.mxu1 %v8685_v29 }
 0x60e   : > { %7887 = vmatmul.mubr.bf16.gmra.mrb[4].mxu1 %v10234_v19 }
 0x60f   : > { %7890 = vmatprep.mubr.bf16.mxu1 %v10242_v26  ;;  %7919 = vmatpush3.bf16.msra.mxu1 %v8685_v29 }
 0x610   : > { %7920 = vmatprep.subr.bf16.mxu1 %v8686_v49 }
 0x613   : > { %7921 = vmatpush3.bf16.msra.mxu1 %v8686_v49 }
 0x614   : > { %7922 = vmatprep.subr.bf16.mxu1 %v8687_v59 }
 0x616   : > { %7891 = vmatmul.mubr.bf16.gmra.mrb[8].mxu1 %v10278_v30 }
 0x617   : > { %7894 = vmatprep.mubr.bf16.mxu1 %v10286_v28  ;;  %7923 = vmatpush3.bf16.msra.mxu1 %v8687_v59 }
 0x618   : > { %7924 = vmatprep.subr.bf16.mxu1 %v8688_v41 }
 0x61b   : > { %7925 = vmatpush3.bf16.msra.mxu1 %v8688_v41 }
 0x61c   : > { %7926 = vmatprep.subr.bf16.mxu1 %v8689_v32 }
 0x61e   : > { %7895 = vmatmul.mubr.bf16.gmra.mrb[12].mxu1 %v10317_v16 }
 0x61f   : > { %7898 = vmatprep.mubr.bf16.mxu1 %v10325_v7  ;;  %7927 = vmatpush3.bf16.msra.mxu1 %v8689_v32 }
 0x620   : > { %7928 = vmatprep.subr.bf16.mxu1 %v8690_v45 }
 0x623   : > { %7929 = vmatpush3.bf16.msra.mxu1 %v8690_v45 }
 0x626   : > { %7899 = vmatmul.mubr.bf16.gmra.mrb[16].mxu1 %v10348_v21 }
 0x627   : > { %7902 = vmatprep.mubr.bf16.mxu1 %v10360_v57 }
 0x62e   : > { %7903 = vmatmul.mubr.bf16.gmra.mrb[20].mxu1 %v10373_v63 }
 0x62f   : > { %7906 = vmatprep.mubr.bf16.mxu1 %v10377_v42 }
 0x636   : > { %7907 = vmatmul.mubr.bf16.gmra.mrb[24].mxu1 %v10383_v23 }
 0x637   : > { %7910 = vmatprep.mubr.bf16.mxu1 %v10536_v2 }
 0x63e   : > { %7911 = vmatmul.mubr.bf16.gmra.mrb[28].mxu1 %v10383_v23 }
 0x63f   : > { %7930 = vmatprep.mubr.bf16.mxu1 %v10406_v35 }
 0x646   : > { %7931 = vmatmul.mubr.bf16.vlgmr.msra.gmra.mrb[0].mxu1 %v10421_v52 }
 0x647   : > { %7934 = vmatprep.mubr.bf16.mxu1 %v10425_v5 }
 0x64e   : > { %7935 = vmatmul.mubr.bf16.gmra.mrb[4].mxu1 %v10433_v33 }
 0x64f   : > { %7938 = vmatprep.mubr.bf16.mxu1 %v10437_v43 }
 0x656   : > { %7939 = vmatmul.mubr.bf16.gmra.mrb[8].mxu1 %v10445_v6 }
 0x657   : > { %7942 = vmatprep.mubr.bf16.mxu1 %v10449_v47 }
 0x65e   : > { %7943 = vmatmul.mubr.bf16.gmra.mrb[12].mxu1 %v10457_v0 }
 0x65f   : > { %7946 = vmatprep.mubr.bf16.mxu1 %v10461_v55 }
 0x666   : > { %7947 = vmatmul.mubr.bf16.gmra.mrb[16].mxu1 %v10469_v11 }
 0x667   : > { %7950 = vmatprep.mubr.bf16.mxu1 %v10473_v14 }
 0x66e   : > { %7951 = vmatmul.mubr.bf16.gmra.mrb[20].mxu1 %v10481_v3 }
 0x66f   : > { %7954 = vmatprep.mubr.bf16.mxu1 %v10485_v54 }
 0x676   : > { %7955 = vmatmul.mubr.bf16.gmra.mrb[24].mxu1 %v10491_v22 }
 0x677   : > { %7958 = vmatprep.mubr.bf16.mxu1 %v10556_v31 }
 0x67e   : > { %7959 = vmatmul.mubr.bf16.gmra.mrb[28].mxu1 %v10491_v22 }
 0x719   : > { %v10607_v19 = vpop.f32.mrb[0].mxu1 }
 0x71a   : > { %v10609_v26 = vpop.f32.mrb[1].mxu1 }
 0x71b   : > { %v10611_v60 = vpop.f32.mrb[2].mxu1 }
 0x71c   : > { %v10613_v30 = vpop.f32.mrb[3].mxu1 }
 0x71d   : > { %v6158_v28 = vadd.f32 %v10613_v30, %v10609_v26 }
 0x71f   : > { %v6159_v56 = vadd.f32 %v10607_v19, %v6158_v28 }
 0x721   : > { %v10618_v10 = vpop.f32.mrb[4].mxu1  ;;  %v6160_v16 = vadd.f32 %v10611_v60, %v6159_v56 }
 0x722   : > { %v10621_v7 = vpop.f32.mrb[5].mxu1 }
 0x723   : > { %v6161_v13 = vadd.f32 %v6160_v16, %v10621_v7  ;;  %v10624_v36 = vpop.f32.mrb[6].mxu1 }
 0x724   : > { %v10626_v21 = vpop.f32.mrb[7].mxu1 }
 0x725   : > { %v6162_v40 = vadd.f32 %v6161_v13, %v10626_v21 }
 0x727   : > { %v6163_v57 = vadd.f32 %v10618_v10, %v6162_v40 }
 0x729   : > { %v10630_v63 = vpop.f32.mrb[8].mxu1  ;;  %v6164_v42 = vadd.f32 %v10624_v36, %v6163_v57 }
 0x72a   : > { %v6031_v23 = vpop.f32.mrb[9].mxu1 }
 0x72b   : > { %v6165_v35 = vadd.f32 %v6164_v42, %v6031_v23  ;;  %v10633_v52 = vpop.f32.mrb[10].mxu1 }
 0x72c   : > { %v6034_v5 = vpop.f32.mrb[11].mxu1 }
 0x72d   : > { %v6166_v33 = vadd.f32 %v6165_v35, %v6034_v5 }
 0x72f   : > { %v6167_v43 = vadd.f32 %v10630_v63, %v6166_v33 }
 0x731   : > { %v7944_v6 = vpop.f32.mrb[12].mxu1  ;;  %v6168_v47 = vadd.f32 %v10633_v52, %v6167_v43 }
 0x732   : > { %v6047_v0 = vpop.f32.mrb[13].mxu1 }
 0x733   : > { %v6169_v55 = vadd.f32 %v6168_v47, %v6047_v0  ;;  %v7945_v11 = vpop.f32.mrb[14].mxu1 }
 0x734   : > { %v6050_v14 = vpop.f32.mrb[15].mxu1 }
 0x735   : > { %v6170_v3 = vadd.f32 %v6169_v55, %v6050_v14 }
 0x737   : > { %v6171_v54 = vadd.f32 %v7944_v6, %v6170_v3 }
 0x739   : > { %v7948_v22 = vpop.f32.mrb[16].mxu1  ;;  %v6172_v12 = vadd.f32 %v7945_v11, %v6171_v54 }
 0x73a   : > { %v6063_v17 = vpop.f32.mrb[17].mxu1 }
 0x73b   : > { %v6173_v62 = vadd.f32 %v6172_v12, %v6063_v17  ;;  %v7949_v58 = vpop.f32.mrb[18].mxu1 }
 0x73c   : > { %v6066_v4 = vpop.f32.mrb[19].mxu1 }
 0x73d   : > { %v6174_v25 = vadd.f32 %v6173_v62, %v6066_v4 }
 0x73f   : > { %v6175_v2 = vadd.f32 %v7948_v22, %v6174_v25 }
 0x741   : > { %v7952_v48 = vpop.f32.mrb[20].mxu1  ;;  %v6176_v24 = vadd.f32 %v7949_v58, %v6175_v2 }
 0x742   : > { %v6079_v15 = vpop.f32.mrb[21].mxu1 }
 0x743   : > { %v6177_v44 = vadd.f32 %v6176_v24, %v6079_v15  ;;  %v7953_v18 = vpop.f32.mrb[22].mxu1 }
 0x744   : > { %v6082_v61 = vpop.f32.mrb[23].mxu1 }
 0x745   : > { %v6178_v1 = vadd.f32 %v6177_v44, %v6082_v61 }
 0x747   : > { %v6179_v34 = vadd.f32 %v7952_v48, %v6178_v1 }
 0x749   : > { %v7956_v20 = vpop.f32.mrb[24].mxu1  ;;  %v6180_v53 = vadd.f32 %v7953_v18, %v6179_v34 }
 0x74a   : > { %v6095_v31 = vpop.f32.mrb[25].mxu1 }
 0x74b   : > { %v6181_v37 = vadd.f32 %v6180_v53, %v6095_v31  ;;  %v7957_v51 = vpop.f32.mrb[26].mxu1 }
 0x74c   : > { %v6098_v50 = vpop.f32.mrb[27].mxu1 }
 0x74d   : > { %v6182_v38 = vadd.f32 %v6181_v37, %v6098_v50 }
 0x74f   : > { %v6183_v8 = vadd.f32 %v7956_v20, %v6182_v38 }
 0x751   : > { %v7960_v46 = vpop.f32.mrb[28].mxu1  ;;  %v6184_v39 = vadd.f32 %v7957_v51, %v6183_v8 }
 0x752   : > { %v6111_v27 = vpop.f32.mrb[29].mxu1 }
 0x753   : > { %v6185_v9 = vadd.f32 %v6184_v39, %v6111_v27  ;;  %v7961_v29 = vpop.f32.mrb[30].mxu1 }
 0x754   : > { %v6114_v49 = vpop.f32.mrb[31].mxu1 }
 0x755   : > { %v6186_v59 = vadd.f32 %v6185_v9, %v6114_v49 }
 0x757   : > { %v6187_v41 = vadd.f32 %v7960_v46, %v6186_v59 }
 0x759   : > { %v6188_v32 = vadd.f32 %v7961_v29, %v6187_v41 }
 0x75b   : > { %v6189_v45 = vrot.slane %v6188_v32, 4 }
 0x75d   : > { %v6190_v28 = vadd.f32 %v6189_v45, %v6188_v32 }
 0x75f   : > { %v6191_v56 = vrot.slane %v6190_v28, 2 }
 0x761   : > { %v6192_v16 = vadd.f32 %v6191_v56, %v6190_v28 }
 0x763   : > { %v6193_v13 = vrot.slane %v6192_v16, 1 }
 0x765   : > { %v6194_v40 = vadd.f32 %v6193_v13, %v6192_v16 }
 0x767   : > { %v6195_v57 = vmul.f32 0.00390625, %v6194_v40 }
 0x769   : > { %v10638_v42 = vsub.f32 %v10609_v26, %v6195_v57  ;;  %v10641_v35 = vsub.f32 %v10613_v30, %v6195_v57  ;;  %v10644_v33 = vsub.f32 %v10607_v19, %v6195_v57  ;;  %v10647_v43 = vsub.f32 %v10611_v60, %v6195_v57 }
 0x76a   : > { %v10650_v47 = vsub.f32 %v10621_v7, %v6195_v57  ;;  %v10653_v55 = vsub.f32 %v10626_v21, %v6195_v57  ;;  %v10656_v3 = vsub.f32 %v10618_v10, %v6195_v57  ;;  %v10659_v26 = vsub.f32 %v10624_v36, %v6195_v57 }
 0x76b   : > { %v10661_v30 = vsub.f32 %v6031_v23, %v6195_v57  ;;  %v10663_v54 = vsub.f32 %v6034_v5, %v6195_v57  ;;  %v10666_v19 = vsub.f32 %v10630_v63, %v6195_v57  ;;  %v10669_v60 = vsub.f32 %v10633_v52, %v6195_v57 }
 0x76c   : > { %v10671_v7 = vsub.f32 %v6047_v0, %v6195_v57  ;;  %v10673_v21 = vsub.f32 %v6050_v14, %v6195_v57  ;;  %v10675_v12 = vsub.f32 %v7944_v6, %v6195_v57  ;;  %v10677_v10 = vsub.f32 %v7945_v11, %v6195_v57 }
 0x76d   : > { %v10679_v36 = vsub.f32 %v6063_v17, %v6195_v57  ;;  %v10681_v23 = vsub.f32 %v6066_v4, %v6195_v57  ;;  %v10683_v5 = vsub.f32 %v7948_v22, %v6195_v57  ;;  %v10685_v62 = vsub.f32 %v7949_v58, %v6195_v57 }
 0x76e   : > { %v10687_v63 = vsub.f32 %v6079_v15, %v6195_v57  ;;  %v10689_v52 = vsub.f32 %v6082_v61, %v6195_v57  ;;  %v10691_v0 = vsub.f32 %v7952_v48, %v6195_v57  ;;  %v10693_v14 = vsub.f32 %v7953_v18, %v6195_v57 }
 0x76f   : > { %v10695_v6 = vsub.f32 %v6095_v31, %v6195_v57  ;;  %v10697_v11 = vsub.f32 %v6098_v50, %v6195_v57  ;;  %v10699_v17 = vsub.f32 %v7956_v20, %v6195_v57  ;;  %v10701_v4 = vsub.f32 %v7957_v51, %v6195_v57 }
 0x770   : > { %v10703_v22 = vsub.f32 %v6111_v27, %v6195_v57  ;;  %v10705_v58 = vsub.f32 %v6114_v49, %v6195_v57  ;;  %v10707_v25 = vsub.f32 %v7960_v46, %v6195_v57  ;;  %v10709_v2 = vsub.f32 %v7961_v29, %v6195_v57 }
 0x771   : > { %v6228_v48 = vmul.f32 %v10638_v42, %v10638_v42  ;;  %v6229_v24 = vmul.f32 %v10641_v35, %v10641_v35  ;;  %v6230_v15 = vmul.f32 %v10644_v33, %v10644_v33  ;;  %v6231_v18 = vmul.f32 %v10647_v43, %v10647_v43 }
 0x772   : > { %v6232_v1 = vmul.f32 %v10650_v47, %v10650_v47  ;;  %v6233_v20 = vmul.f32 %v10653_v55, %v10653_v55  ;;  %v6234_v31 = vmul.f32 %v10656_v3, %v10656_v3  ;;  %v6235_v51 = vmul.f32 %v10659_v26, %v10659_v26 }
 0x773   : > { %v6260_v44 = vadd.f32 %v6229_v24, %v6228_v48  ;;  %v6236_v38 = vmul.f32 %v10661_v30, %v10661_v30  ;;  %v6237_v46 = vmul.f32 %v10663_v54, %v10663_v54  ;;  %v6238_v27 = vmul.f32 %v10666_v19, %v10666_v19 }
 0x774   : > { %v6239_v29 = vmul.f32 %v10669_v60, %v10669_v60  ;;  %v6240_v59 = vmul.f32 %v10671_v7, %v10671_v7  ;;  %v6241_v32 = vmul.f32 %v10673_v21, %v10673_v21  ;;  %v6242_v28 = vmul.f32 %v10675_v12, %v10675_v12 }
 0x775   : > { %v6261_v61 = vadd.f32 %v6260_v44, %v6230_v15  ;;  %v6243_v16 = vmul.f32 %v10677_v10, %v10677_v10  ;;  %v6244_v40 = vmul.f32 %v10679_v36, %v10679_v36  ;;  %v6245_v48 = vmul.f32 %v10681_v23, %v10681_v23 }
 0x776   : > { %v6246_v15 = vmul.f32 %v10683_v5, %v10683_v5 }
 0x777   : > { %v6262_v34 = vadd.f32 %v6261_v61, %v6231_v18  ;;  %v6247_v18 = vmul.f32 %v10685_v62, %v10685_v62 }
 0x779   : > { %v6263_v53 = vadd.f32 %v6262_v34, %v6232_v1  ;;  %v6248_v1 = vmul.f32 %v10687_v63, %v10687_v63 }
 0x77b   : > { %v6264_v37 = vadd.f32 %v6263_v53, %v6233_v20  ;;  %v6249_v20 = vmul.f32 %v10689_v52, %v10689_v52 }
 0x77d   : > { %v6265_v50 = vadd.f32 %v6264_v37, %v6234_v31  ;;  %v6250_v31 = vmul.f32 %v10691_v0, %v10691_v0 }
 0x77f   : > { %v6266_v8 = vadd.f32 %v6265_v50, %v6235_v51  ;;  %v6251_v51 = vmul.f32 %v10693_v14, %v10693_v14 }
 0x781   : > { %v6267_v39 = vadd.f32 %v6266_v8, %v6236_v38  ;;  %v6252_v38 = vmul.f32 %v10695_v6, %v10695_v6 }
 0x783   : > { %v6268_v9 = vadd.f32 %v6267_v39, %v6237_v46  ;;  %v6253_v46 = vmul.f32 %v10697_v11, %v10697_v11 }
 0x785   : > { %v6269_v49 = vadd.f32 %v6268_v9, %v6238_v27  ;;  %v6254_v27 = vmul.f32 %v10699_v17, %v10699_v17 }
 0x787   : > { %v6270_v41 = vadd.f32 %v6269_v49, %v6239_v29  ;;  %v6255_v29 = vmul.f32 %v10701_v4, %v10701_v4 }
 0x789   : > { %v6271_v45 = vadd.f32 %v6270_v41, %v6240_v59  ;;  %v6256_v59 = vmul.f32 %v10703_v22, %v10703_v22 }
 0x78b   : > { %v6272_v56 = vadd.f32 %v6271_v45, %v6241_v32  ;;  %v6257_v32 = vmul.f32 %v10705_v58, %v10705_v58 }
 0x78d   : > { %v6273_v13 = vadd.f32 %v6272_v56, %v6242_v28  ;;  %v6258_v28 = vmul.f32 %v10707_v25, %v10707_v25 }
 0x78f   : > { %v6274_v57 = vadd.f32 %v6273_v13, %v6243_v16  ;;  %v6259_v16 = vmul.f32 %v10709_v2, %v10709_v2 }
 0x791   : > { %v6275_v24 = vadd.f32 %v6274_v57, %v6244_v40 }
 0x793   : > { %v6276_v44 = vadd.f32 %v6275_v24, %v6245_v48 }
 0x795   : > { %v6277_v61 = vadd.f32 %v6276_v44, %v6246_v15 }
 0x797   : > { %v6278_v34 = vadd.f32 %v6277_v61, %v6247_v18 }
 0x799   : > { %v6279_v53 = vadd.f32 %v6278_v34, %v6248_v1 }
 0x79b   : > { %v6280_v37 = vadd.f32 %v6279_v53, %v6249_v20 }
 0x79d   : > { %v6281_v50 = vadd.f32 %v6280_v37, %v6250_v31 }
 0x79f   : > { %v6282_v8 = vadd.f32 %v6281_v50, %v6251_v51 }
 0x7a1   : > { %v6283_v39 = vadd.f32 %v6282_v8, %v6252_v38 }
 0x7a3   : > { %v6284_v9 = vadd.f32 %v6283_v39, %v6253_v46  ;;  %v8695_v46 = vld [vmem:[%s9101_s8 + $0xe8] sm:$0xff] }
 0x7a5   : > { %v6285_v49 = vadd.f32 %v6284_v9, %v6254_v27  ;;  %v8699_v9 = vld [vmem:[%s9101_s8 + $0x18] sm:$0xff] }
 0x7a7   : > { %v6286_v41 = vadd.f32 %v6285_v49, %v6255_v29  ;;  %v8700_v29 = vld [vmem:[%s9101_s8 + $0x20] sm:$0xff]  ;;  %v8701_v49 = vld [vmem:[%s9101_s8 + $0x28] sm:$0xff] }
 0x7a9   : > { %v6287_v45 = vadd.f32 %v6286_v41, %v6256_v59  ;;  %v8702_v59 = vld [vmem:[%s9101_s8 + $0x30] sm:$0xff] }
 0x7ab   : > { %v6288_v56 = vadd.f32 %v6287_v45, %v6257_v32  ;;  %v8703_v32 = vld [vmem:[%s9101_s8 + $0x38] sm:$0xff] }
 0x7ad   : > { %v6289_v13 = vadd.f32 %v6288_v56, %v6258_v28  ;;  %v8704_v28 = vld [vmem:[%s9101_s8 + $0x40] sm:$0xff] }
 0x7af   : > { %v6290_v40 = vadd.f32 %v6289_v13, %v6259_v16  ;;  %v8705_v16 = vld [vmem:[%s9101_s8 + $0x48] sm:$0xff] }
 0x7b1   : > { %v6291_v57 = vrot.slane %v6290_v40, 4 }
 0x7b3   : > { %v6292_v48 = vadd.f32 %v6291_v57, %v6290_v40  ;;  %v8706_v40 = vld [vmem:[%s9101_s8 + $0x50] sm:$0xff] }
 0x7b5   : > { %v6293_v24 = vrot.slane %v6292_v48, 2 }
 0x7b7   : > { %v6294_v15 = vadd.f32 %v6293_v24, %v6292_v48  ;;  %v8707_v48 = vld [vmem:[%s9101_s8 + $0x58] sm:$0xff] }
 0x7b9   : > { %v6295_v44 = vrot.slane %v6294_v15, 1 }
 0x7bb   : > { %v6296_v18 = vadd.f32 %v6295_v44, %v6294_v15  ;;  %v8708_v15 = vld [vmem:[%s9101_s8 + $0x60] sm:$0xff] }
 0x7bd   : > { %v6297_v61 = vmul.f32 0.00390625, %v6296_v18  ;;  %v8709_v18 = vld [vmem:[%s9101_s8 + $0x68] sm:$0xff] }
 0x7bf   : > { %v6298_v1 = vadd.f32 1e-05, %v6297_v61 }
 0x7c1   : > { %8693 = vrsqrt.f32 %v6298_v1  ;;  %v8710_v1 = vld [vmem:[%s9101_s8 + $0x70] sm:$0xff] }
 0x7cb   : > { %v8694_v34 = vpop.eup %8693 }
 0x7cc   : > { %v6329_v20 = vmul.f32 %v8694_v34, %v10705_v58  ;;  %v6300_v53 = vmul.f32 %v8694_v34, %v10638_v42  ;;  %v6301_v31 = vmul.f32 %v8694_v34, %v10641_v35  ;;  %v6302_v37 = vmul.f32 %v8694_v34, %v10644_v33 }
 0x7cd   : > { %v6303_v51 = vmul.f32 %v8694_v34, %v10647_v43  ;;  %v6304_v50 = vmul.f32 %v8694_v34, %v10650_v47  ;;  %v6305_v38 = vmul.f32 %v8694_v34, %v10653_v55  ;;  %v6306_v8 = vmul.f32 %v8694_v34, %v10656_v3 }
 0x7ce   : > { %v6361_v39 = vadd.f32 %v8695_v46, %v6329_v20  ;;  %v6307_v27 = vmul.f32 %v8694_v34, %v10659_v26  ;;  %v6308_v58 = vmul.f32 %v8694_v34, %v10661_v30  ;;  %v6309_v42 = vmul.f32 %v8694_v34, %v10663_v54  ;;  %v8711_v20 = vld [vmem:[%s9101_s8 + $0x78] sm:$0xff] }
 0x7cf   : > { %v6310_v35 = vmul.f32 %v8694_v34, %v10666_v19  ;;  %v6311_v33 = vmul.f32 %v8694_v34, %v10669_v60  ;;  %v6312_v43 = vmul.f32 %v8694_v34, %v10671_v7  ;;  %v6313_v47 = vmul.f32 %v8694_v34, %v10673_v21  ;;  %v8715_v46 = vld [vmem:[%s9101_s8 + $0x98] sm:$0xff] }
 0x7d0   : > { %6393 = vst [vmem:[%s10793_s24 + $0xe8] sm:$0xff] %v6361_v39  ;;  %v6314_v55 = vmul.f32 %v8694_v34, %v10675_v12  ;;  %v6315_v3 = vmul.f32 %v8694_v34, %v10677_v10  ;;  %v6316_v26 = vmul.f32 %v8694_v34, %v10679_v36  ;;  %v6317_v30 = vmul.f32 %v8694_v34, %v10681_v23 }
 0x7d1   : > { %v6318_v54 = vmul.f32 %v8694_v34, %v10683_v5  ;;  %v10802_v19 = vmul.f32 %v8694_v34, %v10685_v62  ;;  %v10805_v60 = vmul.f32 %v8694_v34, %v10687_v63  ;;  %v10808_v7 = vmul.f32 %v8694_v34, %v10689_v52 }
 0x7d2   : > { %v10811_v21 = vmul.f32 %v8694_v34, %v10691_v0  ;;  %v10814_v12 = vmul.f32 %v8694_v34, %v10693_v14  ;;  %v10817_v10 = vmul.f32 %v8694_v34, %v10695_v6  ;;  %v10820_v36 = vmul.f32 %v8694_v34, %v10697_v11  ;;  %v8696_v0 = vld [vmem:[%s9101_s8] sm:$0xff]  ;;  %v8697_v6 = vld [vmem:[%s9101_s8 + $0x8] sm:$0xff] }
 0x7d3   : > { %v10823_v23 = vmul.f32 %v8694_v34, %v10699_v17  ;;  %v10826_v5 = vmul.f32 %v8694_v34, %v10701_v4  ;;  %v10829_v62 = vmul.f32 %v8694_v34, %v10703_v22  ;;  %v10832_v63 = vmul.f32 %v8694_v34, %v10707_v25  ;;  %v8698_v17 = vld [vmem:[%s9101_s8 + $0x10] sm:$0xff] }
 0x7d4   : > { %v10835_v52 = vmul.f32 %v8694_v34, %v10709_v2  ;;  %v6332_v14 = vadd.f32 %v8696_v0, %v6300_v53  ;;  %v6333_v11 = vadd.f32 %v8697_v6, %v6301_v31  ;;  %v6334_v4 = vadd.f32 %v8698_v17, %v6302_v37  ;;  %v8712_v31 = vld [vmem:[%s9101_s8 + $0x80] sm:$0xff]  ;;  %v8726_v0 = vld [vmem:[%s9101_s8 + $0xf8] sm:$0xff] }
 0x7d5   : > { %v6335_v22 = vadd.f32 %v8699_v9, %v6303_v51  ;;  %v6336_v25 = vadd.f32 %v8700_v29, %v6304_v50  ;;  %v6337_v2 = vadd.f32 %v8701_v49, %v6305_v38  ;;  %v6338_v41 = vadd.f32 %v8702_v59, %v6306_v8  ;;  %v8713_v51 = vld [vmem:[%s9101_s8 + $0x88] sm:$0xff]  ;;  %v8714_v38 = vld [vmem:[%s9101_s8 + $0x90] sm:$0xff] }
 0x7d6   : > { %v6339_v45 = vadd.f32 %v8703_v32, %v6307_v27  ;;  %v6340_v56 = vadd.f32 %v8704_v28, %v6308_v58  ;;  %v6341_v13 = vadd.f32 %v8705_v16, %v6309_v42  ;;  %v6342_v57 = vadd.f32 %v8706_v40, %v6310_v35  ;;  %6364 = vst [vmem:[%s10793_s24] sm:$0xff] %v6332_v14  ;;  %v8716_v27 = vld [vmem:[%s9101_s8 + $0xa0] sm:$0xff]  ;;  %v8717_v42 = vld [vmem:[%s9101_s8 + $0xa8] sm:$0xff] }
 0x7d7   : > { %6365 = vst [vmem:[%s10793_s24 + $0x8] sm:$0xff] %v6333_v11  ;;  %6366 = vst [vmem:[%s10793_s24 + $0x10] sm:$0xff] %v6334_v4  ;;  %v6343_v24 = vadd.f32 %v8707_v48, %v6311_v33  ;;  %v6344_v44 = vadd.f32 %v8708_v15, %v6312_v43  ;;  %v6345_v61 = vadd.f32 %v8709_v18, %v6313_v47  ;;  %v8718_v33 = vld [vmem:[%s9101_s8 + $0xb0] sm:$0xff]  ;;  %v8719_v47 = vld [vmem:[%s9101_s8 + $0xb8] sm:$0xff] }
 0x7d8   : > { %v6346_v34 = vadd.f32 %v8710_v1, %v6314_v55  ;;  %6367 = vst [vmem:[%s10793_s24 + $0x18] sm:$0xff] %v6335_v22  ;;  %6368 = vst [vmem:[%s10793_s24 + $0x20] sm:$0xff] %v6336_v25  ;;  %v6347_v53 = vadd.f32 %v8711_v20, %v6315_v3  ;;  %v6348_v37 = vadd.f32 %v8712_v31, %v6316_v26  ;;  %v8720_v3 = vld [vmem:[%s9101_s8 + $0xc0] sm:$0xff] }
 0x7d9   : > { %6369 = vst [vmem:[%s10793_s24 + $0x28] sm:$0xff] %v6337_v2  ;;  %6370 = vst [vmem:[%s10793_s24 + $0x30] sm:$0xff] %v6338_v41  ;;  %v6349_v50 = vadd.f32 %v8713_v51, %v6317_v30  ;;  %v6350_v8 = vadd.f32 %v8714_v38, %v6318_v54  ;;  %v6351_v39 = vadd.f32 %v8715_v46, %v10802_v19  ;;  %v8721_v30 = vld [vmem:[%s9101_s8 + $0xc8] sm:$0xff]  ;;  %v8722_v19 = vld [vmem:[%s9101_s8 + $0xd0] sm:$0xff] }
 0x7da   : > { %6371 = vst [vmem:[%s10793_s24 + $0x38] sm:$0xff] %v6339_v45  ;;  %6372 = vst [vmem:[%s10793_s24 + $0x40] sm:$0xff] %v6340_v56  ;;  %v6352_v58 = vadd.f32 %v8716_v27, %v10805_v60  ;;  %v6353_v35 = vadd.f32 %v8717_v42, %v10808_v7  ;;  %v6354_v43 = vadd.f32 %v8718_v33, %v10811_v21  ;;  %v8723_v7 = vld [vmem:[%s9101_s8 + $0xd8] sm:$0xff] }
 0x7db   : > { %6373 = vst [vmem:[%s10793_s24 + $0x48] sm:$0xff] %v6341_v13  ;;  %6374 = vst [vmem:[%s10793_s24 + $0x50] sm:$0xff] %v6342_v57  ;;  %v6355_v55 = vadd.f32 %v8719_v47, %v10814_v12  ;;  %v6356_v26 = vadd.f32 %v8720_v3, %v10817_v10  ;;  %v6357_v54 = vadd.f32 %v8721_v30, %v10820_v36  ;;  %v8724_v12 = vld [vmem:[%s9101_s8 + $0xe0] sm:$0xff]  ;;  %v8725_v36 = vld [vmem:[%s9101_s8 + $0xf0] sm:$0xff] }
 0x7dc   : > { %6375 = vst [vmem:[%s10793_s24 + $0x58] sm:$0xff] %v6343_v24  ;;  %6376 = vst [vmem:[%s10793_s24 + $0x60] sm:$0xff] %v6344_v44  ;;  %v6358_v60 = vadd.f32 %v8722_v19, %v10823_v23  ;;  %v6359_v21 = vadd.f32 %v8723_v7, %v10826_v5  ;;  %v6360_v10 = vadd.f32 %v8724_v12, %v10829_v62 }
 0x7dd   : > { %6377 = vst [vmem:[%s10793_s24 + $0x68] sm:$0xff] %v6345_v61  ;;  %6378 = vst [vmem:[%s10793_s24 + $0x70] sm:$0xff] %v6346_v34  ;;  %v6362_v23 = vadd.f32 %v8725_v36, %v10832_v63  ;;  %v6363_v14 = vadd.f32 %v8726_v0, %v10835_v52 }
 0x7de   : > { %6379 = vst [vmem:[%s10793_s24 + $0x78] sm:$0xff] %v6347_v53  ;;  %6380 = vst [vmem:[%s10793_s24 + $0x80] sm:$0xff] %v6348_v37 }
 0x7df   : > { %6381 = vst [vmem:[%s10793_s24 + $0x88] sm:$0xff] %v6349_v50  ;;  %6382 = vst [vmem:[%s10793_s24 + $0x90] sm:$0xff] %v6350_v8 }
 0x7e0   : > { %6383 = vst [vmem:[%s10793_s24 + $0x98] sm:$0xff] %v6351_v39  ;;  %6384 = vst [vmem:[%s10793_s24 + $0xa0] sm:$0xff] %v6352_v58 }
 0x7e1   : > { %6385 = vst [vmem:[%s10793_s24 + $0xa8] sm:$0xff] %v6353_v35  ;;  %6386 = vst [vmem:[%s10793_s24 + $0xb0] sm:$0xff] %v6354_v43 }
 0x7e2   : > { %6387 = vst [vmem:[%s10793_s24 + $0xb8] sm:$0xff] %v6355_v55  ;;  %6388 = vst [vmem:[%s10793_s24 + $0xc0] sm:$0xff] %v6356_v26 }
 0x7e3   : > { %6389 = vst [vmem:[%s10793_s24 + $0xc8] sm:$0xff] %v6357_v54  ;;  %6390 = vst [vmem:[%s10793_s24 + $0xd0] sm:$0xff] %v6358_v60 }
 0x7e4   : > { %6391 = vst [vmem:[%s10793_s24 + $0xd8] sm:$0xff] %v6359_v21  ;;  %6392 = vst [vmem:[%s10793_s24 + $0xe0] sm:$0xff] %v6360_v10 }
 0x7e5   : > { %6394 = vst [vmem:[%s10793_s24 + $0xf0] sm:$0xff] %v6362_v23  ;;  %6395 = vst [vmem:[%s10793_s24 + $0xf8] sm:$0xff] %v6363_v14 }
 0x7e6   : > { %8826 = shalt.err (!%p8823_p2)
}
 0x7e7   : > { %s8827_s12 = scalar_lea.hbm %s10898_s27, 4096  ;;  %s8831_s26 = scalar_lea.hbm %s10970_s4, 8192 }
 0x7e8   : > { %p8828_p13 = scmp.ne.s32.totalorder %s10898_s27, %s8827_s12  ;;  %p8832_p4 = scmp.lt.u32.totalorder %s10898_s27, %s10970_s4 }
 0x7e9   : > { %p8833_p5 = scmp.lt.u32.totalorder %s8831_s26, %s8827_s12  ;;  %p8835_p11 = scmp.lt.u32.totalorder %s8827_s12, %s10898_s27 }
 0x7ea   : > { %p8829_p6 = pnand %p8828_p13, %p11048_p0 }
 0x7eb   : > { %p8834_p8 = por %p8833_p5, %p8832_p4 }
 0x7ec   : > { %p8830_p10 = pneg %p8829_p6 }
 0x7ed   : > { %p8836_p1 = por %p8835_p11, %p8834_p8 }
 0x7ef   : > { %p8837_p3 = pnand %p8836_p1, %p8830_p10 }
 0x7f1   : > { %8840 = shalt.err (!%p8837_p3)
}
 0x7f2   : > { %s8893_s22 = smov 128   ;;  %s8894_s24 = smov 8  }
 0x7f3   : > { %8484 = dma.vmem_to_hbm [thread:$0]  (%p11048_p0), %s10902_s28, 4096, %s10898_s27, %s6397_s3, %s8893_s22, %s8893_s22, %s8894_s24  }
 0x7f4 PF: > { %s6425_s21 = sand.u32 1, %s8871_s17   ;;  %p11049_p7 = scmp.ne.s32.totalorder %s10982_s23, 0 }
 0x7f5   : > { %p11050_p9 = scmp.ge.s32.totalorder %s8883_s20, 2  ;;  %s6426_s30 = scalar_lea.sflag [#allocation5], %s6425_s21 }
 0x7f7   : > { %p8498_p12 = pnand %p11050_p9, %p11049_p7 }
 0x7f9   : > { %8866 = dma.done.wait (!%p8498_p12), %s6426_s30, 4096  }
 0x7fa   : > { %8868 = vsyncadd (!%p8498_p12), %s6426_s30, 4294963200  ;;  %p19_p2 = scmp.ge.s32.totalorder %s9033_s9, 4   ;;  %s11051_s17 = smov %s8875_s18 }
 0x7fb   : > { %s11052_s18 = smov %s8879_s19  ;;  %s11053_s19 = smov %s9049_s14 }
 0x7fc   : > { %s11054_s20 = smov %s9033_s9  ;;  %21 = sbr.rel (!%p19_p2) target bundleno = 8 (0x8), region = 105 }
 0x803   :  { %6431 = vsyncpa [#allocation4], 1 }
 0x804   :  { %6433 = vsyncpa [#allocation4 + $0x1], 1 }
 0x805   :  { %6434 = vsyncpa [#allocation7], 1 }
 0x806   :  { %6435 = vsyncpa [#allocation5], 1 }
 0x807   :  { %6437 = vsyncpa [#allocation5 + $0x1], 1 }

</bundles_post_ra>
